<compile_context>
chip_gen: v6e
topology: v6e:2x2x1
jax: 0.10.0
libtpu: 0.0.40
codegen_flags: <defaults>
</compile_context>

<pallas_src>
import numpy as np
import jax
import jax.numpy as jnp
from jax.experimental import pallas as pl
from jax.experimental.pallas import tpu as pltpu  # noqa: F401  (TPU backend)


# ---------------------------------------------------------------------------
# Fused kernel: 4 stages + pool + FC for all (batch*modal) columns at once.
# ---------------------------------------------------------------------------
def _fused_kernel(x1_ref, a1_ref, c1_ref,
                  wdw2_ref, wpw2_ref, b2_ref,
                  wdw3_ref, wpw3_ref, b3_ref,
                  wdw4_ref, wpw4_ref, b4_ref,
                  wfc_ref, bfc_ref, dsel_ref, gsel_ref, bsel_ref,
                  o_ref):
    # ---- stage 1 (C_in == 1): folded depthwise taps -> VPU outer product.
    # x1_ref[k] is the k-th stride-2 tap of the input: x[2t-1], x[2t], x[2t+1].
    x1 = x1_ref[...]                                    # (3, H1, N, 1) f32
    a1 = a1_ref[...]                                    # (3, 1, C1)
    z = x1[0] * a1[0] + x1[1] * a1[1] + x1[2] * a1[2] + c1_ref[...]
    z = jnp.maximum(z, 0.0)                             # (H1, N, C1)

    def stage(z, wdw_ref, wpw_ref, bias_ref):
        """Depthwise time conv (k=3, stride 2, pad 1) + folded 1x1/BN + ReLU."""
        h, n, c_in = z.shape
        wdw = wdw_ref[...]                              # (3, C_in) f32
        zr = z.reshape(h // 2, 2, n, c_in)              # time -> (t_out, parity)
        e = zr[:, 0]                                    # x[2t]
        o = zr[:, 1]                                    # x[2t+1]
        om1 = jnp.concatenate(                          # x[2t-1] (zero at t=0)
            [jnp.zeros_like(o[:1]), o[:-1]], axis=0)
        dw = om1 * wdw[0:1, :] + e * wdw[1:2, :] + o * wdw[2:3, :]
        # merge (t_out, N) into the MXU M dimension; bf16 operands, f32 accum.
        lhs = dw.reshape(h // 2 * n, c_in).astype(jnp.bfloat16)
        y = jnp.dot(lhs, wpw_ref[...], preferred_element_type=jnp.float32)
        y = jnp.maximum(y + bias_ref[...], 0.0)
        return y.reshape(h // 2, n, y.shape[-1])

    z = stage(z, wdw2_ref, wpw2_ref, b2_ref)            # (H1/2, N, 128)
    z = stage(z, wdw3_ref, wpw3_ref, b3_ref)            # (H1/4, N, 256)
    z = stage(z, wdw4_ref, wpw4_ref, b4_ref)            # (H1/8, N, 512)

    # ---- AdaptiveAvgPool2d((1, modal)) == mean over the time axis.
    pooled = jnp.mean(z, axis=0)                        # (N, 512)

    # ---- Linear with the channel-major flatten folded into the weight layout:
    #   r[n, m*cat + k] = sum_c pooled[n, c] * w_fc[c*modal + m, k]
    r = jnp.dot(pooled.astype(jnp.bfloat16), wfc_ref[...],
                preferred_element_type=jnp.float32)     # (N, modal*cat)
    s = r * dsel_ref[...]                               # keep only m == n % modal
    t = jnp.dot(s, gsel_ref[...],
                preferred_element_type=jnp.float32)     # (N, cat): sum lane groups
    out = jnp.dot(bsel_ref[...], t,
                  preferred_element_type=jnp.float32)   # (B, cat): sum over modal
    o_ref[...] = out + bfc_ref[...]


# ---------------------------------------------------------------------------
# Parameter folding (parameter-only math; done once per call in tiny glue)
# ---------------------------------------------------------------------------
def _fold_stage1(w_dw, b_dw, w_pw, b_pw, scale, shift):
    """C_in == 1: fold taps x pointwise x BN into (3,1,C_out) + (1,C_out)."""
    a = w_dw @ (w_pw * scale)                           # (3, 1)@(1, C) -> (3, C)
    c = (b_dw @ w_pw + b_pw) * scale + shift            # (1, C)
    return a[:, None, :], c


def _fold_stage(w_dw, b_dw, w_pw, b_pw, scale, shift):
    """Fold depthwise bias + 1x1 bias + eval-mode BN into pointwise weight/bias."""
    wpw_eff = (w_pw * scale).astype(jnp.bfloat16)       # (C_in, C_out)
    bias_eff = (b_dw @ w_pw + b_pw) * scale + shift     # (1, C_out)
    return w_dw, wpw_eff, bias_eff


# ---------------------------------------------------------------------------
# Parameters (synthetic, matching the PyTorch module's shapes)
# ---------------------------------------------------------------------------
def init_params(key, modal, category, kernel_size=3):
    stage_dims = [(1, 64), (64, 128), (128, 256), (256, 512)]
    eps = 1e-5
    stages = []
    for c_in, c_out in stage_dims:
        key, k0, k1, k2, k3, k4, k5, k6, k7 = jax.random.split(key, 9)
        w_dw = jax.random.normal(k0, (kernel_size, c_in), jnp.float32) / kernel_size
        b_dw = jax.random.normal(k1, (1, c_in), jnp.float32) * 0.05
        w_pw = jax.random.normal(k2, (c_in, c_out), jnp.float32) / jnp.sqrt(
            jnp.float32(c_in))
        b_pw = jax.random.normal(k3, (1, c_out), jnp.float32) * 0.05
        gamma = jax.random.uniform(k4, (1, c_out), jnp.float32, 0.5, 1.5)
        beta = jax.random.normal(k5, (1, c_out), jnp.float32) * 0.05
        r_mean = jax.random.normal(k6, (1, c_out), jnp.float32) * 0.05
        r_var = jax.random.uniform(k7, (1, c_out), jnp.float32, 0.5, 1.5)
        scale = gamma / jnp.sqrt(r_var + eps)
        shift = beta - r_mean * scale
        stages.append((w_dw, b_dw, w_pw, b_pw, scale, shift))

    key, kw, kb = jax.random.split(key, 3)
    d = 512 * modal
    w_fc = jax.random.normal(kw, (d, category), jnp.float32) / jnp.sqrt(
        jnp.float32(d))
    b_fc = jax.random.normal(kb, (1, category), jnp.float32) * 0.05
    return {"stages": stages, "w_fc": w_fc, "b_fc": b_fc}


# ---------------------------------------------------------------------------
# Forward
# ---------------------------------------------------------------------------
@jax.jit
def depthwise_conv_forward(x, params):
    """x: [B, 1, series, modal] (NCHW, like the PyTorch module)."""
    b, _, t, modal = x.shape
    n = b * modal
    category = params["w_fc"].shape[1]
    # TODO(synk): general series lengths / kernel sizes need masked tails; the
    # fused kernel assumes kernel_size == 3 and series % 16 == 0 (4 stride-2 stages).
    if t % 16 != 0:
        raise ValueError("series length must be divisible by 16")
    if params["stages"][0][0].shape[0] != 3:
        raise ValueError("fused kernel assumes kernel_size == 3")

    # NCHW -> (T, N) with n = b*modal + m, then deinterleave even/odd time rows
    # so every stage-1 depthwise tap is a contiguous slab inside the kernel.
    xt = jnp.transpose(x[:, 0, :, :], (1, 0, 2)).reshape(t, n)
    xe = xt[0::2]                                               # x[2u]
    xo = xt[1::2]                                               # x[2u+1]
    xom1 = jnp.concatenate([jnp.zeros((1, n), xt.dtype), xo[:-1]], axis=0)
    x1 = jnp.stack([xom1, xe, xo], axis=0)[..., None]           # (3, T/2, N, 1)

    s1, s2, s3, s4 = params["stages"]
    a1, c1 = _fold_stage1(*s1)
    wdw2, wpw2, b2 = _fold_stage(*s2)
    wdw3, wpw3, b3 = _fold_stage(*s3)
    wdw4, wpw4, b4 = _fold_stage(*s4)

    c_last = s4[2].shape[1]                                     # 512
    # Fold the channel-major flatten (feature j = c*modal + m) into the weight.
    wfc = params["w_fc"].reshape(c_last, modal * category).astype(jnp.bfloat16)
    bfc = params["b_fc"]

    # Constant 0/1 selection matrices for the fused FC (baked at trace time).
    jj = np.arange(modal * category)
    nn = np.arange(n)
    dsel = (nn[:, None] % modal == jj[None, :] // category).astype(np.float32)
    gsel = (jj[:, None] % category ==
            np.arange(category)[None, :]).astype(np.float32)
    bsel = (nn[None, :] // modal ==
            np.arange(b)[:, None]).astype(np.float32)

    return pl.pallas_call(
        _fused_kernel,
        out_shape=jax.ShapeDtypeStruct((b, category), jnp.float32),
    )(x1, a1, c1, wdw2, wpw2, b2, wdw3, wpw3, b3, wdw4, wpw4, b4,
      wfc, bfc, jnp.asarray(dsel), jnp.asarray(gsel), jnp.asarray(bsel))


# ---------------------------------------------------------------------------
if __name__ == "__main__":
    key = jax.random.PRNGKey(0)
    B, C, SERIES, MODAL = 2, 1, 64, 8
    CATEGORY = 6

    kx, kp = jax.random.split(key)
    x = jax.random.normal(kx, (B, C, SERIES, MODAL), jnp.float32)
    params = init_params(kp, MODAL, CATEGORY, kernel_size=3)

    out = depthwise_conv_forward(x, params)
    out = jax.block_until_ready(out)

    assert out.shape == (B, CATEGORY), out.shape
    assert bool(jnp.all(jnp.isfinite(out)))
    print("KERNEL_OK")
</pallas_src>

<mosaic_0001>
module attributes {stable_mosaic.version = 11 : i64} {
  func.func @_fused_kernel(%arg0: memref<3x32x16x1xf32, #tpu.memory_space<vmem>>, %arg1: memref<3x1x64xf32, #tpu.memory_space<vmem>>, %arg2: memref<1x64xf32, #tpu.memory_space<vmem>>, %arg3: memref<3x64xf32, #tpu.memory_space<vmem>>, %arg4: memref<64x128xbf16, #tpu.memory_space<vmem>>, %arg5: memref<1x128xf32, #tpu.memory_space<vmem>>, %arg6: memref<3x128xf32, #tpu.memory_space<vmem>>, %arg7: memref<128x256xbf16, #tpu.memory_space<vmem>>, %arg8: memref<1x256xf32, #tpu.memory_space<vmem>>, %arg9: memref<3x256xf32, #tpu.memory_space<vmem>>, %arg10: memref<256x512xbf16, #tpu.memory_space<vmem>>, %arg11: memref<1x512xf32, #tpu.memory_space<vmem>>, %arg12: memref<512x48xbf16, #tpu.memory_space<vmem>>, %arg13: memref<1x6xf32, #tpu.memory_space<vmem>>, %arg14: memref<16x48xf32, #tpu.memory_space<vmem>>, %arg15: memref<48x6xf32, #tpu.memory_space<vmem>>, %arg16: memref<2x16xf32, #tpu.memory_space<vmem>>, %arg17: memref<2x6xf32, #tpu.memory_space<vmem>>) attributes {dimension_semantics = [], scalar_prefetch = 0 : i64, scratch_operands = 0 : i64, tpu.core_type = #tpu.core_type<tc>} {
    %c0 = arith.constant 0 : index
    %c0_0 = arith.constant 0 : index
    %c0_1 = arith.constant 0 : index
    %c0_2 = arith.constant 0 : index
    %0 = vector.load %arg0[%c0, %c0_0, %c0_1, %c0_2] : memref<3x32x16x1xf32, #tpu.memory_space<vmem>>, vector<3x32x16x1xf32>
    %c0_3 = arith.constant 0 : index
    %c0_4 = arith.constant 0 : index
    %c0_5 = arith.constant 0 : index
    %1 = vector.load %arg1[%c0_3, %c0_4, %c0_5] : memref<3x1x64xf32, #tpu.memory_space<vmem>>, vector<3x1x64xf32>
    %2 = vector.extract_strided_slice %0 {offsets = [0, 0, 0, 0], sizes = [1, 32, 16, 1], strides = [1, 1, 1, 1]} : vector<3x32x16x1xf32> to vector<1x32x16x1xf32>
    %3 = vector.shape_cast %2 : vector<1x32x16x1xf32> to vector<32x16x1xf32>
    %4 = vector.extract_strided_slice %1 {offsets = [0, 0, 0], sizes = [1, 1, 64], strides = [1, 1, 1]} : vector<3x1x64xf32> to vector<1x1x64xf32>
    %5 = vector.shape_cast %4 : vector<1x1x64xf32> to vector<1x64xf32>
    %6 = vector.shape_cast %5 : vector<1x64xf32> to vector<1x1x64xf32>
    %7 = vector.broadcast %3 : vector<32x16x1xf32> to vector<32x16x64xf32>
    %8 = vector.broadcast %6 : vector<1x1x64xf32> to vector<32x16x64xf32>
    %9 = arith.mulf %7, %8 : vector<32x16x64xf32>
    %10 = vector.extract_strided_slice %0 {offsets = [1, 0, 0, 0], sizes = [1, 32, 16, 1], strides = [1, 1, 1, 1]} : vector<3x32x16x1xf32> to vector<1x32x16x1xf32>
    %11 = vector.shape_cast %10 : vector<1x32x16x1xf32> to vector<32x16x1xf32>
    %12 = vector.extract_strided_slice %1 {offsets = [1, 0, 0], sizes = [1, 1, 64], strides = [1, 1, 1]} : vector<3x1x64xf32> to vector<1x1x64xf32>
    %13 = vector.shape_cast %12 : vector<1x1x64xf32> to vector<1x64xf32>
    %14 = vector.shape_cast %13 : vector<1x64xf32> to vector<1x1x64xf32>
    %15 = vector.broadcast %11 : vector<32x16x1xf32> to vector<32x16x64xf32>
    %16 = vector.broadcast %14 : vector<1x1x64xf32> to vector<32x16x64xf32>
    %17 = arith.mulf %15, %16 : vector<32x16x64xf32>
    %18 = arith.addf %9, %17 : vector<32x16x64xf32>
    %19 = vector.extract_strided_slice %0 {offsets = [2, 0, 0, 0], sizes = [1, 32, 16, 1], strides = [1, 1, 1, 1]} : vector<3x32x16x1xf32> to vector<1x32x16x1xf32>
    %20 = vector.shape_cast %19 : vector<1x32x16x1xf32> to vector<32x16x1xf32>
    %21 = vector.extract_strided_slice %1 {offsets = [2, 0, 0], sizes = [1, 1, 64], strides = [1, 1, 1]} : vector<3x1x64xf32> to vector<1x1x64xf32>
    %22 = vector.shape_cast %21 : vector<1x1x64xf32> to vector<1x64xf32>
    %23 = vector.shape_cast %22 : vector<1x64xf32> to vector<1x1x64xf32>
    %24 = vector.broadcast %20 : vector<32x16x1xf32> to vector<32x16x64xf32>
    %25 = vector.broadcast %23 : vector<1x1x64xf32> to vector<32x16x64xf32>
    %26 = arith.mulf %24, %25 : vector<32x16x64xf32>
    %27 = arith.addf %18, %26 : vector<32x16x64xf32>
    %c0_6 = arith.constant 0 : index
    %c0_7 = arith.constant 0 : index
    %28 = vector.load %arg2[%c0_6, %c0_7] : memref<1x64xf32, #tpu.memory_space<vmem>>, vector<1x64xf32>
    %29 = vector.shape_cast %28 : vector<1x64xf32> to vector<1x1x64xf32>
    %30 = vector.broadcast %29 : vector<1x1x64xf32> to vector<32x16x64xf32>
    %31 = arith.addf %27, %30 : vector<32x16x64xf32>
    %cst = arith.constant 0.000000e+00 : f32
    %32 = vector.broadcast %cst : f32 to vector<32x16x64xf32>
    %33 = arith.maximumf %31, %32 : vector<32x16x64xf32>
    %c0_8 = arith.constant 0 : index
    %c0_9 = arith.constant 0 : index
    %34 = vector.load %arg3[%c0_8, %c0_9] : memref<3x64xf32, #tpu.memory_space<vmem>>, vector<3x64xf32>
    %35 = vector.shape_cast %33 : vector<32x16x64xf32> to vector<16x2x16x64xf32>
    %36 = vector.extract_strided_slice %35 {offsets = [0, 0, 0, 0], sizes = [16, 1, 16, 64], strides = [1, 1, 1, 1]} : vector<16x2x16x64xf32> to vector<16x1x16x64xf32>
    %37 = vector.shape_cast %36 : vector<16x1x16x64xf32> to vector<16x16x64xf32>
    %38 = vector.extract_strided_slice %35 {offsets = [0, 1, 0, 0], sizes = [16, 1, 16, 64], strides = [1, 1, 1, 1]} : vector<16x2x16x64xf32> to vector<16x1x16x64xf32>
    %39 = vector.shape_cast %38 : vector<16x1x16x64xf32> to vector<16x16x64xf32>
    %cst_10 = arith.constant 0.000000e+00 : f32
    %40 = vector.broadcast %cst_10 : f32 to vector<1x16x64xf32>
    %41 = vector.extract_strided_slice %39 {offsets = [0, 0, 0], sizes = [15, 16, 64], strides = [1, 1, 1]} : vector<16x16x64xf32> to vector<15x16x64xf32>
    %42 = tpu.concatenate %40, %41 in 0 : vector<1x16x64xf32>, vector<15x16x64xf32> -> vector<16x16x64xf32>
    %43 = vector.extract_strided_slice %34 {offsets = [0, 0], sizes = [1, 64], strides = [1, 1]} : vector<3x64xf32> to vector<1x64xf32>
    %44 = vector.shape_cast %43 : vector<1x64xf32> to vector<1x1x64xf32>
    %45 = vector.broadcast %44 : vector<1x1x64xf32> to vector<16x16x64xf32>
    %46 = arith.mulf %42, %45 : vector<16x16x64xf32>
    %47 = vector.extract_strided_slice %34 {offsets = [1, 0], sizes = [1, 64], strides = [1, 1]} : vector<3x64xf32> to vector<1x64xf32>
    %48 = vector.shape_cast %47 : vector<1x64xf32> to vector<1x1x64xf32>
    %49 = vector.broadcast %48 : vector<1x1x64xf32> to vector<16x16x64xf32>
    %50 = arith.mulf %37, %49 : vector<16x16x64xf32>
    %51 = arith.addf %46, %50 : vector<16x16x64xf32>
    %52 = vector.extract_strided_slice %34 {offsets = [2, 0], sizes = [1, 64], strides = [1, 1]} : vector<3x64xf32> to vector<1x64xf32>
    %53 = vector.shape_cast %52 : vector<1x64xf32> to vector<1x1x64xf32>
    %54 = vector.broadcast %53 : vector<1x1x64xf32> to vector<16x16x64xf32>
    %55 = arith.mulf %39, %54 : vector<16x16x64xf32>
    %56 = arith.addf %51, %55 : vector<16x16x64xf32>
    %57 = vector.shape_cast %56 : vector<16x16x64xf32> to vector<256x64xf32>
    %58 = arith.truncf %57 : vector<256x64xf32> to vector<256x64xbf16>
    %c0_11 = arith.constant 0 : index
    %c0_12 = arith.constant 0 : index
    %59 = vector.load %arg4[%c0_11, %c0_12] : memref<64x128xbf16, #tpu.memory_space<vmem>>, vector<64x128xbf16>
    %cst_13 = arith.constant dense<0.000000e+00> : vector<256x128xf32>
    %60 = tpu.matmul %58, %59, %cst_13 {dimension_numbers = #tpu.dot_dimension_numbers<[1], [0], [0], [1], [0, 0, 1, 1], [], []>} : vector<256x64xbf16>, vector<64x128xbf16>, vector<256x128xf32> -> vector<256x128xf32>
    %c0_14 = arith.constant 0 : index
    %c0_15 = arith.constant 0 : index
    %61 = vector.load %arg5[%c0_14, %c0_15] : memref<1x128xf32, #tpu.memory_space<vmem>>, vector<1x128xf32>
    %62 = vector.broadcast %61 : vector<1x128xf32> to vector<256x128xf32>
    %63 = arith.addf %60, %62 : vector<256x128xf32>
    %cst_16 = arith.constant 0.000000e+00 : f32
    %64 = vector.broadcast %cst_16 : f32 to vector<256x128xf32>
    %65 = arith.maximumf %63, %64 : vector<256x128xf32>
    %66 = vector.shape_cast %65 : vector<256x128xf32> to vector<16x16x128xf32>
    %c0_17 = arith.constant 0 : index
    %c0_18 = arith.constant 0 : index
    %67 = vector.load %arg6[%c0_17, %c0_18] : memref<3x128xf32, #tpu.memory_space<vmem>>, vector<3x128xf32>
    %68 = vector.shape_cast %66 : vector<16x16x128xf32> to vector<8x2x16x128xf32>
    %69 = vector.extract_strided_slice %68 {offsets = [0, 0, 0, 0], sizes = [8, 1, 16, 128], strides = [1, 1, 1, 1]} : vector<8x2x16x128xf32> to vector<8x1x16x128xf32>
    %70 = vector.shape_cast %69 : vector<8x1x16x128xf32> to vector<8x16x128xf32>
    %71 = vector.extract_strided_slice %68 {offsets = [0, 1, 0, 0], sizes = [8, 1, 16, 128], strides = [1, 1, 1, 1]} : vector<8x2x16x128xf32> to vector<8x1x16x128xf32>
    %72 = vector.shape_cast %71 : vector<8x1x16x128xf32> to vector<8x16x128xf32>
    %cst_19 = arith.constant 0.000000e+00 : f32
    %73 = vector.broadcast %cst_19 : f32 to vector<1x16x128xf32>
    %74 = vector.extract_strided_slice %72 {offsets = [0, 0, 0], sizes = [7, 16, 128], strides = [1, 1, 1]} : vector<8x16x128xf32> to vector<7x16x128xf32>
    %75 = tpu.concatenate %73, %74 in 0 : vector<1x16x128xf32>, vector<7x16x128xf32> -> vector<8x16x128xf32>
    %76 = vector.extract_strided_slice %67 {offsets = [0, 0], sizes = [1, 128], strides = [1, 1]} : vector<3x128xf32> to vector<1x128xf32>
    %77 = vector.shape_cast %76 : vector<1x128xf32> to vector<1x1x128xf32>
    %78 = vector.broadcast %77 : vector<1x1x128xf32> to vector<8x16x128xf32>
    %79 = arith.mulf %75, %78 : vector<8x16x128xf32>
    %80 = vector.extract_strided_slice %67 {offsets = [1, 0], sizes = [1, 128], strides = [1, 1]} : vector<3x128xf32> to vector<1x128xf32>
    %81 = vector.shape_cast %80 : vector<1x128xf32> to vector<1x1x128xf32>
    %82 = vector.broadcast %81 : vector<1x1x128xf32> to vector<8x16x128xf32>
    %83 = arith.mulf %70, %82 : vector<8x16x128xf32>
    %84 = arith.addf %79, %83 : vector<8x16x128xf32>
    %85 = vector.extract_strided_slice %67 {offsets = [2, 0], sizes = [1, 128], strides = [1, 1]} : vector<3x128xf32> to vector<1x128xf32>
    %86 = vector.shape_cast %85 : vector<1x128xf32> to vector<1x1x128xf32>
    %87 = vector.broadcast %86 : vector<1x1x128xf32> to vector<8x16x128xf32>
    %88 = arith.mulf %72, %87 : vector<8x16x128xf32>
    %89 = arith.addf %84, %88 : vector<8x16x128xf32>
    %90 = vector.shape_cast %89 : vector<8x16x128xf32> to vector<128x128xf32>
    %91 = arith.truncf %90 : vector<128x128xf32> to vector<128x128xbf16>
    %c0_20 = arith.constant 0 : index
    %c0_21 = arith.constant 0 : index
    %92 = vector.load %arg7[%c0_20, %c0_21] : memref<128x256xbf16, #tpu.memory_space<vmem>>, vector<128x256xbf16>
    %cst_22 = arith.constant dense<0.000000e+00> : vector<128x256xf32>
    %93 = tpu.matmul %91, %92, %cst_22 {dimension_numbers = #tpu.dot_dimension_numbers<[1], [0], [0], [1], [0, 0, 1, 1], [], []>} : vector<128x128xbf16>, vector<128x256xbf16>, vector<128x256xf32> -> vector<128x256xf32>
    %c0_23 = arith.constant 0 : index
    %c0_24 = arith.constant 0 : index
    %94 = vector.load %arg8[%c0_23, %c0_24] : memref<1x256xf32, #tpu.memory_space<vmem>>, vector<1x256xf32>
    %95 = vector.broadcast %94 : vector<1x256xf32> to vector<128x256xf32>
    %96 = arith.addf %93, %95 : vector<128x256xf32>
    %cst_25 = arith.constant 0.000000e+00 : f32
    %97 = vector.broadcast %cst_25 : f32 to vector<128x256xf32>
    %98 = arith.maximumf %96, %97 : vector<128x256xf32>
    %99 = vector.shape_cast %98 : vector<128x256xf32> to vector<8x16x256xf32>
    %c0_26 = arith.constant 0 : index
    %c0_27 = arith.constant 0 : index
    %100 = vector.load %arg9[%c0_26, %c0_27] : memref<3x256xf32, #tpu.memory_space<vmem>>, vector<3x256xf32>
    %101 = vector.shape_cast %99 : vector<8x16x256xf32> to vector<4x2x16x256xf32>
    %102 = vector.extract_strided_slice %101 {offsets = [0, 0, 0, 0], sizes = [4, 1, 16, 256], strides = [1, 1, 1, 1]} : vector<4x2x16x256xf32> to vector<4x1x16x256xf32>
    %103 = vector.shape_cast %102 : vector<4x1x16x256xf32> to vector<4x16x256xf32>
    %104 = vector.extract_strided_slice %101 {offsets = [0, 1, 0, 0], sizes = [4, 1, 16, 256], strides = [1, 1, 1, 1]} : vector<4x2x16x256xf32> to vector<4x1x16x256xf32>
    %105 = vector.shape_cast %104 : vector<4x1x16x256xf32> to vector<4x16x256xf32>
    %cst_28 = arith.constant 0.000000e+00 : f32
    %106 = vector.broadcast %cst_28 : f32 to vector<1x16x256xf32>
    %107 = vector.extract_strided_slice %105 {offsets = [0, 0, 0], sizes = [3, 16, 256], strides = [1, 1, 1]} : vector<4x16x256xf32> to vector<3x16x256xf32>
    %108 = tpu.concatenate %106, %107 in 0 : vector<1x16x256xf32>, vector<3x16x256xf32> -> vector<4x16x256xf32>
    %109 = vector.extract_strided_slice %100 {offsets = [0, 0], sizes = [1, 256], strides = [1, 1]} : vector<3x256xf32> to vector<1x256xf32>
    %110 = vector.shape_cast %109 : vector<1x256xf32> to vector<1x1x256xf32>
    %111 = vector.broadcast %110 : vector<1x1x256xf32> to vector<4x16x256xf32>
    %112 = arith.mulf %108, %111 : vector<4x16x256xf32>
    %113 = vector.extract_strided_slice %100 {offsets = [1, 0], sizes = [1, 256], strides = [1, 1]} : vector<3x256xf32> to vector<1x256xf32>
    %114 = vector.shape_cast %113 : vector<1x256xf32> to vector<1x1x256xf32>
    %115 = vector.broadcast %114 : vector<1x1x256xf32> to vector<4x16x256xf32>
    %116 = arith.mulf %103, %115 : vector<4x16x256xf32>
    %117 = arith.addf %112, %116 : vector<4x16x256xf32>
    %118 = vector.extract_strided_slice %100 {offsets = [2, 0], sizes = [1, 256], strides = [1, 1]} : vector<3x256xf32> to vector<1x256xf32>
    %119 = vector.shape_cast %118 : vector<1x256xf32> to vector<1x1x256xf32>
    %120 = vector.broadcast %119 : vector<1x1x256xf32> to vector<4x16x256xf32>
    %121 = arith.mulf %105, %120 : vector<4x16x256xf32>
    %122 = arith.addf %117, %121 : vector<4x16x256xf32>
    %123 = vector.shape_cast %122 : vector<4x16x256xf32> to vector<64x256xf32>
    %124 = arith.truncf %123 : vector<64x256xf32> to vector<64x256xbf16>
    %c0_29 = arith.constant 0 : index
    %c0_30 = arith.constant 0 : index
    %125 = vector.load %arg10[%c0_29, %c0_30] : memref<256x512xbf16, #tpu.memory_space<vmem>>, vector<256x512xbf16>
    %cst_31 = arith.constant dense<0.000000e+00> : vector<64x512xf32>
    %126 = tpu.matmul %124, %125, %cst_31 {dimension_numbers = #tpu.dot_dimension_numbers<[1], [0], [0], [1], [0, 0, 1, 1], [], []>} : vector<64x256xbf16>, vector<256x512xbf16>, vector<64x512xf32> -> vector<64x512xf32>
    %c0_32 = arith.constant 0 : index
    %c0_33 = arith.constant 0 : index
    %127 = vector.load %arg11[%c0_32, %c0_33] : memref<1x512xf32, #tpu.memory_space<vmem>>, vector<1x512xf32>
    %128 = vector.broadcast %127 : vector<1x512xf32> to vector<64x512xf32>
    %129 = arith.addf %126, %128 : vector<64x512xf32>
    %cst_34 = arith.constant 0.000000e+00 : f32
    %130 = vector.broadcast %cst_34 : f32 to vector<64x512xf32>
    %131 = arith.maximumf %129, %130 : vector<64x512xf32>
    %132 = vector.shape_cast %131 : vector<64x512xf32> to vector<4x16x512xf32>
    %cst_35 = arith.constant dense<0.000000e+00> : vector<16x512xf32>
    %133 = vector.multi_reduction <add>, %132, %cst_35 [0] : vector<4x16x512xf32> to vector<16x512xf32>
    %cst_36 = arith.constant 4.000000e+00 : f32
    %134 = vector.broadcast %cst_36 : f32 to vector<16x512xf32>
    %135 = arith.divf %133, %134 : vector<16x512xf32>
    %136 = arith.truncf %135 : vector<16x512xf32> to vector<16x512xbf16>
    %c0_37 = arith.constant 0 : index
    %c0_38 = arith.constant 0 : index
    %137 = vector.load %arg12[%c0_37, %c0_38] : memref<512x48xbf16, #tpu.memory_space<vmem>>, vector<512x48xbf16>
    %cst_39 = arith.constant dense<0.000000e+00> : vector<16x48xf32>
    %138 = tpu.matmul %136, %137, %cst_39 {dimension_numbers = #tpu.dot_dimension_numbers<[1], [0], [0], [1], [0, 0, 1, 1], [], []>} : vector<16x512xbf16>, vector<512x48xbf16>, vector<16x48xf32> -> vector<16x48xf32>
    %c0_40 = arith.constant 0 : index
    %c0_41 = arith.constant 0 : index
    %139 = vector.load %arg14[%c0_40, %c0_41] : memref<16x48xf32, #tpu.memory_space<vmem>>, vector<16x48xf32>
    %140 = arith.mulf %138, %139 : vector<16x48xf32>
    %c0_42 = arith.constant 0 : index
    %c0_43 = arith.constant 0 : index
    %141 = vector.load %arg15[%c0_42, %c0_43] : memref<48x6xf32, #tpu.memory_space<vmem>>, vector<48x6xf32>
    %cst_44 = arith.constant dense<0.000000e+00> : vector<16x6xf32>
    %142 = tpu.matmul %140, %141, %cst_44 {dimension_numbers = #tpu.dot_dimension_numbers<[1], [0], [0], [1], [0, 0, 1, 1], [], []>} : vector<16x48xf32>, vector<48x6xf32>, vector<16x6xf32> -> vector<16x6xf32>
    %c0_45 = arith.constant 0 : index
    %c0_46 = arith.constant 0 : index
    %143 = vector.load %arg16[%c0_45, %c0_46] : memref<2x16xf32, #tpu.memory_space<vmem>>, vector<2x16xf32>
    %cst_47 = arith.constant dense<0.000000e+00> : vector<2x6xf32>
    %144 = tpu.matmul %143, %142, %cst_47 {dimension_numbers = #tpu.dot_dimension_numbers<[1], [0], [0], [1], [0, 0, 1, 1], [], []>} : vector<2x16xf32>, vector<16x6xf32>, vector<2x6xf32> -> vector<2x6xf32>
    %c0_48 = arith.constant 0 : index
    %c0_49 = arith.constant 0 : index
    %145 = vector.load %arg13[%c0_48, %c0_49] : memref<1x6xf32, #tpu.memory_space<vmem>>, vector<1x6xf32>
    %146 = vector.broadcast %145 : vector<1x6xf32> to vector<2x6xf32>
    %147 = arith.addf %144, %146 : vector<2x6xf32>
    %c0_50 = arith.constant 0 : index
    %c0_51 = arith.constant 0 : index
    %148 = vector.load %arg17[%c0_50, %c0_51] : memref<2x6xf32, #tpu.memory_space<vmem>>, vector<2x6xf32>
    tpu.vector_store %arg17[%c0_50, %c0_51], %147 {strides = array<i32>} : memref<2x6xf32, #tpu.memory_space<vmem>>, vector<2x6xf32>,
    return
  }
}

</mosaic_0001>

<bundles_post_ra>
// kernel: depthwise_conv_forward.1
= control target key start
LH: loop header
LB: loop body
LE: loop exit
PB: predicated region body
PF: predicated region fallthrough
CT: control target
= control target key end

     0   :  { %s6374_s0 = inlined_call_operand.vmem [shape: f32[3,32,16,1], index: 0, kind: input, shape index: {}]   ;;  %s6375_s1 = inlined_call_operand.vmem [shape: f32[3,1,64], index: 1, kind: input, shape index: {}]   ;;  %s6376_s2 = inlined_call_operand.vmem [shape: f32[1,64], index: 2, kind: input, shape index: {}]   ;;  %s6377_s3 = inlined_call_operand.vmem [shape: f32[3,64], index: 3, kind: input, shape index: {}]   ;;  %s6378_s4 = inlined_call_operand.vmem [shape: bf16[64,128], index: 4, kind: input, shape index: {}]   ;;  %s6379_s5 = inlined_call_operand.vmem [shape: f32[1,128], index: 5, kind: input, shape index: {}]   ;;  %s6380_s6 = inlined_call_operand.vmem [shape: f32[3,128], index: 6, kind: input, shape index: {}]   ;;  %s6381_s7 = inlined_call_operand.vmem [shape: bf16[128,256], index: 7, kind: input, shape index: {}]   ;;  %s6382_s8 = inlined_call_operand.vmem [shape: f32[1,256], index: 8, kind: input, shape index: {}]   ;;  %s6383_s9 = inlined_call_operand.vmem [shape: f32[3,256], index: 9, kind: input, shape index: {}]   ;;  %s6384_s10 = inlined_call_operand.vmem [shape: bf16[256,512], index: 10, kind: input, shape index: {}]   ;;  %s6385_s11 = inlined_call_operand.vmem [shape: f32[1,512], index: 11, kind: input, shape index: {}]   ;;  %s6386_s12 = inlined_call_operand.vmem [shape: bf16[512,48], index: 12, kind: input, shape index: {}]   ;;  %s6387_s13 = inlined_call_operand.vmem [shape: f32[1,6], index: 13, kind: input, shape index: {}]   ;;  %s6388_s14 = inlined_call_operand.vmem [shape: f32[16,48], index: 14, kind: input, shape index: {}]   ;;  %s6389_s15 = inlined_call_operand.vmem [shape: f32[48,6], index: 15, kind: input, shape index: {}]   ;;  %s6390_s16 = inlined_call_operand.vmem [shape: f32[2,16], index: 16, kind: input, shape index: {}]   ;;  %s6391_s17 = inlined_call_operand.hbm [shape: f32[2,6], index: 17, kind: output, shape index: {}]  }
   0x1   :  { %6394 = sst [smem:[#allocation5_spill]] %s6374_s0 }
   0x2   :  { %6395 = sst [smem:[#allocation6_spill]] %s6375_s1 }
   0x3   :  { %s6396_s26 = sld [smem:[#allocation5_spill]]  ;;  %v4270_v2 = vmov 0   ;;  %v4083_v23 = vld [vmem:[%s6378_s4 + $0x18] sm:$0xff]   ;;  %v4084_v26 = vld [vmem:[%s6378_s4 + $0x10] sm:$0xff]   ;;  %v4085_v29 = vld [vmem:[%s6378_s4 + $0x8] sm:$0xff]  }
   0x4   :  { %4082 = vset.pattern.permute.xlu1 %v4270_v2  ;;  %4081 = vset.pattern.permute.xlu0 %v4270_v2  ;;  %v4086_v32 = vld [vmem:[%s6378_s4] sm:$0xff]  }
   0x5   :  { %2395 = vmatprep.mubr.bf16.mxu1 %v4270_v2  ;;  %4015 = vmatprep.subr.bf16.mxu0 %v4083_v23 }
   0x6   :  { %4016 = vmatpush3.bf16.msra.mxu0 %v4083_v23 }
   0x7   :  { %4017 = vmatprep.subr.bf16.mxu0 %v4084_v26 }
   0x9   :  { %v122_v0 = vld [vmem:[%s6396_s26 + $0x200] sm:$0xff]  ;;  %v123_v3 = vld [vmem:[%s6396_s26 + $0x208] sm:$0xff]  ;;  %v61_v5 = vld [vmem:[%s6396_s26 + $0x18] sm:$0xff] }
   0xa   :  { %v58_v1 = vld [vmem:[%s6396_s26] sm:$0xff]  ;;  %645 = vperm.xlu1 %4082, %v122_v0   ;;  %v59_v4 = vld [vmem:[%s6396_s26 + $0x8] sm:$0xff]  ;;  %v60_v6 = vld [vmem:[%s6396_s26 + $0x10] sm:$0xff]  ;;  %4018 = vmatpush3.bf16.msra.mxu0 %v4084_v26 }
   0xb   :  { %255 = vperm.xlu0 %4081, %v58_v1   ;;  %v63_v7 = vld [vmem:[%s6396_s26 + $0x28] sm:$0xff]  ;;  %v62_v8 = vld [vmem:[%s6396_s26 + $0x20] sm:$0xff]  ;;  %v125_v9 = vld [vmem:[%s6396_s26 + $0x218] sm:$0xff]  ;;  %4019 = vmatprep.subr.bf16.mxu0 %v4085_v29 }
   0xc   :  { %v124_v10 = vld [vmem:[%s6396_s26 + $0x210] sm:$0xff]  ;;  %v127_v11 = vld [vmem:[%s6396_s26 + $0x228] sm:$0xff]  ;;  %v126_v12 = vld [vmem:[%s6396_s26 + $0x220] sm:$0xff] }
   0xd   :  { %v187_v13 = vld [vmem:[%s6396_s26 + $0x408] sm:$0xff]  ;;  %v186_v14 = vld [vmem:[%s6396_s26 + $0x400] sm:$0xff]  ;;  %v65_v15 = vld [vmem:[%s6396_s26 + $0x38] sm:$0xff] }
   0xe   :  { %650 = vperm.xlu1 %4082, %v123_v3   ;;  %v64_v16 = vld [vmem:[%s6396_s26 + $0x30] sm:$0xff]  ;;  %v129_v17 = vld [vmem:[%s6396_s26 + $0x238] sm:$0xff]  ;;  %v191_v21 = vld [vmem:[%s6396_s26 + $0x428] sm:$0xff]  ;;  %4020 = vmatpush3.bf16.msra.mxu0 %v4085_v29 }
   0xf   :  { %260 = vperm.xlu0 %4081, %v59_v4   ;;  %v128_v18 = vld [vmem:[%s6396_s26 + $0x230] sm:$0xff]  ;;  %v189_v19 = vld [vmem:[%s6396_s26 + $0x418] sm:$0xff]  ;;  %v190_v22 = vld [vmem:[%s6396_s26 + $0x420] sm:$0xff]  ;;  %4021 = vmatprep.subr.bf16.mxu0 %v4086_v32 }
  0x10   :  { %v188_v20 = vld [vmem:[%s6396_s26 + $0x410] sm:$0xff]  ;;  %v193_v24 = vld [vmem:[%s6396_s26 + $0x438] sm:$0xff]  ;;  %v67_v27 = vld [vmem:[%s6396_s26 + $0x48] sm:$0xff] }
  0x11   :  { %v192_v25 = vld [vmem:[%s6396_s26 + $0x430] sm:$0xff]  ;;  %v66_v28 = vld [vmem:[%s6396_s26 + $0x40] sm:$0xff]  ;;  %v131_v30 = vld [vmem:[%s6396_s26 + $0x248] sm:$0xff] }
  0x12   :  { %270 = vperm.xlu1 %4082, %v61_v5   ;;  %v130_v31 = vld [vmem:[%s6396_s26 + $0x240] sm:$0xff]  ;;  %v69_v33 = vld [vmem:[%s6396_s26 + $0x58] sm:$0xff]  ;;  %v68_v34 = vld [vmem:[%s6396_s26 + $0x50] sm:$0xff]  ;;  %4022 = vmatpush3.bf16.msra.mxu0 %v4086_v32 }
  0x13   :  { %265 = vperm.xlu0 %4081, %v60_v6   ;;  %v71_v35 = vld [vmem:[%s6396_s26 + $0x68] sm:$0xff]  ;;  %v70_v36 = vld [vmem:[%s6396_s26 + $0x60] sm:$0xff]  ;;  %v133_v37 = vld [vmem:[%s6396_s26 + $0x258] sm:$0xff] }
  0x14   :  { %v132_v38 = vld [vmem:[%s6396_s26 + $0x250] sm:$0xff]  ;;  %v135_v39 = vld [vmem:[%s6396_s26 + $0x268] sm:$0xff]  ;;  %v134_v40 = vld [vmem:[%s6396_s26 + $0x260] sm:$0xff] }
  0x15   :  { %v195_v41 = vld [vmem:[%s6396_s26 + $0x448] sm:$0xff]  ;;  %v194_v42 = vld [vmem:[%s6396_s26 + $0x440] sm:$0xff]  ;;  %v73_v43 = vld [vmem:[%s6396_s26 + $0x78] sm:$0xff] }
  0x16   :  { %280 = vperm.xlu1 %4082, %v63_v7   ;;  %v72_v44 = vld [vmem:[%s6396_s26 + $0x70] sm:$0xff]  ;;  %v137_v45 = vld [vmem:[%s6396_s26 + $0x278] sm:$0xff]  ;;  %v199_v49 = vld [vmem:[%s6396_s26 + $0x468] sm:$0xff] }
  0x17   :  { %275 = vperm.xlu0 %4081, %v62_v8   ;;  %v136_v46 = vld [vmem:[%s6396_s26 + $0x270] sm:$0xff]  ;;  %v197_v47 = vld [vmem:[%s6396_s26 + $0x458] sm:$0xff]  ;;  %v198_v50 = vld [vmem:[%s6396_s26 + $0x460] sm:$0xff] }
  0x18   :  { %v196_v48 = vld [vmem:[%s6396_s26 + $0x450] sm:$0xff] }
  0x1a   :  { %660 = vperm.xlu1 %4082, %v125_v9  }
  0x1b   :  { %655 = vperm.xlu0 %4081, %v124_v10  }
  0x1e   :  { %670 = vperm.xlu1 %4082, %v127_v11  }
  0x1f   :  { %665 = vperm.xlu0 %4081, %v126_v12  }
  0x22   :  { %1104 = vperm.xlu1 %4082, %v187_v13  }
  0x23   :  { %1099 = vperm.xlu0 %4081, %v186_v14  }
  0x26   :  { %290 = vperm.xlu1 %4082, %v65_v15  }
  0x27   :  { %285 = vperm.xlu0 %4081, %v64_v16  }
  0x2a   :  { %680 = vperm.xlu1 %4082, %v129_v17  }
  0x2b   :  { %675 = vperm.xlu0 %4081, %v128_v18  }
  0x2e   :  { %1114 = vperm.xlu1 %4082, %v189_v19  }
  0x2f   :  { %1109 = vperm.xlu0 %4081, %v188_v20  }
  0x32   :  { %1124 = vperm.xlu1 %4082, %v191_v21  }
  0x33   :  { %1119 = vperm.xlu0 %4081, %v190_v22  }
  0x36   :  { %1134 = vperm.xlu1 %4082, %v193_v24  }
  0x37   :  { %1129 = vperm.xlu0 %4081, %v192_v25  }
  0x3a   :  { %300 = vperm.xlu1 %4082, %v67_v27  }
  0x3b   :  { %295 = vperm.xlu0 %4081, %v66_v28  }
  0x3e   :  { %690 = vperm.xlu1 %4082, %v131_v30  }
  0x3f   :  { %685 = vperm.xlu0 %4081, %v130_v31  }
  0x42   :  { %310 = vperm.xlu1 %4082, %v69_v33  }
  0x43   :  { %305 = vperm.xlu0 %4081, %v68_v34  }
  0x46   :  { %320 = vperm.xlu1 %4082, %v71_v35  }
  0x47   :  { %315 = vperm.xlu0 %4081, %v70_v36  }
  0x4a   :  { %700 = vperm.xlu1 %4082, %v133_v37  }
  0x4b   :  { %695 = vperm.xlu0 %4081, %v132_v38  }
  0x4e   :  { %710 = vperm.xlu1 %4082, %v135_v39  }
  0x4f   :  { %705 = vperm.xlu0 %4081, %v134_v40  }
  0x52   :  { %1144 = vperm.xlu1 %4082, %v195_v41  }
  0x53   :  { %1139 = vperm.xlu0 %4081, %v194_v42  }
  0x56   :  { %330 = vperm.xlu1 %4082, %v73_v43  }
  0x57   :  { %325 = vperm.xlu0 %4081, %v72_v44  }
  0x5a   :  { %720 = vperm.xlu1 %4082, %v137_v45  }
  0x5b   :  { %715 = vperm.xlu0 %4081, %v136_v46  }
  0x5e   :  { %1154 = vperm.xlu1 %4082, %v197_v47  }
  0x5f   :  { %1149 = vperm.xlu0 %4081, %v196_v48  }
  0x60   :  { %22 = vsyncpa [#allocation3], 0  ;;  %v201_v51 = vld [vmem:[%s6396_s26 + $0x478] sm:$0xff]  ;;  %v200_v52 = vld [vmem:[%s6396_s26 + $0x470] sm:$0xff]  ;;  %s6397_s22 = sld [smem:[#allocation6_spill]]  ;;  %v1687_v30 = vlaneseq  ;;  %vm1913_vm0 = vcmask 523264  }
  0x61   :  { %v75_v53 = vld [vmem:[%s6396_s26 + $0x88] sm:$0xff]  ;;  %v74_v54 = vld [vmem:[%s6396_s26 + $0x80] sm:$0xff]  ;;  %v77_v57 = vld [vmem:[%s6396_s26 + $0x98] sm:$0xff]  ;;  %vm3619_vm1 = vcmask 392192   ;;  %vm4272_vm2 = vmmov 0   ;;  %vm3709_vm3 = vcmask 130048  }
  0x62   :  { %1164 = vperm.xlu1 %4082, %v199_v49   ;;  %v139_v55 = vld [vmem:[%s6396_s26 + $0x288] sm:$0xff]  ;;  %v138_v56 = vld [vmem:[%s6396_s26 + $0x280] sm:$0xff]  ;;  %v76_v58 = vld [vmem:[%s6396_s26 + $0x90] sm:$0xff]  ;;  %v4639_v45 = vshrl.u32 %v1687_v30, 7  ;;  %s4273_s4 = smov [#allocation2]   ;;  %vm3783_vm4 = vcmask 41984  }
  0x63   :  { %1159 = vperm.xlu0 %4081, %v198_v50   ;;  %v79_v59 = vld [vmem:[%s6396_s26 + $0xa8] sm:$0xff]  ;;  %v78_v60 = vld [vmem:[%s6396_s26 + $0xa0] sm:$0xff]  ;;  %v141_v61 = vld [vmem:[%s6396_s26 + $0x298] sm:$0xff]  ;;  %s3791_s25 = sshll.u32 %s4273_s4, 4  ;;  %s3792_s25 = int_to_ptr.vmem [resolvable:$true] %s3791_s25 }
  0x64   :  { %v140_v62 = vld [vmem:[%s6396_s26 + $0x290] sm:$0xff]  ;;  %v143_v63 = vld [vmem:[%s6396_s26 + $0x2a8] sm:$0xff]  ;;  %v142_v0 = vld [vmem:[%s6396_s26 + $0x2a0] sm:$0xff]  ;;  %s4248_s27 = scalar_lea.vmem %s3792_s25, 32  ;;  %p4253_p1 = scmp.lt.s32.totalorder %s3792_s25, %s3792_s25 }
  0x65   :  { %v203_v1 = vld [vmem:[%s6396_s26 + $0x488] sm:$0xff]  ;;  %v202_v3 = vld [vmem:[%s6396_s26 + $0x480] sm:$0xff]  ;;  %v81_v4 = vld [vmem:[%s6396_s26 + $0xb8] sm:$0xff]  ;;  %p4249_p0 = scmp.ne.s32.totalorder %s3792_s25, %s4248_s27  ;;  %p4254_p2 = scmp.lt.s32.totalorder %s4248_s27, %s4248_s27 }
  0x66   :  { %1174 = vperm.xlu1 %4082, %v201_v51   ;;  %v80_v5 = vld [vmem:[%s6396_s26 + $0xb0] sm:$0xff]  ;;  %v145_v8 = vld [vmem:[%s6396_s26 + $0x2b8] sm:$0xff]  ;;  %v207_v16 = vld [vmem:[%s6396_s26 + $0x4a8] sm:$0xff] }
  0x67   :  { %1169 = vperm.xlu0 %4081, %v200_v52   ;;  %v144_v9 = vld [vmem:[%s6396_s26 + $0x2b0] sm:$0xff]  ;;  %v205_v12 = vld [vmem:[%s6396_s26 + $0x498] sm:$0xff]  ;;  %v206_v17 = vld [vmem:[%s6396_s26 + $0x4a0] sm:$0xff]  ;;  %p4255_p3 = por %p4254_p2, %p4253_p1 }
  0x68   :  { %v204_v13 = vld [vmem:[%s6396_s26 + $0x490] sm:$0xff]  ;;  %v209_v20 = vld [vmem:[%s6396_s26 + $0x4b8] sm:$0xff]  ;;  %v83_v24 = vld [vmem:[%s6396_s26 + $0xc8] sm:$0xff] }
  0x69   :  { %v208_v21 = vld [vmem:[%s6396_s26 + $0x4b0] sm:$0xff]  ;;  %v82_v25 = vld [vmem:[%s6396_s26 + $0xc0] sm:$0xff]  ;;  %v147_v36 = vld [vmem:[%s6396_s26 + $0x2c8] sm:$0xff]  ;;  %p4256_p4 = pnand %p4255_p3, %p4249_p0 }
  0x6a   :  { %340 = vperm.xlu1 %4082, %v75_v53   ;;  %v4612_v26 = vld [vmem:[%s6397_s22 + $0x1] ss:$0 sm:$0xff]  ;;  %v4617_v27 = vld [vmem:[%s6397_s22] ss:$0 sm:$0xff]  ;;  %v4626_v35 = vld [vmem:[%s6397_s22 + $0x2] ss:$0 sm:$0xff] }
  0x6b   :  { %335 = vperm.xlu0 %4081, %v74_v54   ;;  %v146_v37 = vld [vmem:[%s6396_s26 + $0x2c0] sm:$0xff]  ;;  %v85_v44 = vld [vmem:[%s6396_s26 + $0xd8] sm:$0xff]  ;;  %v84_v46 = vld [vmem:[%s6396_s26 + $0xd0] sm:$0xff]  ;;  %v4653_v53 = vsub.s32 0, %v4639_v45  ;;  %v4656_v54 = vsub.s32 1, %v4639_v45 }
  0x6c   :  { %v4647_v51 = vld [vmem:[%s6376_s2] ss:$0 sm:$0xff]  ;;  %v87_v52 = vld [vmem:[%s6396_s26 + $0xe8] sm:$0xff] }
  0x6e   :  { %730 = vperm.xlu1 %4082, %v139_v55   ;;  %v86_v55 = vld [vmem:[%s6396_s26 + $0xe0] sm:$0xff] }
  0x6f   :  { %725 = vperm.xlu0 %4081, %v138_v56   ;;  %v1686_v56 = vld [vmem:[%s6377_s3] sm:$0x7] }
  0x72   :  { %350 = vperm.xlu1 %4082, %v77_v57  }
  0x73   :  { %345 = vperm.xlu0 %4081, %v76_v58  }
  0x76   :  { %360 = vperm.xlu1 %4082, %v79_v59  }
  0x77   :  { %355 = vperm.xlu0 %4081, %v78_v60  }
  0x7a   :  { %740 = vperm.xlu1 %4082, %v141_v61  }
  0x7b   :  { %735 = vperm.xlu0 %4081, %v140_v62  }
  0x7e   :  { %750 = vperm.xlu1 %4082, %v143_v63   ;;  %v4669_v63 = vrot.slane %v1686_v56, %v4653_v53 }
  0x7f   :  { %745 = vperm.xlu0 %4081, %v142_v0   ;;  %v149_v0 = vld [vmem:[%s6396_s26 + $0x2d8] sm:$0xff] }
  0x82   :  { %1184 = vperm.xlu1 %4082, %v203_v1   ;;  %v4675_v1 = vrot.slane %v1686_v56, %v4656_v54 }
  0x83   :  { %1179 = vperm.xlu0 %4081, %v202_v3  }
  0x85   :  { %v646_v6 = vpop.permute.xlu1 %645 }
  0x86   :  { %v256_v7 = vpop.permute.xlu0 %255  ;;  %370 = vperm.xlu1 %4082, %v81_v4   ;;  %v969_v31 = vmul.f32 %v4612_v26, %v646_v6 }
  0x87   :  { %365 = vperm.xlu0 %4081, %v80_v5   ;;  %v579_v32 = vmul.f32 %v4617_v27, %v256_v7  ;;  %v148_v7 = vld [vmem:[%s6396_s26 + $0x2d0] sm:$0xff] }
  0x89   :  { %v651_v10 = vpop.permute.xlu1 %650  ;;  %v1033_v42 = vadd.f32 %v969_v31, %v579_v32 }
  0x8a   :  { %v261_v11 = vpop.permute.xlu0 %260  ;;  %760 = vperm.xlu1 %4082, %v145_v8   ;;  %v970_v33 = vmul.f32 %v4612_v26, %v651_v10 }
  0x8b   :  { %755 = vperm.xlu0 %4081, %v144_v9   ;;  %v580_v34 = vmul.f32 %v4617_v27, %v261_v11 }
  0x8d   :  { %v4583_v14 = vpop.permute.xlu1 %270  ;;  %v1034_v43 = vadd.f32 %v970_v33, %v580_v34 }
  0x8e   :  { %v4585_v15 = vpop.permute.xlu0 %265  ;;  %1194 = vperm.xlu1 %4082, %v205_v12   ;;  %v582_v3 = vmul.f32 %v4617_v27, %v4583_v14 }
  0x8f   :  { %1189 = vperm.xlu0 %4081, %v204_v13   ;;  %v581_v4 = vmul.f32 %v4617_v27, %v4585_v15 }
  0x91   :  { %v4593_v18 = vpop.permute.xlu1 %280 }
  0x92   :  { %v4595_v19 = vpop.permute.xlu0 %275  ;;  %1204 = vperm.xlu1 %4082, %v207_v16   ;;  %v584_v8 = vmul.f32 %v4617_v27, %v4593_v18  ;;  %v4696_v18 = vsub.s32 2, %v4639_v45 }
  0x93   :  { %1199 = vperm.xlu0 %4081, %v206_v17   ;;  %v583_v9 = vmul.f32 %v4617_v27, %v4595_v19  ;;  %v1691_v19 = vmul.f32 0.0, %v4669_v63 }
  0x95   :  { %v661_v22 = vpop.permute.xlu1 %660 }
  0x96   :  { %v656_v23 = vpop.permute.xlu0 %655  ;;  %1214 = vperm.xlu1 %4082, %v209_v20   ;;  %v972_v61 = vmul.f32 %v4612_v26, %v661_v22  ;;  %v151_v20 = vld [vmem:[%s6396_s26 + $0x2e8] sm:$0xff] }
  0x97   :  { %1209 = vperm.xlu0 %4081, %v208_v21   ;;  %v971_v62 = vmul.f32 %v4612_v26, %v656_v23 }
  0x98   :  { %v1036_v14 = vadd.f32 %v972_v61, %v582_v3 }
  0x99   :  { %v671_v28 = vpop.permute.xlu1 %670  ;;  %v1035_v15 = vadd.f32 %v971_v62, %v581_v4  ;;  %v89_v62 = vld [vmem:[%s6396_s26 + $0xf8] sm:$0xff] }
  0x9a   :  { %v666_v29 = vpop.permute.xlu0 %665  ;;  %380 = vperm.xlu1 %4082, %v83_v24   ;;  %v974_v5 = vmul.f32 %v4612_v26, %v671_v28 }
  0x9b   :  { %375 = vperm.xlu0 %4081, %v82_v25   ;;  %v973_v6 = vmul.f32 %v4612_v26, %v666_v29  ;;  %v150_v25 = vld [vmem:[%s6396_s26 + $0x2e0] sm:$0xff] }
  0x9c   :  { %v1038_v21 = vadd.f32 %v974_v5, %v584_v8 }
  0x9d   :  { %v1105_v38 = vpop.permute.xlu1 %1104  ;;  %v1037_v22 = vadd.f32 %v973_v6, %v583_v9  ;;  %v88_v6 = vld [vmem:[%s6396_s26 + $0xf0] sm:$0xff] }
  0x9e   :  { %v1100_v39 = vpop.permute.xlu0 %1099  ;;  %v1424_v40 = vmul.f32 %v4626_v35, %v1105_v38  ;;  %770 = vperm.xlu1 %4082, %v147_v36  }
  0x9f   :  { %v1423_v41 = vmul.f32 %v4626_v35, %v1100_v39  ;;  %765 = vperm.xlu0 %4081, %v146_v37  }
  0xa0   :  { %v1488_v47 = vadd.f32 %v1424_v40, %v1034_v43 }
  0xa1   :  { %v1487_v48 = vadd.f32 %v1423_v41, %v1033_v42  ;;  %v291_v49 = vpop.permute.xlu1 %290  ;;  %v4713_v41 = vrot.slane %v1686_v56, %v4696_v18  ;;  %v211_v42 = vld [vmem:[%s6396_s26 + $0x4c8] sm:$0xff] }
  0xa2   :  { %v286_v50 = vpop.permute.xlu0 %285  ;;  %390 = vperm.xlu1 %4082, %v85_v44   ;;  %v1559_v57 = vadd.f32 %v4647_v51, %v1488_v47  ;;  %v586_v39 = vmul.f32 %v4617_v27, %v291_v49 }
  0xa3   :  { %385 = vperm.xlu0 %4081, %v84_v46   ;;  %v1558_v58 = vadd.f32 %v4647_v51, %v1487_v48  ;;  %v585_v40 = vmul.f32 %v4617_v27, %v286_v50  ;;  %v210_v48 = vld [vmem:[%s6396_s26 + $0x4c0] sm:$0xff] }
  0xa4   :  { %v1623_v10 = vmax.f32 %v1559_v57, 0.0 }
  0xa5   :  { %v681_v59 = vpop.permute.xlu1 %680  ;;  %v1622_v11 = vmax.f32 %v1558_v58, 0.0 }
  0xa6   :  { %v676_v60 = vpop.permute.xlu0 %675  ;;  %400 = vperm.xlu1 %4082, %v87_v52   ;;  %v976_v28 = vmul.f32 %v4612_v26, %v681_v59  ;;  %v1727_v33 = vmul.f32 %v4675_v1, %v1623_v10 }
  0xa7   :  { %395 = vperm.xlu0 %4081, %v86_v55   ;;  %v975_v29 = vmul.f32 %v4612_v26, %v676_v60  ;;  %v1726_v32 = vmul.f32 %v4675_v1, %v1622_v11 }
  0xa8   :  { %v1040_v52 = vadd.f32 %v976_v28, %v586_v39  ;;  %v1759_v59 = vadd.f32 %v1727_v33, %v1691_v19  ;;  %v213_v33 = vld [vmem:[%s6396_s26 + $0x4d8] sm:$0xff] }
  0xa9   :  { %v1115_v12 = vpop.permute.xlu1 %1114  ;;  %v1039_v49 = vadd.f32 %v975_v29, %v585_v40  ;;  %v1758_v58 = vadd.f32 %v1726_v32, %v1691_v19  ;;  %v152_v19 = vld [vmem:[%s6396_s26 + $0x2f0] sm:$0xff] }
  0xaa   :  { %v1110_v13 = vpop.permute.xlu0 %1109  ;;  %v1426_v16 = vmul.f32 %v4626_v35, %v1115_v12  ;;  %780 = vperm.xlu1 %4082, %v149_v0  }
  0xab   :  { %v1425_v17 = vmul.f32 %v4626_v35, %v1110_v13  ;;  %775 = vperm.xlu0 %4081, %v148_v7  }
  0xac   :  { %v1490_v23 = vadd.f32 %v1426_v16, %v1036_v14 }
  0xad   :  { %v1489_v24 = vadd.f32 %v1425_v17, %v1035_v15  ;;  %v1125_v30 = vpop.permute.xlu1 %1124 }
  0xae   :  { %v1120_v31 = vpop.permute.xlu0 %1119  ;;  %v1561_v34 = vadd.f32 %v4647_v51, %v1490_v23  ;;  %v1428_v37 = vmul.f32 %v4626_v35, %v1125_v30  ;;  %790 = vperm.xlu1 %4082, %v151_v20   ;;  %v153_v20 = vld [vmem:[%s6396_s26 + $0x2f8] sm:$0xff] }
  0xaf   :  { %v1560_v36 = vadd.f32 %v4647_v51, %v1489_v24  ;;  %v1427_v38 = vmul.f32 %v4626_v35, %v1120_v31  ;;  %785 = vperm.xlu0 %4081, %v150_v25  }
  0xb0   :  { %v1625_v43 = vmax.f32 %v1561_v34, 0.0  ;;  %v1492_v46 = vadd.f32 %v1428_v37, %v1038_v21  ;;  %v212_v34 = vld [vmem:[%s6396_s26 + $0x4d0] sm:$0xff] }
  0xb1   :  { %v1624_v44 = vmax.f32 %v1560_v36, 0.0  ;;  %v1491_v47 = vadd.f32 %v1427_v38, %v1037_v22  ;;  %v1135_v55 = vpop.permute.xlu1 %1134 }
  0xb2   :  { %v1130_v50 = vpop.permute.xlu0 %1129  ;;  %v1563_v57 = vadd.f32 %v4647_v51, %v1492_v46  ;;  %1224 = vperm.xlu1 %4082, %v211_v42   ;;  %v1430_v60 = vmul.f32 %v4626_v35, %v1135_v55  ;;  %v1795_v3 = vmul.f32 %v4713_v41, %v1625_v43  ;;  %v1693_v21 = vmul.f32 %v4669_v63, %v1625_v43  ;;  %v215_v42 = vld [vmem:[%s6396_s26 + $0x4e8] sm:$0xff]  ;;  %v214_v43 = vld [vmem:[%s6396_s26 + $0x4e0] sm:$0xff] }
  0xb3   :  { %v1562_v56 = vadd.f32 %v4647_v51, %v1491_v47  ;;  %v1429_v61 = vmul.f32 %v4626_v35, %v1130_v50  ;;  %1219 = vperm.xlu0 %4081, %v210_v48   ;;  %v1794_v0 = vmul.f32 %v4713_v41, %v1624_v44  ;;  %v1692_v22 = vmul.f32 %v4669_v63, %v1624_v44  ;;  %v217_v47 = vld [vmem:[%s6396_s26 + $0x4f8] sm:$0xff]  ;;  %v216_v48 = vld [vmem:[%s6396_s26 + $0x4f0] sm:$0xff]  ;;  %v91_v55 = vld [vmem:[%s6396_s26 + $0x108] sm:$0xff] }
  0xb4   :  { %v1627_v4 = vmax.f32 %v1563_v57, 0.0  ;;  %v1494_v7 = vadd.f32 %v1430_v60, %v1040_v52  ;;  %v1827_v12 = vadd.f32 %v1795_v3, %v1759_v59  ;;  %v90_v50 = vld [vmem:[%s6396_s26 + $0x100] sm:$0xff]  ;;  %v155_v60 = vld [vmem:[%s6396_s26 + $0x308] sm:$0xff] }
  0xb5   :  { %v1626_v5 = vmax.f32 %v1562_v56, 0.0  ;;  %v1493_v8 = vadd.f32 %v1429_v61, %v1039_v49  ;;  %v301_v9 = vpop.permute.xlu1 %300  ;;  %v1826_v11 = vadd.f32 %v1794_v0, %v1758_v58  ;;  %v154_v61 = vld [vmem:[%s6396_s26 + $0x300] sm:$0xff] }
  0xb6   :  { %v296_v10 = vpop.permute.xlu0 %295  ;;  %v1729_v13 = vmul.f32 %v4675_v1, %v1627_v4  ;;  %410 = vperm.xlu1 %4082, %v89_v62   ;;  %v4736_v15 = vadd.f32 %v4647_v51, %v1494_v7  ;;  %v588_v62 = vmul.f32 %v4617_v27, %v301_v9  ;;  %v92_v9 = vld [vmem:[%s6396_s26 + $0x110] sm:$0xff] }
  0xb7   :  { %v1728_v14 = vmul.f32 %v4675_v1, %v1626_v5  ;;  %v4739_v16 = vadd.f32 %v4647_v51, %v1493_v8  ;;  %405 = vperm.xlu0 %4081, %v88_v6   ;;  %v1858_v17 = vpack.c.bf16 %v1827_v12, %v1826_v11  ;;  %v587_v0 = vmul.f32 %v4617_v27, %v296_v10  ;;  %v93_v11 = vld [vmem:[%s6396_s26 + $0x118] sm:$0xff] }
  0xb8   :  { %v1629_v23 = vmax.f32 %v4736_v15, 0.0  ;;  %v1761_v29 = vadd.f32 %v1729_v13, %v1693_v21  ;;  %v218_v15 = vld [vmem:[%s6396_s26 + $0x500] sm:$0xff] }
  0xb9   :  { %v1628_v24 = vmax.f32 %v4739_v16, 0.0  ;;  %4023 = vmatprep.mubr.msk.bf16.mxu0 %vm1913_vm0, %v1858_v17  ;;  %v691_v25 = vpop.permute.xlu1 %690  ;;  %v1760_v30 = vadd.f32 %v1728_v14, %v1692_v22  ;;  %v95_v17 = vld [vmem:[%s6396_s26 + $0x128] sm:$0xff] }
  0xba   :  { %v686_v28 = vpop.permute.xlu0 %685  ;;  %800 = vperm.xlu1 %4082, %v153_v20   ;;  %v1797_v31 = vmul.f32 %v4713_v41, %v1629_v23  ;;  %v978_v58 = vmul.f32 %v4612_v26, %v691_v25  ;;  %v94_v20 = vld [vmem:[%s6396_s26 + $0x120] sm:$0xff] }
  0xbb   :  { %v1796_v32 = vmul.f32 %v4713_v41, %v1628_v24  ;;  %795 = vperm.xlu0 %4081, %v152_v19   ;;  %v977_v59 = vmul.f32 %v4612_v26, %v686_v28 }
  0xbc   :  { %v1829_v39 = vadd.f32 %v1797_v31, %v1761_v29  ;;  %v1042_v7 = vadd.f32 %v978_v58, %v588_v62 }
  0xbd   :  { %v311_v36 = vpop.permute.xlu1 %310  ;;  %v1828_v38 = vadd.f32 %v1796_v32, %v1760_v30  ;;  %v1041_v8 = vadd.f32 %v977_v59, %v587_v0  ;;  %v157_v30 = vld [vmem:[%s6396_s26 + $0x318] sm:$0xff] }
  0xbe   :  { %v306_v37 = vpop.permute.xlu0 %305  ;;  %1234 = vperm.xlu1 %4082, %v213_v33   ;;  %v590_v31 = vmul.f32 %v4617_v27, %v311_v36 }
  0xbf   :  { %1229 = vperm.xlu0 %4081, %v212_v34   ;;  %v1859_v40 = vpack.c.bf16 %v1829_v39, %v1828_v38  ;;  %v589_v32 = vmul.f32 %v4617_v27, %v306_v37  ;;  %v156_v38 = vld [vmem:[%s6396_s26 + $0x310] sm:$0xff] }
  0xc1   :  { %4024 = vmatmul.mubr.msk.bf16.vlgmr.msra.gmra.mxu0 %vm1913_vm0, %v1859_v40  ;;  %v321_v44 = vpop.permute.xlu1 %320 }
  0xc2   :  { %v316_v46 = vpop.permute.xlu0 %315  ;;  %1244 = vperm.xlu1 %4082, %v215_v42   ;;  %v592_v39 = vmul.f32 %v4617_v27, %v321_v44 }
  0xc3   :  { %1239 = vperm.xlu0 %4081, %v214_v43   ;;  %v591_v40 = vmul.f32 %v4617_v27, %v316_v46 }
  0xc5   :  { %v701_v52 = vpop.permute.xlu1 %700 }
  0xc6   :  { %v696_v49 = vpop.permute.xlu0 %695  ;;  %1254 = vperm.xlu1 %4082, %v217_v47   ;;  %v980_v28 = vmul.f32 %v4612_v26, %v701_v52 }
  0xc7   :  { %1249 = vperm.xlu0 %4081, %v216_v48   ;;  %v979_v29 = vmul.f32 %v4612_v26, %v696_v49 }
  0xc8   :  { %v1044_v52 = vadd.f32 %v980_v28, %v590_v31 }
  0xc9   :  { %v711_v57 = vpop.permute.xlu1 %710  ;;  %v1043_v36 = vadd.f32 %v979_v29, %v589_v32  ;;  %v97_v32 = vld [vmem:[%s6396_s26 + $0x138] sm:$0xff] }
  0xca   :  { %v706_v56 = vpop.permute.xlu0 %705  ;;  %420 = vperm.xlu1 %4082, %v91_v55   ;;  %v982_v33 = vmul.f32 %v4612_v26, %v711_v57  ;;  %v159_v55 = vld [vmem:[%s6396_s26 + $0x328] sm:$0xff] }
  0xcb   :  { %415 = vperm.xlu0 %4081, %v90_v50   ;;  %v981_v34 = vmul.f32 %v4612_v26, %v706_v56  ;;  %v158_v56 = vld [vmem:[%s6396_s26 + $0x320] sm:$0xff] }
  0xcc   :  { %v1046_v50 = vadd.f32 %v982_v33, %v592_v39  ;;  %v96_v33 = vld [vmem:[%s6396_s26 + $0x130] sm:$0xff] }
  0xcd   :  { %v1145_v3 = vpop.permute.xlu1 %1144  ;;  %v1045_v44 = vadd.f32 %v981_v34, %v591_v40 }
  0xce   :  { %v1140_v4 = vpop.permute.xlu0 %1139  ;;  %v1432_v5 = vmul.f32 %v4626_v35, %v1145_v3  ;;  %810 = vperm.xlu1 %4082, %v155_v60  }
  0xcf   :  { %v1431_v6 = vmul.f32 %v4626_v35, %v1140_v4  ;;  %805 = vperm.xlu0 %4081, %v154_v61  }
  0xd0   :  { %v1496_v12 = vadd.f32 %v1432_v5, %v1042_v7  ;;  %v1695_v7 = vmul.f32 %v4669_v63, %v1629_v23 }
  0xd1   :  { %v1495_v10 = vadd.f32 %v1431_v6, %v1041_v8  ;;  %v331_v13 = vpop.permute.xlu1 %330  ;;  %v1694_v8 = vmul.f32 %v4669_v63, %v1628_v24 }
  0xd2   :  { %v326_v14 = vpop.permute.xlu0 %325  ;;  %430 = vperm.xlu1 %4082, %v93_v11   ;;  %v1567_v19 = vadd.f32 %v4647_v51, %v1496_v12  ;;  %v594_v11 = vmul.f32 %v4617_v27, %v331_v13  ;;  %v219_v12 = vld [vmem:[%s6396_s26 + $0x508] sm:$0xff] }
  0xd3   :  { %425 = vperm.xlu0 %4081, %v92_v9   ;;  %v1566_v21 = vadd.f32 %v4647_v51, %v1495_v10  ;;  %v593_v9 = vmul.f32 %v4617_v27, %v326_v14 }
  0xd4   :  { %v1631_v42 = vmax.f32 %v1567_v19, 0.0 }
  0xd5   :  { %v721_v22 = vpop.permute.xlu1 %720  ;;  %v1630_v43 = vmax.f32 %v1566_v21, 0.0 }
  0xd6   :  { %v716_v25 = vpop.permute.xlu0 %715  ;;  %440 = vperm.xlu1 %4082, %v95_v17   ;;  %v1731_v58 = vmul.f32 %v4675_v1, %v1631_v42  ;;  %v984_v60 = vmul.f32 %v4612_v26, %v721_v22 }
  0xd7   :  { %435 = vperm.xlu0 %4081, %v94_v20   ;;  %v1730_v59 = vmul.f32 %v4675_v1, %v1630_v43  ;;  %v983_v61 = vmul.f32 %v4612_v26, %v716_v25 }
  0xd8   :  { %v1763_v16 = vadd.f32 %v1731_v58, %v1695_v7  ;;  %v1048_v13 = vadd.f32 %v984_v60, %v594_v11 }
  0xd9   :  { %v1155_v47 = vpop.permute.xlu1 %1154  ;;  %v1762_v23 = vadd.f32 %v1730_v59, %v1694_v8  ;;  %v1047_v22 = vadd.f32 %v983_v61, %v593_v9 }
  0xda   :  { %v1150_v48 = vpop.permute.xlu0 %1149  ;;  %v1434_v37 = vmul.f32 %v4626_v35, %v1155_v47  ;;  %820 = vperm.xlu1 %4082, %v157_v30  }
  0xdb   :  { %v1433_v49 = vmul.f32 %v4626_v35, %v1150_v48  ;;  %815 = vperm.xlu0 %4081, %v156_v38  }
  0xdc   :  { %v1498_v57 = vadd.f32 %v1434_v37, %v1044_v52 }
  0xdd   :  { %v1497_v46 = vadd.f32 %v1433_v49, %v1043_v36  ;;  %v1165_v62 = vpop.permute.xlu1 %1164 }
  0xde   :  { %v1160_v0 = vpop.permute.xlu0 %1159  ;;  %v1569_v3 = vadd.f32 %v4647_v51, %v1498_v57  ;;  %v1436_v5 = vmul.f32 %v4626_v35, %v1165_v62  ;;  %830 = vperm.xlu1 %4082, %v159_v55  }
  0xdf   :  { %v1568_v4 = vadd.f32 %v4647_v51, %v1497_v46  ;;  %v1435_v6 = vmul.f32 %v4626_v35, %v1160_v0  ;;  %825 = vperm.xlu0 %4081, %v158_v56  }
  0xe0   :  { %v1633_v10 = vmax.f32 %v1569_v3, 0.0  ;;  %v1500_v20 = vadd.f32 %v1436_v5, %v1046_v50  ;;  %v161_v50 = vld [vmem:[%s6396_s26 + $0x338] sm:$0xff]  ;;  %v220_v5 = vld [vmem:[%s6396_s26 + $0x510] sm:$0xff] }
  0xe1   :  { %v1632_v17 = vmax.f32 %v1568_v4, 0.0  ;;  %v1499_v19 = vadd.f32 %v1435_v6, %v1045_v44  ;;  %v1175_v24 = vpop.permute.xlu1 %1174  ;;  %v160_v44 = vld [vmem:[%s6396_s26 + $0x330] sm:$0xff]  ;;  %v221_v4 = vld [vmem:[%s6396_s26 + $0x518] sm:$0xff] }
  0xe2   :  { %v1170_v21 = vpop.permute.xlu0 %1169  ;;  %v1799_v14 = vmul.f32 %v4713_v41, %v1633_v10  ;;  %1264 = vperm.xlu1 %4082, %v219_v12   ;;  %v1571_v28 = vadd.f32 %v4647_v51, %v1500_v20  ;;  %v1438_v30 = vmul.f32 %v4626_v35, %v1175_v24  ;;  %v1697_v57 = vmul.f32 %v4669_v63, %v1633_v10  ;;  %v223_v12 = vld [vmem:[%s6396_s26 + $0x528] sm:$0xff]  ;;  %v222_v10 = vld [vmem:[%s6396_s26 + $0x520] sm:$0xff] }
  0xe3   :  { %v1798_v25 = vmul.f32 %v4713_v41, %v1632_v17  ;;  %v1570_v29 = vadd.f32 %v4647_v51, %v1499_v19  ;;  %v1437_v31 = vmul.f32 %v4626_v35, %v1170_v21  ;;  %1259 = vperm.xlu0 %4081, %v218_v15   ;;  %v1696_v46 = vmul.f32 %v4669_v63, %v1632_v17  ;;  %v4087_v19 = vld [vmem:[%s6381_s7 + $0x74] ss:$8 sps:$4 sm:$0xff]  }
  0xe4   :  { %v1831_v38 = vadd.f32 %v1799_v14, %v1763_v16  ;;  %v1635_v39 = vmax.f32 %v1571_v28, 0.0  ;;  %v1502_v42 = vadd.f32 %v1438_v30, %v1048_v13  ;;  %v225_v15 = vld [vmem:[%s6396_s26 + $0x538] sm:$0xff]  ;;  %2363 = vmatprep.subr.bf16.mxu1 %v4087_v19  ;;  %v4090_v13 = vld [vmem:[%s6381_s7 + $0x64] ss:$8 sps:$4 sm:$0xff]   ;;  %v4092_v14 = vld [vmem:[%s6381_s7 + $0x60] ss:$8 sps:$4 sm:$0xff]  }
  0xe5   :  { %v1830_v34 = vadd.f32 %v1798_v25, %v1762_v23  ;;  %v1634_v40 = vmax.f32 %v1570_v29, 0.0  ;;  %v1501_v43 = vadd.f32 %v1437_v31, %v1047_v22  ;;  %v4865_v47 = vpop.permute.xlu1 %340  ;;  %v4089_v16 = vld [vmem:[%s6381_s7 + $0x70] ss:$8 sps:$4 sm:$0xff]   ;;  %v99_v22 = vld [vmem:[%s6396_s26 + $0x148] sm:$0xff]  ;;  %v98_v25 = vld [vmem:[%s6396_s26 + $0x140] sm:$0xff] }
  0xe6   :  { %v4867_v48 = vpop.permute.xlu0 %335  ;;  %450 = vperm.xlu1 %4082, %v97_v32   ;;  %v1733_v36 = vmul.f32 %v4675_v1, %v1635_v39  ;;  %v4872_v49 = vadd.f32 %v4647_v51, %v1502_v42  ;;  %v224_v23 = vld [vmem:[%s6396_s26 + $0x530] sm:$0xff]  ;;  %2364 = vmatpush1.bf16.msra.mxu1 %v4089_v16  ;;  %v596_v39 = vmul.f32 %v4617_v27, %v4865_v47  ;;  %v101_v47 = vld [vmem:[%s6396_s26 + $0x158] sm:$0xff]  ;;  %v4102_v19 = vld [vmem:[%s6381_s7 + $0x24] ss:$8 sps:$4 sm:$0xff]  }
  0xe7   :  { %v1860_v52 = vpack.c.bf16 %v1831_v38, %v1830_v34  ;;  %v1732_v37 = vmul.f32 %v4675_v1, %v1634_v40  ;;  %v4875_v55 = vadd.f32 %v4647_v51, %v1501_v43  ;;  %445 = vperm.xlu0 %4081, %v96_v33   ;;  %2365 = vmatprep.subr.bf16.mxu1 %v4090_v13  ;;  %v4093_v30 = vld [vmem:[%s6381_s7 + $0x54] ss:$8 sps:$4 sm:$0xff]   ;;  %v163_v33 = vld [vmem:[%s6396_s26 + $0x348] sm:$0xff]  ;;  %v4095_v34 = vld [vmem:[%s6381_s7 + $0x50] ss:$8 sps:$4 sm:$0xff]  }
  0xe8   :  { %v1637_v56 = vmax.f32 %v4872_v49, 0.0  ;;  %v1765_v61 = vadd.f32 %v1733_v36, %v1697_v57  ;;  %v162_v38 = vld [vmem:[%s6396_s26 + $0x340] sm:$0xff]  ;;  %v595_v40 = vmul.f32 %v4617_v27, %v4867_v48  ;;  %v100_v57 = vld [vmem:[%s6396_s26 + $0x150] sm:$0xff] }
  0xe9   :  { %4027 = vmatprep.mubr.msk.bf16.mxu0 %vm1913_vm0, %v1860_v52  ;;  %v1636_v58 = vmax.f32 %v4875_v55, 0.0  ;;  %v731_v59 = vpop.permute.xlu1 %730  ;;  %v1764_v62 = vadd.f32 %v1732_v37, %v1696_v46  ;;  %v4096_v37 = vld [vmem:[%s6381_s7 + $0x44] ss:$8 sps:$4 sm:$0xff]   ;;  %v4098_v48 = vld [vmem:[%s6381_s7 + $0x40] ss:$8 sps:$4 sm:$0xff]  }
  0xea   :  { %v726_v60 = vpop.permute.xlu0 %725  ;;  %840 = vperm.xlu1 %4082, %v161_v50   ;;  %v1801_v0 = vmul.f32 %v4713_v41, %v1637_v56  ;;  %2366 = vmatpush1.bf16.msra.mxu1 %v4092_v14  ;;  %v986_v31 = vmul.f32 %v4612_v26, %v731_v59  ;;  %v4104_v16 = vld [vmem:[%s6381_s7 + $0x20] ss:$8 sps:$4 sm:$0xff]  }
  0xeb   :  { %v1800_v3 = vmul.f32 %v4713_v41, %v1636_v58  ;;  %835 = vperm.xlu0 %4081, %v160_v44   ;;  %v985_v32 = vmul.f32 %v4612_v26, %v726_v60  ;;  %2367 = vmatprep.subr.bf16.mxu1 %v4093_v30  ;;  %v4110_v49 = vld [vmem:[%s6381_s7] ss:$8 sps:$4 sm:$0xff]  }
  0xec   :  { %v1833_v11 = vadd.f32 %v1801_v0, %v1765_v61  ;;  %v1050_v50 = vadd.f32 %v986_v31, %v596_v39  ;;  %v103_v0 = vld [vmem:[%s6396_s26 + $0x168] sm:$0xff] }
  0xed   :  { %v4900_v6 = vpop.permute.xlu1 %350  ;;  %v1832_v8 = vadd.f32 %v1800_v3, %v1764_v62  ;;  %v1049_v44 = vadd.f32 %v985_v32, %v595_v40  ;;  %v4099_v62 = vld [vmem:[%s6381_s7 + $0x34] ss:$8 sps:$4 sm:$0xff]   ;;  %v4101_v3 = vld [vmem:[%s6381_s7 + $0x30] ss:$8 sps:$4 sm:$0xff]  }
  0xee   :  { %v4902_v7 = vpop.permute.xlu0 %345  ;;  %1274 = vperm.xlu1 %4082, %v221_v4   ;;  %2368 = vmatpush1.bf16.msra.mxu1 %v4095_v34  ;;  %v102_v4 = vld [vmem:[%s6396_s26 + $0x160] sm:$0xff]  ;;  %v4105_v34 = vld [vmem:[%s6381_s7 + $0x14] ss:$8 sps:$4 sm:$0xff]  }
  0xef   :  { %1269 = vperm.xlu0 %4081, %v220_v5   ;;  %v1861_v9 = vpack.c.bf16 %v1833_v11, %v1832_v8  ;;  %2369 = vmatprep.subr.bf16.mxu1 %v4096_v37 }
  0xf1   :  { %4028 = vmatmul.mubr.msk.bf16.gmra.mxu0 %vm1913_vm0, %v1861_v9  ;;  %v4911_v17 = vpop.permute.xlu1 %360 }
  0xf2   :  { %v4913_v20 = vpop.permute.xlu0 %355  ;;  %1284 = vperm.xlu1 %4082, %v223_v12   ;;  %2370 = vmatpush1.bf16.msra.mxu1 %v4098_v48  ;;  %v600_v14 = vmul.f32 %v4617_v27, %v4911_v17  ;;  %v167_v17 = vld [vmem:[%s6396_s26 + $0x368] sm:$0xff] }
  0xf3   :  { %1279 = vperm.xlu0 %4081, %v222_v10   ;;  %2371 = vmatprep.subr.bf16.mxu1 %v4099_v62  ;;  %v4108_v62 = vld [vmem:[%s6381_s7 + $0x4] ss:$8 sps:$4 sm:$0xff]  }
  0xf5   :  { %v741_v24 = vpop.permute.xlu1 %740 }
  0xf6   :  { %v736_v21 = vpop.permute.xlu0 %735  ;;  %1294 = vperm.xlu1 %4082, %v225_v15   ;;  %2372 = vmatpush1.bf16.msra.mxu1 %v4101_v3  ;;  %v988_v12 = vmul.f32 %v4612_v26, %v741_v24  ;;  %v165_v15 = vld [vmem:[%s6396_s26 + $0x358] sm:$0xff]  ;;  %v597_v24 = vmul.f32 %v4617_v27, %v4902_v7  ;;  %v1698_v3 = vmul.f32 %v4669_v63, %v1636_v58  ;;  %v226_v58 = vld [vmem:[%s6396_s26 + $0x540] sm:$0xff] }
  0xf7   :  { %1289 = vperm.xlu0 %4081, %v224_v23   ;;  %v987_v10 = vmul.f32 %v4612_v26, %v736_v21  ;;  %v598_v23 = vmul.f32 %v4617_v27, %v4900_v6  ;;  %2373 = vmatprep.subr.bf16.mxu1 %v4102_v19 }
  0xf9   :  { %v751_v28 = vpop.permute.xlu1 %750  ;;  %v1052_v7 = vadd.f32 %v988_v12, %v598_v23 }
  0xfa   :  { %v746_v29 = vpop.permute.xlu0 %745  ;;  %460 = vperm.xlu1 %4082, %v99_v22   ;;  %v990_v21 = vmul.f32 %v4612_v26, %v751_v28  ;;  %v164_v22 = vld [vmem:[%s6396_s26 + $0x350] sm:$0xff]  ;;  %2374 = vmatpush1.bf16.msra.mxu1 %v4104_v16  ;;  %v1051_v28 = vadd.f32 %v987_v10, %v597_v24 }
  0xfb   :  { %455 = vperm.xlu0 %4081, %v98_v25   ;;  %v989_v13 = vmul.f32 %v4612_v26, %v746_v29  ;;  %v599_v25 = vmul.f32 %v4617_v27, %v4913_v20  ;;  %v4107_v20 = vld [vmem:[%s6381_s7 + $0x10] ss:$8 sps:$4 sm:$0xff]   ;;  %2375 = vmatprep.subr.bf16.mxu1 %v4105_v34 }
  0xfd   :  { %v1185_v42 = vpop.permute.xlu1 %1184  ;;  %v1053_v39 = vadd.f32 %v989_v13, %v599_v25  ;;  %v104_v25 = vld [vmem:[%s6396_s26 + $0x170] sm:$0xff] }
  0xfe   :  { %v1180_v43 = vpop.permute.xlu0 %1179  ;;  %v1440_v52 = vmul.f32 %v4626_v35, %v1185_v42  ;;  %850 = vperm.xlu1 %4082, %v163_v33   ;;  %2376 = vmatpush1.bf16.msra.mxu1 %v4107_v20 }
  0xff   :  { %v1439_v36 = vmul.f32 %v4626_v35, %v1180_v43  ;;  %845 = vperm.xlu0 %4081, %v162_v38   ;;  %v1054_v38 = vadd.f32 %v990_v21, %v600_v14  ;;  %v166_v43 = vld [vmem:[%s6396_s26 + $0x360] sm:$0xff]  ;;  %2377 = vmatprep.subr.bf16.mxu1 %v4108_v62  ;;  %v105_v14 = vld [vmem:[%s6396_s26 + $0x178] sm:$0xff]  ;;  %v228_v62 = vld [vmem:[%s6396_s26 + $0x550] sm:$0xff] }
 0x100   :  { %v1504_v46 = vadd.f32 %v1440_v52, %v1050_v50 }
 0x101   :  { %v1503_v59 = vadd.f32 %v1439_v36, %v1049_v44  ;;  %v4971_v60 = vpop.permute.xlu1 %370 }
 0x102   :  { %v4973_v61 = vpop.permute.xlu0 %365  ;;  %470 = vperm.xlu1 %4082, %v101_v47   ;;  %v1575_v5 = vadd.f32 %v4647_v51, %v1504_v46  ;;  %2378 = vmatpush1.bf16.msra.mxu1 %v4110_v49  ;;  %v231_v49 = vld [vmem:[%s6396_s26 + $0x568] sm:$0xff] }
 0x103   :  { %465 = vperm.xlu0 %4081, %v100_v57   ;;  %v1574_v8 = vadd.f32 %v4647_v51, %v1503_v59 }
 0x104   :  { %v1639_v30 = vmax.f32 %v1575_v5, 0.0  ;;  %v601_v5 = vmul.f32 %v4617_v27, %v4973_v61 }
 0x105   :  { %v761_v11 = vpop.permute.xlu1 %760  ;;  %v1638_v6 = vmax.f32 %v1574_v8, 0.0  ;;  %v227_v8 = vld [vmem:[%s6396_s26 + $0x548] sm:$0xff] }
 0x106   :  { %v756_v9 = vpop.permute.xlu0 %755  ;;  %480 = vperm.xlu1 %4082, %v103_v0   ;;  %v1735_v52 = vmul.f32 %v4675_v1, %v1639_v30  ;;  %v992_v37 = vmul.f32 %v4612_v26, %v761_v11  ;;  %v1699_v0 = vmul.f32 %v4669_v63, %v1637_v56 }
 0x107   :  { %475 = vperm.xlu0 %4081, %v102_v4   ;;  %v1734_v36 = vmul.f32 %v4675_v1, %v1638_v6  ;;  %v991_v50 = vmul.f32 %v4612_v26, %v756_v9  ;;  %v602_v4 = vmul.f32 %v4617_v27, %v4971_v60 }
 0x108   :  { %v1767_v60 = vadd.f32 %v1735_v52, %v1699_v0 }
 0x109   :  { %v1195_v31 = vpop.permute.xlu1 %1194  ;;  %v1766_v61 = vadd.f32 %v1734_v36, %v1698_v3  ;;  %v1056_v19 = vadd.f32 %v992_v37, %v602_v4 }
 0x10a   :  { %v1190_v32 = vpop.permute.xlu0 %1189  ;;  %v1442_v29 = vmul.f32 %v4626_v35, %v1195_v31  ;;  %860 = vperm.xlu1 %4082, %v165_v15   ;;  %v1055_v15 = vadd.f32 %v991_v50, %v601_v5 }
 0x10b   :  { %v1441_v33 = vmul.f32 %v4626_v35, %v1190_v32  ;;  %855 = vperm.xlu0 %4081, %v164_v22  }
 0x10c   :  { %v1506_v40 = vadd.f32 %v1442_v29, %v1052_v7 }
 0x10d   :  { %v1505_v42 = vadd.f32 %v1441_v33, %v1051_v28  ;;  %v1205_v44 = vpop.permute.xlu1 %1204 }
 0x10e   :  { %v1200_v47 = vpop.permute.xlu0 %1199  ;;  %v1577_v48 = vadd.f32 %v4647_v51, %v1506_v40  ;;  %v1444_v46 = vmul.f32 %v4626_v35, %v1205_v44  ;;  %870 = vperm.xlu1 %4082, %v167_v17   ;;  %v169_v40 = vld [vmem:[%s6396_s26 + $0x378] sm:$0xff] }
 0x10f   :  { %v1576_v57 = vadd.f32 %v4647_v51, %v1505_v42  ;;  %v1443_v59 = vmul.f32 %v4626_v35, %v1200_v47  ;;  %865 = vperm.xlu0 %4081, %v166_v43   ;;  %v168_v42 = vld [vmem:[%s6396_s26 + $0x370] sm:$0xff] }
 0x110   :  { %v1641_v56 = vmax.f32 %v1577_v48, 0.0  ;;  %v1508_v55 = vadd.f32 %v1444_v46, %v1054_v38 }
 0x111   :  { %v1640_v11 = vmax.f32 %v1576_v57, 0.0  ;;  %v1507_v9 = vadd.f32 %v1443_v59, %v1053_v39  ;;  %v1215_v12 = vpop.permute.xlu1 %1214  ;;  %v229_v59 = vld [vmem:[%s6396_s26 + $0x558] sm:$0xff] }
 0x112   :  { %v1210_v10 = vpop.permute.xlu0 %1209  ;;  %v1803_v16 = vmul.f32 %v4713_v41, %v1641_v56  ;;  %1304 = vperm.xlu1 %4082, %v227_v8   ;;  %v1579_v24 = vadd.f32 %v4647_v51, %v1508_v55  ;;  %v1446_v13 = vmul.f32 %v4626_v35, %v1215_v12  ;;  %v1701_v43 = vmul.f32 %v4669_v63, %v1641_v56  ;;  %v230_v56 = vld [vmem:[%s6396_s26 + $0x560] sm:$0xff]  ;;  %v107_v12 = vld [vmem:[%s6396_s26 + $0x188] sm:$0xff] }
 0x113   :  { %v1802_v23 = vmul.f32 %v4713_v41, %v1640_v11  ;;  %v1578_v21 = vadd.f32 %v4647_v51, %v1507_v9  ;;  %v1445_v22 = vmul.f32 %v4626_v35, %v1210_v10  ;;  %1299 = vperm.xlu0 %4081, %v226_v58   ;;  %v1700_v52 = vmul.f32 %v4669_v63, %v1640_v11  ;;  %v233_v9 = vld [vmem:[%s6396_s26 + $0x578] sm:$0xff]  ;;  %v232_v58 = vld [vmem:[%s6396_s26 + $0x570] sm:$0xff]  ;;  %v106_v10 = vld [vmem:[%s6396_s26 + $0x180] sm:$0xff] }
 0x114   :  { %v1835_v6 = vadd.f32 %v1803_v16, %v1767_v60  ;;  %v1643_v31 = vmax.f32 %v1579_v24, 0.0  ;;  %v1510_v7 = vadd.f32 %v1446_v13, %v1056_v19 }
 0x115   :  { %v1834_v30 = vadd.f32 %v1802_v23, %v1766_v61  ;;  %v1642_v32 = vmax.f32 %v1578_v21, 0.0  ;;  %v1509_v28 = vadd.f32 %v1445_v22, %v1055_v15  ;;  %v381_v29 = vpop.permute.xlu1 %380  ;;  %v171_v23 = vld [vmem:[%s6396_s26 + $0x388] sm:$0xff]  ;;  %v170_v21 = vld [vmem:[%s6396_s26 + $0x380] sm:$0xff] }
 0x116   :  { %v376_v33 = vpop.permute.xlu0 %375  ;;  %490 = vperm.xlu1 %4082, %v105_v14   ;;  %v1737_v17 = vmul.f32 %v4675_v1, %v1643_v31  ;;  %v5072_v38 = vadd.f32 %v4647_v51, %v1510_v7  ;;  %v604_v13 = vmul.f32 %v4617_v27, %v381_v29  ;;  %v108_v7 = vld [vmem:[%s6396_s26 + $0x190] sm:$0xff] }
 0x117   :  { %v1862_v34 = vpack.c.bf16 %v1835_v6, %v1834_v30  ;;  %v1736_v20 = vmul.f32 %v4675_v1, %v1642_v32  ;;  %v5075_v39 = vadd.f32 %v4647_v51, %v1509_v28  ;;  %485 = vperm.xlu0 %4081, %v104_v25   ;;  %v603_v14 = vmul.f32 %v4617_v27, %v376_v33 }
 0x118   :  { %v1645_v36 = vmax.f32 %v5072_v38, 0.0  ;;  %v1769_v47 = vadd.f32 %v1737_v17, %v1701_v43 }
 0x119   :  { %4031 = vmatprep.mubr.msk.bf16.mxu0 %vm1913_vm0, %v1862_v34  ;;  %v1644_v37 = vmax.f32 %v5075_v39, 0.0  ;;  %v771_v50 = vpop.permute.xlu1 %770  ;;  %v1768_v48 = vadd.f32 %v1736_v20, %v1700_v52  ;;  %v110_v34 = vld [vmem:[%s6396_s26 + $0x1a0] sm:$0xff] }
 0x11a   :  { %v766_v44 = vpop.permute.xlu0 %765  ;;  %880 = vperm.xlu1 %4082, %v169_v40   ;;  %v1805_v57 = vmul.f32 %v4713_v41, %v1645_v36  ;;  %v994_v16 = vmul.f32 %v4612_v26, %v771_v50  ;;  %v5151_v40 = vld [vmem:[%s6397_s22 + $0x1] ss:$0 sm:$0xff] }
 0x11b   :  { %v1804_v46 = vmul.f32 %v4713_v41, %v1644_v37  ;;  %875 = vperm.xlu0 %4081, %v168_v42   ;;  %v993_v24 = vmul.f32 %v4612_v26, %v766_v44  ;;  %v109_v26 = vld [vmem:[%s6396_s26 + $0x198] sm:$0xff] }
 0x11c   :  { %v1837_v4 = vadd.f32 %v1805_v57, %v1769_v47  ;;  %v1058_v6 = vadd.f32 %v994_v16, %v604_v13  ;;  %v173_v44 = vld [vmem:[%s6396_s26 + $0x398] sm:$0xff]  ;;  %v5162_v47 = vld [vmem:[%s6397_s22] ss:$0 sm:$0xff] }
 0x11d   :  { %v391_v0 = vpop.permute.xlu1 %390  ;;  %v1836_v3 = vadd.f32 %v1804_v46, %v1768_v48  ;;  %v1057_v32 = vadd.f32 %v993_v24, %v603_v14 }
 0x11e   :  { %v386_v5 = vpop.permute.xlu0 %385  ;;  %1314 = vperm.xlu1 %4082, %v229_v59   ;;  %v606_v48 = vmul.f32 %v5162_v47, %v391_v0 }
 0x11f   :  { %1309 = vperm.xlu0 %4081, %v228_v62   ;;  %v1863_v8 = vpack.c.bf16 %v1837_v4, %v1836_v3  ;;  %v605_v57 = vmul.f32 %v5162_v47, %v386_v5 }
 0x121   :  { %4032 = vmatmul.mubr.msk.bf16.gmra.mxu0 %vm1913_vm0, %v1863_v8  ;;  %v5107_v11 = vpop.permute.xlu1 %400 }
 0x122   :  { %v5109_v55 = vpop.permute.xlu0 %395  ;;  %1324 = vperm.xlu1 %4082, %v231_v49   ;;  %v5174_v49 = vld [vmem:[%s6397_s22 + $0x2] ss:$0 sm:$0xff]  ;;  %v608_v5 = vmul.f32 %v5162_v47, %v5107_v11 }
 0x123   :  { %1319 = vperm.xlu0 %4081, %v230_v56   ;;  %v174_v11 = vld [vmem:[%s6396_s26 + $0x3a0] sm:$0xff] }
 0x125   :  { %v781_v60 = vpop.permute.xlu1 %780 }
 0x126   :  { %v776_v61 = vpop.permute.xlu0 %775  ;;  %1334 = vperm.xlu1 %4082, %v233_v9   ;;  %v996_v42 = vmul.f32 %v5151_v40, %v781_v60  ;;  %v175_v60 = vld [vmem:[%s6396_s26 + $0x3a8] sm:$0xff] }
 0x127   :  { %1329 = vperm.xlu0 %4081, %v232_v58   ;;  %v995_v50 = vmul.f32 %v5151_v40, %v776_v61  ;;  %v1703_v61 = vmul.f32 %v4669_v63, %v1645_v36  ;;  %v5197_v36 = vld [vmem:[%s6376_s2] ss:$0 sm:$0xff] }
 0x128   :  { %v1060_v3 = vadd.f32 %v996_v42, %v606_v48 }
 0x129   :  { %v791_v19 = vpop.permute.xlu1 %790  ;;  %v1059_v9 = vadd.f32 %v995_v50, %v605_v57 }
 0x12a   :  { %v786_v15 = vpop.permute.xlu0 %785  ;;  %500 = vperm.xlu1 %4082, %v107_v12   ;;  %v998_v46 = vmul.f32 %v5151_v40, %v791_v19  ;;  %v607_v12 = vmul.f32 %v5162_v47, %v5109_v55 }
 0x12b   :  { %495 = vperm.xlu0 %4081, %v106_v10   ;;  %v997_v4 = vmul.f32 %v5151_v40, %v786_v15 }
 0x12c   :  { %v1062_v19 = vadd.f32 %v998_v46, %v608_v5 }
 0x12d   :  { %v1225_v22 = vpop.permute.xlu1 %1224 }
 0x12e   :  { %v1448_v25 = vmul.f32 %v4626_v35, %v1225_v22  ;;  %v1220_v30 = vpop.permute.xlu0 %1219  ;;  %890 = vperm.xlu1 %4082, %v171_v23  }
 0x12f   :  { %v1447_v31 = vmul.f32 %v4626_v35, %v1220_v30  ;;  %885 = vperm.xlu0 %4081, %v170_v21   ;;  %v111_v35 = vld [vmem:[%s6396_s26 + $0x1a8] sm:$0xff]  ;;  %v1061_v21 = vadd.f32 %v997_v4, %v607_v12  ;;  %v177_v12 = vld [vmem:[%s6396_s26 + $0x3b8] sm:$0xff] }
 0x130   :  { %v1512_v28 = vadd.f32 %v1448_v25, %v1058_v6 }
 0x131   :  { %v411_v29 = vpop.permute.xlu1 %410  ;;  %v1511_v27 = vadd.f32 %v1447_v31, %v1057_v32  ;;  %v235_v31 = vld [vmem:[%s6396_s26 + $0x588] sm:$0xff] }
 0x132   :  { %v406_v33 = vpop.permute.xlu0 %405  ;;  %510 = vperm.xlu1 %4082, %v109_v26   ;;  %v1583_v17 = vadd.f32 %v4647_v51, %v1512_v28  ;;  %v610_v14 = vmul.f32 %v5162_v47, %v411_v29  ;;  %v1702_v26 = vmul.f32 %v4669_v63, %v1644_v37  ;;  %v234_v29 = vld [vmem:[%s6396_s26 + $0x580] sm:$0xff] }
 0x133   :  { %505 = vperm.xlu0 %4081, %v108_v7   ;;  %v1582_v43 = vadd.f32 %v4647_v51, %v1511_v27  ;;  %v172_v51 = vld [vmem:[%s6396_s26 + $0x390] sm:$0xff]  ;;  %v609_v32 = vmul.f32 %v5162_v47, %v406_v33 }
 0x134   :  { %v1647_v59 = vmax.f32 %v1583_v17, 0.0 }
 0x135   :  { %v801_v20 = vpop.permute.xlu1 %800  ;;  %v1646_v8 = vmax.f32 %v1582_v43, 0.0 }
 0x136   :  { %v796_v52 = vpop.permute.xlu0 %795  ;;  %520 = vperm.xlu1 %4082, %v111_v35   ;;  %v1739_v15 = vmul.f32 %v4675_v1, %v1647_v59  ;;  %v1000_v16 = vmul.f32 %v5151_v40, %v801_v20  ;;  %v112_v59 = vld [vmem:[%s6396_s26 + $0x1b0] sm:$0xff] }
 0x137   :  { %515 = vperm.xlu0 %4081, %v110_v34   ;;  %v1738_v38 = vmul.f32 %v4675_v1, %v1646_v8  ;;  %v999_v25 = vmul.f32 %v5151_v40, %v796_v52 }
 0x138   :  { %v1771_v27 = vadd.f32 %v1739_v15, %v1703_v61  ;;  %v1064_v35 = vadd.f32 %v1000_v16, %v610_v14 }
 0x139   :  { %v1235_v62 = vpop.permute.xlu1 %1234  ;;  %v1770_v42 = vadd.f32 %v1738_v38, %v1702_v26  ;;  %v1063_v33 = vadd.f32 %v999_v25, %v609_v32  ;;  %v236_v25 = vld [vmem:[%s6396_s26 + $0x590] sm:$0xff]  ;;  %v239_v32 = vld [vmem:[%s6396_s26 + $0x5a8] sm:$0xff] }
 0x13a   :  { %v1450_v0 = vmul.f32 %v5174_v49, %v1235_v62  ;;  %v1230_v56 = vpop.permute.xlu0 %1229  ;;  %900 = vperm.xlu1 %4082, %v173_v44  }
 0x13b   :  { %v1449_v58 = vmul.f32 %v5174_v49, %v1230_v56  ;;  %895 = vperm.xlu0 %4081, %v172_v51   ;;  %v113_v51 = vld [vmem:[%s6396_s26 + $0x1b8] sm:$0xff] }
 0x13c   :  { %v1514_v10 = vadd.f32 %v1450_v0, %v1060_v3 }
 0x13d   :  { %v1513_v23 = vadd.f32 %v1449_v58, %v1059_v9  ;;  %v1245_v24 = vpop.permute.xlu1 %1244 }
 0x13e   :  { %v1585_v55 = vadd.f32 %v5197_v36, %v1514_v10  ;;  %v1452_v13 = vmul.f32 %v5174_v49, %v1245_v24  ;;  %v1240_v22 = vpop.permute.xlu0 %1239  ;;  %910 = vperm.xlu1 %4082, %v175_v60  }
 0x13f   :  { %v1584_v30 = vadd.f32 %v5197_v36, %v1513_v23  ;;  %v1451_v6 = vmul.f32 %v5174_v49, %v1240_v22  ;;  %905 = vperm.xlu0 %4081, %v174_v11   ;;  %v237_v22 = vld [vmem:[%s6396_s26 + $0x598] sm:$0xff] }
 0x140   :  { %v1649_v7 = vmax.f32 %v1585_v55, 0.0  ;;  %v1516_v28 = vadd.f32 %v1452_v13, %v1062_v19  ;;  %v176_v19 = vld [vmem:[%s6396_s26 + $0x3b0] sm:$0xff] }
 0x141   :  { %v1648_v34 = vmax.f32 %v1584_v30, 0.0  ;;  %v1515_v17 = vadd.f32 %v1451_v6, %v1061_v21  ;;  %v1255_v20 = vpop.permute.xlu1 %1254 }
 0x142   :  { %v1807_v43 = vmul.f32 %v4713_v41, %v1649_v7  ;;  %v1587_v39 = vadd.f32 %v5197_v36, %v1516_v28  ;;  %v1454_v37 = vmul.f32 %v5174_v49, %v1255_v20  ;;  %v1250_v52 = vpop.permute.xlu0 %1249  ;;  %1344 = vperm.xlu1 %4082, %v235_v31   ;;  %v1705_v10 = vmul.f32 %v4669_v63, %v1649_v7  ;;  %v238_v7 = vld [vmem:[%s6396_s26 + $0x5a0] sm:$0xff]  ;;  %v115_v20 = vld [vmem:[%s6396_s26 + $0x1c8] sm:$0xff] }
 0x143   :  { %v1806_v50 = vmul.f32 %v4713_v41, %v1648_v34  ;;  %v1586_v44 = vadd.f32 %v5197_v36, %v1515_v17  ;;  %v1453_v48 = vmul.f32 %v5174_v49, %v1250_v52  ;;  %1339 = vperm.xlu0 %4081, %v234_v29   ;;  %v1704_v15 = vmul.f32 %v4669_v63, %v1648_v34  ;;  %v179_v52 = vld [vmem:[%s6396_s26 + $0x3c8] sm:$0xff] }
 0x144   :  { %v1651_v57 = vmax.f32 %v1587_v39, 0.0  ;;  %v1518_v46 = vadd.f32 %v1454_v37, %v1064_v35  ;;  %v1839_v62 = vadd.f32 %v1807_v43, %v1771_v27  ;;  %v241_v27 = vld [vmem:[%s6396_s26 + $0x5b8] sm:$0xff]  ;;  %v240_v35 = vld [vmem:[%s6396_s26 + $0x5b0] sm:$0xff] }
 0x145   :  { %v1650_v3 = vmax.f32 %v1586_v44, 0.0  ;;  %v1517_v4 = vadd.f32 %v1453_v48, %v1063_v33  ;;  %v421_v8 = vpop.permute.xlu1 %420  ;;  %v1838_v0 = vadd.f32 %v1806_v50, %v1770_v42  ;;  %v114_v42 = vld [vmem:[%s6396_s26 + $0x1c0] sm:$0xff] }
 0x146   :  { %v1741_v56 = vmul.f32 %v4675_v1, %v1651_v57  ;;  %v5229_v5 = vadd.f32 %v5197_v36, %v1518_v46  ;;  %v416_v9 = vpop.permute.xlu0 %415  ;;  %530 = vperm.xlu1 %4082, %v113_v51   ;;  %v178_v50 = vld [vmem:[%s6396_s26 + $0x3c0] sm:$0xff]  ;;  %v612_v44 = vmul.f32 %v5162_v47, %v421_v8  ;;  %v116_v8 = vld [vmem:[%s6396_s26 + $0x1d0] sm:$0xff] }
 0x147   :  { %v1740_v58 = vmul.f32 %v4675_v1, %v1650_v3  ;;  %v5233_v60 = vadd.f32 %v5197_v36, %v1517_v4  ;;  %525 = vperm.xlu0 %4081, %v112_v59   ;;  %v1864_v61 = vpack.c.bf16 %v1839_v62, %v1838_v0  ;;  %v611_v51 = vmul.f32 %v5162_v47, %v416_v9  ;;  %v117_v3 = vld [vmem:[%s6396_s26 + $0x1d8] sm:$0xff] }
 0x148   :  { %v1653_v11 = vmax.f32 %v5229_v5, 0.0  ;;  %v1773_v24 = vadd.f32 %v1741_v56, %v1705_v10 }
 0x149   :  { %v1652_v16 = vmax.f32 %v5233_v60, 0.0  ;;  %4035 = vmatprep.mubr.msk.bf16.mxu0 %vm1913_vm0, %v1864_v61  ;;  %v811_v23 = vpop.permute.xlu1 %810  ;;  %v1772_v55 = vadd.f32 %v1740_v58, %v1704_v15  ;;  %v119_v61 = vld [vmem:[%s6396_s26 + $0x1e8] sm:$0xff] }
 0x14a   :  { %v1809_v21 = vmul.f32 %v4713_v41, %v1653_v11  ;;  %v806_v38 = vpop.permute.xlu0 %805  ;;  %920 = vperm.xlu1 %4082, %v177_v12   ;;  %v1002_v37 = vmul.f32 %v5151_v40, %v811_v23  ;;  %v118_v12 = vld [vmem:[%s6396_s26 + $0x1e0] sm:$0xff] }
 0x14b   :  { %v1808_v13 = vmul.f32 %v4713_v41, %v1652_v16  ;;  %915 = vperm.xlu0 %4081, %v176_v19   ;;  %v1001_v33 = vmul.f32 %v5151_v40, %v806_v38  ;;  %v181_v38 = vld [vmem:[%s6396_s26 + $0x3d8] sm:$0xff] }
 0x14c   :  { %v1841_v14 = vadd.f32 %v1809_v21, %v1773_v24  ;;  %v1066_v59 = vadd.f32 %v1002_v37, %v612_v44 }
 0x14d   :  { %v1840_v30 = vadd.f32 %v1808_v13, %v1772_v55  ;;  %v431_v6 = vpop.permute.xlu1 %430  ;;  %v1065_v4 = vadd.f32 %v1001_v33, %v611_v51  ;;  %v180_v13 = vld [vmem:[%s6396_s26 + $0x3d0] sm:$0xff] }
 0x14e   :  { %v426_v31 = vpop.permute.xlu0 %425  ;;  %1354 = vperm.xlu1 %4082, %v237_v22   ;;  %v614_v55 = vmul.f32 %v5162_v47, %v431_v6 }
 0x14f   :  { %1349 = vperm.xlu0 %4081, %v236_v25   ;;  %v1865_v26 = vpack.c.bf16 %v1841_v14, %v1840_v30  ;;  %v613_v22 = vmul.f32 %v5162_v47, %v426_v31  ;;  %v183_v31 = vld [vmem:[%s6396_s26 + $0x3e8] sm:$0xff] }
 0x151   :  { %4036 = vmatmul.mubr.msk.bf16.gmra.mxu0 %vm1913_vm0, %v1865_v26  ;;  %v441_v28 = vpop.permute.xlu1 %440 }
 0x152   :  { %v5265_v29 = vpop.permute.xlu0 %435  ;;  %1364 = vperm.xlu1 %4082, %v239_v32   ;;  %v616_v6 = vmul.f32 %v5162_v47, %v441_v28  ;;  %v182_v28 = vld [vmem:[%s6396_s26 + $0x3e0] sm:$0xff] }
 0x153   :  { %1359 = vperm.xlu0 %4081, %v238_v7  }
 0x155   :  { %v821_v34 = vpop.permute.xlu1 %820 }
 0x156   :  { %v816_v17 = vpop.permute.xlu0 %815  ;;  %1374 = vperm.xlu1 %4082, %v241_v27   ;;  %v1004_v15 = vmul.f32 %v5151_v40, %v821_v34 }
 0x157   :  { %1369 = vperm.xlu0 %4081, %v240_v35   ;;  %v1003_v21 = vmul.f32 %v5151_v40, %v816_v17 }
 0x158   :  { %v1068_v26 = vadd.f32 %v1004_v15, %v614_v55 }
 0x159   :  { %v831_v43 = vpop.permute.xlu1 %830  ;;  %v1067_v34 = vadd.f32 %v1003_v21, %v613_v22 }
 0x15a   :  { %v826_v39 = vpop.permute.xlu0 %825  ;;  %540 = vperm.xlu1 %4082, %v115_v20   ;;  %v1006_v14 = vmul.f32 %v5151_v40, %v831_v43  ;;  %v1707_v20 = vmul.f32 %v4669_v63, %v1653_v11 }
 0x15b   :  { %535 = vperm.xlu0 %4081, %v114_v42   ;;  %v1005_v32 = vmul.f32 %v5151_v40, %v826_v39  ;;  %v615_v42 = vmul.f32 %v5162_v47, %v5265_v29 }
 0x15c   :  { %v1070_v39 = vadd.f32 %v1006_v14, %v616_v6 }
 0x15d   :  { %v1265_v48 = vpop.permute.xlu1 %1264  ;;  %v1069_v44 = vadd.f32 %v1005_v32, %v615_v42  ;;  %v185_v42 = vld [vmem:[%s6396_s26 + $0x3f8] sm:$0xff] }
 0x15e   :  { %v1456_v57 = vmul.f32 %v5174_v49, %v1265_v48  ;;  %v1260_v46 = vpop.permute.xlu0 %1259  ;;  %930 = vperm.xlu1 %4082, %v179_v52  }
 0x15f   :  { %v1455_v62 = vmul.f32 %v5174_v49, %v1260_v46  ;;  %925 = vperm.xlu0 %4081, %v178_v50  }
 0x160   :  { %v1520_v0 = vadd.f32 %v1456_v57, %v1066_v59 }
 0x161   :  { %v451_v56 = vpop.permute.xlu1 %450  ;;  %v1519_v9 = vadd.f32 %v1455_v62, %v1065_v4  ;;  %v243_v62 = vld [vmem:[%s6396_s26 + $0x5c8] sm:$0xff] }
 0x162   :  { %v446_v58 = vpop.permute.xlu0 %445  ;;  %550 = vperm.xlu1 %4082, %v117_v3   ;;  %v1591_v10 = vadd.f32 %v5197_v36, %v1520_v0  ;;  %v618_v51 = vmul.f32 %v5162_v47, %v451_v56  ;;  %v1706_v3 = vmul.f32 %v4669_v63, %v1652_v16  ;;  %v242_v56 = vld [vmem:[%s6396_s26 + $0x5c0] sm:$0xff] }
 0x163   :  { %545 = vperm.xlu0 %4081, %v116_v8   ;;  %v1590_v23 = vadd.f32 %v5197_v36, %v1519_v9  ;;  %v617_v4 = vmul.f32 %v5162_v47, %v446_v58 }
 0x164   :  { %v1655_v25 = vmax.f32 %v1591_v10, 0.0 }
 0x165   :  { %v841_v19 = vpop.permute.xlu1 %840  ;;  %v1654_v7 = vmax.f32 %v1590_v23, 0.0 }
 0x166   :  { %v836_v24 = vpop.permute.xlu0 %835  ;;  %560 = vperm.xlu1 %4082, %v119_v61   ;;  %v1743_v37 = vmul.f32 %v4675_v1, %v1655_v25  ;;  %v1008_v52 = vmul.f32 %v5151_v40, %v841_v19 }
 0x167   :  { %555 = vperm.xlu0 %4081, %v118_v12   ;;  %v1742_v5 = vmul.f32 %v4675_v1, %v1654_v7  ;;  %v1007_v57 = vmul.f32 %v5151_v40, %v836_v24 }
 0x168   :  { %v1775_v9 = vadd.f32 %v1743_v37, %v1707_v20  ;;  %v1072_v61 = vadd.f32 %v1008_v52, %v618_v51 }
 0x169   :  { %v1275_v30 = vpop.permute.xlu1 %1274  ;;  %v1774_v15 = vadd.f32 %v1742_v5, %v1706_v3  ;;  %v1071_v58 = vadd.f32 %v1007_v57, %v617_v4  ;;  %v244_v57 = vld [vmem:[%s6396_s26 + $0x5d0] sm:$0xff]  ;;  %v247_v4 = vld [vmem:[%s6396_s26 + $0x5e8] sm:$0xff] }
 0x16a   :  { %v1458_v27 = vmul.f32 %v5174_v49, %v1275_v30  ;;  %v1270_v35 = vpop.permute.xlu0 %1269  ;;  %940 = vperm.xlu1 %4082, %v181_v38   ;;  %v120_v30 = vld [vmem:[%s6396_s26 + $0x1f0] sm:$0xff] }
 0x16b   :  { %v1457_v17 = vmul.f32 %v5174_v49, %v1270_v35  ;;  %935 = vperm.xlu0 %4081, %v180_v13   ;;  %v121_v13 = vld [vmem:[%s6396_s26 + $0x1f8] sm:$0xff] }
 0x16c   :  { %v1522_v43 = vadd.f32 %v1458_v27, %v1068_v26 }
 0x16d   :  { %v1521_v33 = vadd.f32 %v1457_v17, %v1067_v34  ;;  %v1285_v50 = vpop.permute.xlu1 %1284 }
 0x16e   :  { %v1593_v11 = vadd.f32 %v5197_v36, %v1522_v43  ;;  %v1460_v48 = vmul.f32 %v5174_v49, %v1285_v50  ;;  %v1280_v29 = vpop.permute.xlu0 %1279  ;;  %950 = vperm.xlu1 %4082, %v183_v31  }
 0x16f   :  { %v1592_v46 = vadd.f32 %v5197_v36, %v1521_v33  ;;  %v1459_v59 = vmul.f32 %v5174_v49, %v1280_v29  ;;  %945 = vperm.xlu0 %4081, %v182_v28   ;;  %v245_v29 = vld [vmem:[%s6396_s26 + $0x5d8] sm:$0xff] }
 0x170   :  { %v1657_v8 = vmax.f32 %v1593_v11, 0.0  ;;  %v1524_v0 = vadd.f32 %v1460_v48, %v1070_v39  ;;  %v184_v39 = vld [vmem:[%s6396_s26 + $0x3f0] sm:$0xff] }
 0x171   :  { %v1656_v12 = vmax.f32 %v1592_v46, 0.0  ;;  %v1523_v10 = vadd.f32 %v1459_v59, %v1069_v44  ;;  %v1295_v19 = vpop.permute.xlu1 %1294 }
 0x172   :  { %v1811_v23 = vmul.f32 %v4713_v41, %v1657_v8  ;;  %v1595_v60 = vadd.f32 %v5197_v36, %v1524_v0  ;;  %v1462_v16 = vmul.f32 %v5174_v49, %v1295_v19  ;;  %v1290_v24 = vpop.permute.xlu0 %1289  ;;  %1384 = vperm.xlu1 %4082, %v243_v62   ;;  %v1709_v43 = vmul.f32 %v4669_v63, %v1657_v8  ;;  %v246_v8 = vld [vmem:[%s6396_s26 + $0x5e0] sm:$0xff]  ;;  %v249_v19 = vld [vmem:[%s6396_s26 + $0x5f8] sm:$0xff] }
 0x173   :  { %v1810_v21 = vmul.f32 %v4713_v41, %v1656_v12  ;;  %v1594_v38 = vadd.f32 %v5197_v36, %v1523_v10  ;;  %v1461_v55 = vmul.f32 %v5174_v49, %v1290_v24  ;;  %1379 = vperm.xlu0 %4081, %v242_v56   ;;  %v1708_v37 = vmul.f32 %v4669_v63, %v1656_v12  ;;  %v2155_v12 = vld [vmem:[%s6380_s6] sm:$0x7] }
 0x174   :  { %v1843_v22 = vadd.f32 %v1811_v23, %v1775_v9  ;;  %v1659_v14 = vmax.f32 %v1595_v60, 0.0  ;;  %v1526_v25 = vadd.f32 %v1462_v16, %v1072_v61  ;;  %v5415_v61 = vld [vmem:[%s6379_s5] ss:$0 sm:$0xff]  ;;  %v248_v60 = vld [vmem:[%s6396_s26 + $0x5f0] sm:$0xff] }
 0x175   :  { %v1842_v26 = vadd.f32 %v1810_v21, %v1774_v15  ;;  %v1658_v32 = vmax.f32 %v1594_v38, 0.0  ;;  %v1525_v7 = vadd.f32 %v1461_v55, %v1071_v58  ;;  %v5362_v27 = vpop.permute.xlu1 %460  ;;  %v5424_v15 = vrot.slane %v2155_v12, %v4656_v54 }
 0x176   :  { %v1745_v35 = vmul.f32 %v4675_v1, %v1659_v14  ;;  %v5366_v6 = vadd.f32 %v5197_v36, %v1526_v25  ;;  %v5368_v34 = vpop.permute.xlu0 %455  ;;  %570 = vperm.xlu1 %4082, %v121_v13   ;;  %v5434_v21 = vrot.slane %v2155_v12, %v4653_v53 }
 0x177   :  { %v1744_v17 = vmul.f32 %v4675_v1, %v1658_v32  ;;  %v5372_v31 = vadd.f32 %v5197_v36, %v1525_v7  ;;  %565 = vperm.xlu0 %4081, %v120_v30   ;;  %v1866_v20 = vpack.c.bf16 %v1843_v22, %v1842_v26  ;;  %v5444_v7 = vrot.slane %v2155_v12, %v4696_v18 }
 0x178   :  { %v1661_v28 = vmax.f32 %v5366_v6, 0.0  ;;  %v1777_v50 = vadd.f32 %v1745_v35, %v1709_v43  ;;  %v2160_v14 = vmul.f32 0.0, %v5434_v21 }
 0x179   :  { %v1660_v52 = vmax.f32 %v5372_v31, 0.0  ;;  %4039 = vmatprep.mubr.msk.bf16.mxu0 %vm1913_vm0, %v1866_v20  ;;  %v851_v33 = vpop.permute.xlu1 %850  ;;  %v1776_v11 = vadd.f32 %v1744_v17, %v1708_v37 }
 0x17a   :  { %v1813_v44 = vmul.f32 %v4713_v41, %v1661_v28  ;;  %v846_v5 = vpop.permute.xlu0 %845  ;;  %960 = vperm.xlu1 %4082, %v185_v42   ;;  %v1010_v42 = vmul.f32 %v5151_v40, %v851_v33 }
 0x17b   :  { %v1812_v48 = vmul.f32 %v4713_v41, %v1660_v52  ;;  %955 = vperm.xlu0 %4081, %v184_v39   ;;  %v1009_v43 = vmul.f32 %v5151_v40, %v846_v5 }
 0x17c   :  { %v1845_v51 = vadd.f32 %v1813_v44, %v1777_v50  ;;  %v620_v50 = vmul.f32 %v5162_v47, %v5362_v27  ;;  %v619_v44 = vmul.f32 %v5162_v47, %v5368_v34 }
 0x17d   :  { %v1844_v46 = vadd.f32 %v1812_v48, %v1776_v11  ;;  %v5397_v59 = vpop.permute.xlu1 %470 }
 0x17e   :  { %v5399_v62 = vpop.permute.xlu0 %465  ;;  %1394 = vperm.xlu1 %4082, %v245_v29   ;;  %v1073_v27 = vadd.f32 %v1009_v43, %v619_v44 }
 0x17f   :  { %1389 = vperm.xlu0 %4081, %v244_v57   ;;  %v1867_v3 = vpack.c.bf16 %v1845_v51, %v1844_v46  ;;  %v1074_v57 = vadd.f32 %v1010_v42, %v620_v50 }
 0x181   :  { %v4025_v0 = vpop.f32.mrf.mxu0  ;;  %4040 = vmatmul.mubr.msk.bf16.gmra.mxu0 %vm1913_vm0, %v1867_v3  ;;  %v5408_v56 = vpop.permute.xlu1 %480 }
 0x182   :  { %v5410_v9 = vpop.permute.xlu0 %475  ;;  %1404 = vperm.xlu1 %4082, %v247_v4   ;;  %v5431_v58 = vadd.f32 %v4025_v0, %v5415_v61 }
 0x183   :  { %v1996_v10 = vpop.f32.mrf.mxu0  ;;  %1399 = vperm.xlu0 %4081, %v246_v8  }
 0x184   :  { %v1997_v23 = vadd.f32 %v5415_v61, %v1996_v10  ;;  %v2125_v32 = vmax.f32 %v5431_v58, 0.0 }
 0x185   :  { %v4026_v16 = vpop.f32.mrf.mxu0  ;;  %v861_v24 = vpop.permute.xlu1 %860 }
 0x186   :  { %v2123_v38 = vmax.f32 %v1997_v23, 0.0  ;;  %v5437_v55 = vadd.f32 %v4026_v16, %v5415_v61  ;;  %v856_v13 = vpop.permute.xlu0 %855  ;;  %1414 = vperm.xlu1 %4082, %v249_v19   ;;  %v2215_v48 = vmul.f32 %v5444_v7, %v2125_v32 }
 0x187   :  { %v1999_v22 = vpop.f32.mrf.mxu0  ;;  %1409 = vperm.xlu0 %4081, %v248_v60   ;;  %v1012_v60 = vmul.f32 %v5151_v40, %v861_v24 }
 0x188   :  { %v2179_v25 = vmul.f32 %v5424_v15, %v2123_v38  ;;  %v2000_v30 = vadd.f32 %v5415_v61, %v1999_v22  ;;  %v2126_v35 = vmax.f32 %v5437_v55, 0.0  ;;  %v1011_v22 = vmul.f32 %v5151_v40, %v856_v13 }
 0x189   :  { %v871_v26 = vpop.permute.xlu1 %870  ;;  %v624_v13 = vmul.f32 %v5162_v47, %v5408_v56 }
 0x18a   :  { %v2124_v17 = vmax.f32 %v2000_v30, 0.0  ;;  %v866_v20 = vpop.permute.xlu0 %865  ;;  %v2195_v39 = vadd.f32 %v2179_v25, %v2160_v14  ;;  %v2216_v33 = vmul.f32 %v5444_v7, %v2126_v35  ;;  %v621_v25 = vmul.f32 %v5162_v47, %v5399_v62 }
 0x18b   :  { %v1014_v30 = vmul.f32 %v5151_v40, %v871_v26  ;;  %v1711_v62 = vmul.f32 %v4669_v63, %v1661_v28  ;;  %v623_v26 = vmul.f32 %v5162_v47, %v5410_v9 }
 0x18c   :  { %v2180_v37 = vmul.f32 %v5424_v15, %v2124_v17  ;;  %v2231_v3 = vadd.f32 %v2215_v48, %v2195_v39  ;;  %v1013_v39 = vmul.f32 %v5151_v40, %v866_v20  ;;  %v1075_v44 = vadd.f32 %v1011_v22, %v621_v25 }
 0x18d   :  { %v1305_v11 = vpop.permute.xlu1 %1304  ;;  %v1078_v48 = vadd.f32 %v1014_v30, %v624_v13 }
 0x18e   :  { %v2196_v29 = vadd.f32 %v2180_v37, %v2160_v14  ;;  %v1464_v5 = vmul.f32 %v5174_v49, %v1305_v11  ;;  %v1300_v51 = vpop.permute.xlu0 %1299  ;;  %v622_v14 = vmul.f32 %v5162_v47, %v5397_v59 }
 0x18f   :  { %v1463_v46 = vmul.f32 %v5174_v49, %v1300_v51  ;;  %v1077_v51 = vadd.f32 %v1013_v39, %v623_v26 }
 0x190   :  { %v2232_v4 = vadd.f32 %v2216_v33, %v2196_v29  ;;  %v1528_v34 = vadd.f32 %v1464_v5, %v1074_v57  ;;  %v1076_v43 = vadd.f32 %v1012_v60, %v622_v14 }
 0x191   :  { %v491_v8 = vpop.permute.xlu1 %490  ;;  %v1527_v0 = vadd.f32 %v1463_v46, %v1073_v27 }
 0x192   :  { %v486_v12 = vpop.permute.xlu0 %485  ;;  %v2247_v10 = vpack.c.bf16 %v2232_v4, %v2231_v3  ;;  %v1599_v19 = vadd.f32 %v5197_v36, %v1528_v34  ;;  %v626_v28 = vmul.f32 %v5162_v47, %v491_v8  ;;  %v1710_v4 = vmul.f32 %v4669_v63, %v1660_v52 }
 0x193   :  { %v1598_v16 = vadd.f32 %v5197_v36, %v1527_v0  ;;  %v625_v34 = vmul.f32 %v5162_v47, %v486_v12 }
 0x194   :  { %2396 = vmatmul.mubr.bf16.vlgmr.msra.gmra.mxu1 %v2247_v10  ;;  %v1663_v17 = vmax.f32 %v1599_v19, 0.0 }
 0x195   :  { %v881_v23 = vpop.permute.xlu1 %880  ;;  %2405 = vmatprep.mubr.bf16.mxu1 %v4270_v2  ;;  %v1662_v37 = vmax.f32 %v1598_v16, 0.0 }
 0x196   :  { %v876_v38 = vpop.permute.xlu0 %875  ;;  %v1747_v20 = vmul.f32 %v4675_v1, %v1663_v17  ;;  %v1016_v33 = vmul.f32 %v5151_v40, %v881_v23 }
 0x197   :  { %v1746_v56 = vmul.f32 %v4675_v1, %v1662_v37  ;;  %v1015_v9 = vmul.f32 %v5151_v40, %v876_v38 }
 0x198   :  { %v1779_v19 = vadd.f32 %v1747_v20, %v1711_v62  ;;  %v1080_v23 = vadd.f32 %v1016_v33, %v626_v28 }
 0x199   :  { %v1315_v42 = vpop.permute.xlu1 %1314  ;;  %v1778_v8 = vadd.f32 %v1746_v56, %v1710_v4  ;;  %v1079_v31 = vadd.f32 %v1015_v9, %v625_v34 }
 0x19a   :  { %v1466_v24 = vmul.f32 %v5174_v49, %v1315_v42  ;;  %v1310_v50 = vpop.permute.xlu0 %1309 }
 0x19b   :  { %v1465_v59 = vmul.f32 %v5174_v49, %v1310_v50 }
 0x19c   :  { %v1530_v11 = vadd.f32 %v1466_v24, %v1076_v43 }
 0x19d   :  { %v1529_v29 = vadd.f32 %v1465_v59, %v1075_v44  ;;  %v1325_v5 = vpop.permute.xlu1 %1324 }
 0x19e   :  { %v1601_v57 = vadd.f32 %v5197_v36, %v1530_v11  ;;  %v1468_v6 = vmul.f32 %v5174_v49, %v1325_v5  ;;  %v1320_v46 = vpop.permute.xlu0 %1319 }
 0x19f   :  { %v1600_v27 = vadd.f32 %v5197_v36, %v1529_v29  ;;  %v1467_v3 = vmul.f32 %v5174_v49, %v1320_v46 }
 0x1a0   :  { %v1665_v0 = vmax.f32 %v1601_v57, 0.0  ;;  %v1532_v10 = vadd.f32 %v1468_v6, %v1078_v48 }
 0x1a1   :  { %v1664_v60 = vmax.f32 %v1600_v27, 0.0  ;;  %v1531_v16 = vadd.f32 %v1467_v3, %v1077_v51  ;;  %v1335_v22 = vpop.permute.xlu1 %1334 }
 0x1a2   :  { %v1815_v38 = vmul.f32 %v4713_v41, %v1665_v0  ;;  %v1603_v14 = vadd.f32 %v5197_v36, %v1532_v10  ;;  %v1470_v25 = vmul.f32 %v5174_v49, %v1335_v22  ;;  %v1330_v30 = vpop.permute.xlu0 %1329  ;;  %v1713_v20 = vmul.f32 %v4669_v63, %v1665_v0 }
 0x1a3   :  { %v1814_v52 = vmul.f32 %v4713_v41, %v1664_v60  ;;  %v1602_v12 = vadd.f32 %v5197_v36, %v1531_v16  ;;  %v1469_v17 = vmul.f32 %v5174_v49, %v1330_v30  ;;  %v1712_v29 = vmul.f32 %v4669_v63, %v1664_v60 }
 0x1a4   :  { %v1847_v42 = vadd.f32 %v1815_v38, %v1779_v19  ;;  %v1667_v43 = vmax.f32 %v1603_v14, 0.0  ;;  %v1534_v39 = vadd.f32 %v1470_v25, %v1080_v23 }
 0x1a5   :  { %v1846_v37 = vadd.f32 %v1814_v52, %v1778_v8  ;;  %v1666_v24 = vmax.f32 %v1602_v12, 0.0  ;;  %v1533_v50 = vadd.f32 %v1469_v17, %v1079_v31  ;;  %v501_v13 = vpop.permute.xlu1 %500  ;;  %v2161_v17 = vmul.f32 %v5434_v21, %v2125_v32 }
 0x1a6   :  { %v1749_v44 = vmul.f32 %v4675_v1, %v1667_v43  ;;  %v5503_v59 = vadd.f32 %v5197_v36, %v1534_v39  ;;  %v496_v62 = vpop.permute.xlu0 %495  ;;  %v628_v58 = vmul.f32 %v5162_v47, %v501_v13 }
 0x1a7   :  { %v1748_v26 = vmul.f32 %v4675_v1, %v1666_v24  ;;  %v5507_v11 = vadd.f32 %v5197_v36, %v1533_v50  ;;  %v1868_v48 = vpack.c.bf16 %v1847_v42, %v1846_v37  ;;  %v2162_v50 = vmul.f32 %v5434_v21, %v2126_v35 }
 0x1a8   :  { %v1669_v33 = vmax.f32 %v5503_v59, 0.0  ;;  %v1781_v56 = vadd.f32 %v1749_v44, %v1713_v20  ;;  %v627_v32 = vmul.f32 %v5162_v47, %v496_v62 }
 0x1a9   :  { %v1668_v5 = vmax.f32 %v5507_v11, 0.0  ;;  %4043 = vmatprep.mubr.msk.bf16.mxu0 %vm1913_vm0, %v1868_v48  ;;  %v891_v51 = vpop.permute.xlu1 %890  ;;  %v1780_v46 = vadd.f32 %v1748_v26, %v1712_v29 }
 0x1aa   :  { %v1817_v57 = vmul.f32 %v4713_v41, %v1669_v33  ;;  %v886_v6 = vpop.permute.xlu0 %885  ;;  %v1018_v24 = vmul.f32 %v5151_v40, %v891_v51 }
 0x1ab   :  { %v1816_v28 = vmul.f32 %v4713_v41, %v1668_v5  ;;  %v1017_v44 = vmul.f32 %v5151_v40, %v886_v6 }
 0x1ac   :  { %v1849_v9 = vadd.f32 %v1817_v57, %v1781_v56  ;;  %v1082_v57 = vadd.f32 %v1018_v24, %v628_v58 }
 0x1ad   :  { %v1848_v27 = vadd.f32 %v1816_v28, %v1780_v46  ;;  %v511_v3 = vpop.permute.xlu1 %510  ;;  %v1081_v46 = vadd.f32 %v1017_v44, %v627_v32 }
 0x1ae   :  { %v506_v4 = vpop.permute.xlu0 %505 }
 0x1af   :  { %v1869_v34 = vpack.c.bf16 %v1849_v9, %v1848_v27 }
 0x1b1   :  { %v4029_v0 = vpop.f32.mrf.mxu0  ;;  %4044 = vmatmul.mubr.msk.bf16.gmra.mxu0 %vm1913_vm0, %v1869_v34  ;;  %v521_v10 = vpop.permute.xlu1 %520 }
 0x1b2   :  { %v5521_v19 = vpop.permute.xlu0 %515  ;;  %v5525_v8 = vadd.f32 %v4029_v0, %v5415_v61  ;;  %v632_v32 = vmul.f32 %v5162_v47, %v521_v10 }
 0x1b3   :  { %v2012_v23 = vpop.f32.mrf.mxu0 }
 0x1b4   :  { %v2013_v60 = vadd.f32 %v5415_v61, %v2012_v23  ;;  %v2129_v42 = vmax.f32 %v5525_v8, 0.0  ;;  %v4129_v8 = vld [vmem:[%s6384_s10 + $0x20] ss:$16 sps:$4 sm:$0xff]  }
 0x1b5   :  { %v4030_v16 = vpop.f32.mrf.mxu0  ;;  %v901_v22 = vpop.permute.xlu1 %900 }
 0x1b6   :  { %v2127_v38 = vmax.f32 %v2013_v60, 0.0  ;;  %v5528_v14 = vadd.f32 %v4030_v16, %v5415_v61  ;;  %v896_v25 = vpop.permute.xlu0 %895  ;;  %v2217_v29 = vmul.f32 %v5444_v7, %v2129_v42  ;;  %v1020_v16 = vmul.f32 %v5151_v40, %v901_v22 }
 0x1b7   :  { %v2015_v30 = vpop.f32.mrf.mxu0 }
 0x1b8   :  { %v2181_v31 = vmul.f32 %v5424_v15, %v2127_v38  ;;  %v2016_v52 = vadd.f32 %v5415_v61, %v2015_v30  ;;  %v2130_v43 = vmax.f32 %v5528_v14, 0.0 }
 0x1b9   :  { %v911_v12 = vpop.permute.xlu1 %910 }
 0x1ba   :  { %v2128_v39 = vmax.f32 %v2016_v52, 0.0  ;;  %v906_v37 = vpop.permute.xlu0 %905  ;;  %v2197_v26 = vadd.f32 %v2181_v31, %v2161_v17  ;;  %v2218_v55 = vmul.f32 %v5444_v7, %v2130_v43  ;;  %v1019_v31 = vmul.f32 %v5151_v40, %v896_v25 }
 0x1bb   :  { %v630_v52 = vmul.f32 %v5162_v47, %v511_v3  ;;  %v629_v17 = vmul.f32 %v5162_v47, %v506_v4  ;;  %v1715_v3 = vmul.f32 %v4669_v63, %v1669_v33  ;;  %v631_v4 = vmul.f32 %v5162_v47, %v5521_v19 }
 0x1bc   :  { %v2182_v48 = vmul.f32 %v5424_v15, %v2128_v39  ;;  %v2233_v13 = vadd.f32 %v2217_v29, %v2197_v26  ;;  %v1022_v39 = vmul.f32 %v5151_v40, %v911_v12  ;;  %v1021_v26 = vmul.f32 %v5151_v40, %v906_v37 }
 0x1bd   :  { %v1345_v20 = vpop.permute.xlu1 %1344  ;;  %v1084_v44 = vadd.f32 %v1020_v16, %v630_v52 }
 0x1be   :  { %v2198_v51 = vadd.f32 %v2182_v48, %v2162_v50  ;;  %v1472_v35 = vmul.f32 %v5174_v49, %v1345_v20  ;;  %v1340_v56 = vpop.permute.xlu0 %1339  ;;  %v1083_v20 = vadd.f32 %v1019_v31, %v629_v17  ;;  %v1086_v29 = vadd.f32 %v1022_v39, %v632_v32  ;;  %v4111_v32 = vld [vmem:[%s6384_s10 + $0xe0] ss:$16 sps:$4 sm:$0xff]  }
 0x1bf   :  { %v1471_v6 = vmul.f32 %v5174_v49, %v1340_v56  ;;  %v1085_v56 = vadd.f32 %v1021_v26, %v631_v4 }
 0x1c0   :  { %v2234_v28 = vadd.f32 %v2218_v55, %v2198_v51  ;;  %v1536_v62 = vadd.f32 %v1472_v35, %v1082_v57 }
 0x1c1   :  { %v531_v9 = vpop.permute.xlu1 %530  ;;  %v1535_v27 = vadd.f32 %v1471_v6, %v1081_v46 }
 0x1c2   :  { %v526_v34 = vpop.permute.xlu0 %525  ;;  %v2248_v0 = vpack.c.bf16 %v2234_v28, %v2233_v13  ;;  %v1607_v23 = vadd.f32 %v5197_v36, %v1536_v62  ;;  %v634_v33 = vmul.f32 %v5162_v47, %v531_v9  ;;  %v1714_v28 = vmul.f32 %v4669_v63, %v1668_v5 }
 0x1c3   :  { %v1606_v38 = vadd.f32 %v5197_v36, %v1535_v27  ;;  %v633_v62 = vmul.f32 %v5162_v47, %v526_v34 }
 0x1c4   :  { %2406 = vmatmul.mubr.bf16.gmra.mxu1 %v2248_v0  ;;  %v1671_v24 = vmax.f32 %v1607_v23, 0.0 }
 0x1c5   :  { %v921_v60 = vpop.permute.xlu1 %920  ;;  %2415 = vmatprep.mubr.bf16.mxu1 %v4270_v2  ;;  %v1670_v48 = vmax.f32 %v1606_v38, 0.0 }
 0x1c6   :  { %v916_v30 = vpop.permute.xlu0 %915  ;;  %v1751_v37 = vmul.f32 %v4675_v1, %v1671_v24  ;;  %v1024_v55 = vmul.f32 %v5151_v40, %v921_v60 }
 0x1c7   :  { %v1750_v10 = vmul.f32 %v4675_v1, %v1670_v48  ;;  %v1023_v19 = vmul.f32 %v5151_v40, %v916_v30 }
 0x1c8   :  { %v1783_v23 = vadd.f32 %v1751_v37, %v1715_v3  ;;  %v1088_v60 = vadd.f32 %v1024_v55, %v634_v33  ;;  %v4116_v55 = vld [vmem:[%s6384_s10 + $0xc4] ss:$16 sps:$4 sm:$0xff]  }
 0x1c9   :  { %v1355_v50 = vpop.permute.xlu1 %1354  ;;  %v1782_v9 = vadd.f32 %v1750_v10, %v1714_v28  ;;  %v1087_v11 = vadd.f32 %v1023_v19, %v633_v62  ;;  %v4117_v62 = vld [vmem:[%s6384_s10 + $0xa0] ss:$16 sps:$4 sm:$0xff]  }
 0x1ca   :  { %v1474_v58 = vmul.f32 %v5174_v49, %v1355_v50  ;;  %v1350_v22 = vpop.permute.xlu0 %1349 }
 0x1cb   :  { %v1473_v25 = vmul.f32 %v5174_v49, %v1350_v22 }
 0x1cc   :  { %v1538_v12 = vadd.f32 %v1474_v58, %v1084_v44  ;;  %v4113_v44 = vld [vmem:[%s6384_s10 + $0xe4] ss:$16 sps:$4 sm:$0xff]  }
 0x1cd   :  { %v1537_v51 = vadd.f32 %v1473_v25, %v1083_v20  ;;  %v1365_v35 = vpop.permute.xlu1 %1364  ;;  %3056 = vmatprep.subr.bf16.mxu0 %v4113_v44  ;;  %v4126_v44 = vld [vmem:[%s6384_s10 + $0x40] ss:$16 sps:$4 sm:$0xff]  }
 0x1ce   :  { %v1609_v57 = vadd.f32 %v5197_v36, %v1538_v12  ;;  %v1476_v59 = vmul.f32 %v5174_v49, %v1365_v35  ;;  %v1360_v6 = vpop.permute.xlu0 %1359  ;;  %3057 = vmatpush1.bf16.msra.mxu0 %v4111_v32 }
 0x1cf   :  { %v1608_v46 = vadd.f32 %v5197_v36, %v1537_v51  ;;  %v1475_v13 = vmul.f32 %v5174_v49, %v1360_v6  ;;  %3058 = vmatprep.subr.bf16.mxu0 %v4116_v55 }
 0x1d0   :  { %v1673_v27 = vmax.f32 %v1609_v57, 0.0  ;;  %v1540_v0 = vadd.f32 %v1476_v59, %v1086_v29 }
 0x1d1   :  { %v1672_v16 = vmax.f32 %v1608_v46, 0.0  ;;  %v1539_v38 = vadd.f32 %v1475_v13, %v1085_v56  ;;  %v1375_v31 = vpop.permute.xlu1 %1374  ;;  %v4119_v46 = vld [vmem:[%s6384_s10 + $0xa4] ss:$16 sps:$4 sm:$0xff]  }
 0x1d2   :  { %v1819_v40 = vmul.f32 %v4713_v41, %v1673_v27  ;;  %v1611_v30 = vadd.f32 %v5197_v36, %v1540_v0  ;;  %v1478_v52 = vmul.f32 %v5174_v49, %v1375_v31  ;;  %v1370_v17 = vpop.permute.xlu0 %1369  ;;  %v1717_v29 = vmul.f32 %v4669_v63, %v1673_v27  ;;  %v4125_v31 = vld [vmem:[%s6384_s10 + $0x64] ss:$16 sps:$4 sm:$0xff]  }
 0x1d3   :  { %v1818_v5 = vmul.f32 %v4713_v41, %v1672_v16  ;;  %v1610_v47 = vadd.f32 %v5197_v36, %v1539_v38  ;;  %v1477_v34 = vmul.f32 %v5174_v49, %v1370_v17  ;;  %v1716_v51 = vmul.f32 %v4669_v63, %v1672_v16  ;;  %v4120_v38 = vld [vmem:[%s6384_s10 + $0x80] ss:$16 sps:$4 sm:$0xff]   ;;  %v4128_v17 = vld [vmem:[%s6384_s10 + $0x44] ss:$16 sps:$4 sm:$0xff]  }
 0x1d4   :  { %v1851_v39 = vadd.f32 %v1819_v40, %v1783_v23  ;;  %v1675_v24 = vmax.f32 %v1611_v30, 0.0  ;;  %v1542_v50 = vadd.f32 %v1478_v52, %v1088_v60  ;;  %v4122_v23 = vld [vmem:[%s6384_s10 + $0x84] ss:$16 sps:$4 sm:$0xff]   ;;  %v4123_v30 = vld [vmem:[%s6384_s10 + $0x60] ss:$16 sps:$4 sm:$0xff]  }
 0x1d5   :  { %v1850_v26 = vadd.f32 %v1818_v5, %v1782_v9  ;;  %v1674_v48 = vmax.f32 %v1610_v47, 0.0  ;;  %v1541_v58 = vadd.f32 %v1477_v34, %v1087_v11  ;;  %v5592_v22 = vpop.permute.xlu1 %540 }
 0x1d6   :  { %v1753_v20 = vmul.f32 %v4675_v1, %v1675_v24  ;;  %v5599_v49 = vadd.f32 %v5197_v36, %v1542_v50  ;;  %v5601_v25 = vpop.permute.xlu0 %535 }
 0x1d7   :  { %v1752_v3 = vmul.f32 %v4675_v1, %v1674_v48  ;;  %v5605_v4 = vadd.f32 %v5197_v36, %v1541_v58  ;;  %v1870_v12 = vpack.c.bf16 %v1851_v39, %v1850_v26  ;;  %v4114_v36 = vld [vmem:[%s6384_s10 + $0xc0] ss:$16 sps:$4 sm:$0xff]   ;;  %v4131_v58 = vld [vmem:[%s6384_s10 + $0x24] ss:$16 sps:$4 sm:$0xff]  }
 0x1d8   :  { %v1677_v37 = vmax.f32 %v5599_v49, 0.0  ;;  %v1785_v10 = vadd.f32 %v1753_v20, %v1717_v29  ;;  %3059 = vmatpush1.bf16.msra.mxu0 %v4114_v36  ;;  %v2163_v20 = vmul.f32 %v5434_v21, %v2129_v42  ;;  %v2164_v42 = vmul.f32 %v5434_v21, %v2130_v43  ;;  %v4141_v49 = vld [vmem:[%s6384_s10 + $0x1a0] ss:$16 sps:$4 sm:$0xff]  }
 0x1d9   :  { %v1676_v35 = vmax.f32 %v5605_v4, 0.0  ;;  %4047 = vmatprep.mubr.msk.bf16.mxu0 %vm1913_vm0, %v1870_v12  ;;  %v931_v56 = vpop.permute.xlu1 %930  ;;  %v1784_v6 = vadd.f32 %v1752_v3, %v1716_v51  ;;  %3060 = vmatprep.subr.bf16.mxu0 %v4119_v46  ;;  %v5677_v51 = vld [vmem:[%s6397_s22 + $0x1] ss:$0 sm:$0xff] }
 0x1da   :  { %v1821_v57 = vmul.f32 %v4713_v41, %v1677_v37  ;;  %v926_v59 = vpop.permute.xlu0 %925  ;;  %v1026_v36 = vmul.f32 %v5677_v51, %v931_v56 }
 0x1db   :  { %v1820_v33 = vmul.f32 %v4713_v41, %v1676_v35 }
 0x1dc   :  { %v1853_v19 = vadd.f32 %v1821_v57, %v1785_v10  ;;  %3061 = vmatpush1.bf16.msra.mxu0 %v4117_v62  ;;  %v1025_v10 = vmul.f32 %v5677_v51, %v926_v59 }
 0x1dd   :  { %v1852_v13 = vadd.f32 %v1820_v33, %v1784_v6  ;;  %v5627_v28 = vpop.permute.xlu1 %550  ;;  %3062 = vmatprep.subr.bf16.mxu0 %v4122_v23  ;;  %v5691_v33 = vld [vmem:[%s6397_s22] ss:$0 sm:$0xff] }
 0x1de   :  { %v5632_v27 = vpop.permute.xlu0 %545  ;;  %v636_v56 = vmul.f32 %v5691_v33, %v5592_v22 }
 0x1df   :  { %v1871_v0 = vpack.c.bf16 %v1853_v19, %v1852_v13  ;;  %v635_v19 = vmul.f32 %v5691_v33, %v5601_v25  ;;  %v5706_v13 = vld [vmem:[%s6397_s22 + $0x2] ss:$0 sm:$0xff] }
 0x1e0   :  { %3063 = vmatpush1.bf16.msra.mxu0 %v4120_v38 }
 0x1e1   :  { %v4033_v60 = vpop.f32.mrf.mxu0  ;;  %4048 = vmatmul.mubr.msk.bf16.gmra.mxu0 %vm1913_vm0, %v1871_v0  ;;  %v5638_v16 = vpop.permute.xlu1 %560  ;;  %3064 = vmatprep.subr.bf16.mxu0 %v4125_v31  ;;  %v1090_v0 = vadd.f32 %v1026_v36, %v636_v56  ;;  %v1089_v23 = vadd.f32 %v1025_v10, %v635_v19  ;;  %v4134_v31 = vld [vmem:[%s6384_s10 + $0x4] ss:$16 sps:$4 sm:$0xff]   ;;  %v4138_v19 = vld [vmem:[%s6384_s10 + $0x1c0] ss:$16 sps:$4 sm:$0xff]  }
 0x1e2   :  { %v5646_v9 = vpop.permute.xlu0 %555  ;;  %v5656_v47 = vadd.f32 %v4033_v60, %v5415_v61  ;;  %v4140_v10 = vld [vmem:[%s6384_s10 + $0x1c4] ss:$16 sps:$4 sm:$0xff]  }
 0x1e3   :  { %v2028_v40 = vpop.f32.mrf.mxu0 }
 0x1e4   :  { %v2029_v52 = vadd.f32 %v5415_v61, %v2028_v40  ;;  %3065 = vmatpush1.bf16.msra.mxu0 %v4123_v30  ;;  %v2133_v3 = vmax.f32 %v5656_v47, 0.0 }
 0x1e5   :  { %v4034_v11 = vpop.f32.mrf.mxu0  ;;  %v941_v5 = vpop.permute.xlu1 %940  ;;  %3066 = vmatprep.subr.bf16.mxu0 %v4128_v17 }
 0x1e6   :  { %v2131_v34 = vmax.f32 %v2029_v52, 0.0  ;;  %v5659_v39 = vadd.f32 %v4034_v11, %v5415_v61  ;;  %v936_v24 = vpop.permute.xlu0 %935  ;;  %v2219_v43 = vmul.f32 %v5444_v7, %v2133_v3  ;;  %v4132_v52 = vld [vmem:[%s6384_s10] ss:$16 sps:$4 sm:$0xff]  }
 0x1e7   :  { %v2031_v50 = vpop.f32.mrf.mxu0 }
 0x1e8   :  { %v2183_v26 = vmul.f32 %v5424_v15, %v2131_v34  ;;  %v2032_v48 = vadd.f32 %v5415_v61, %v2031_v50  ;;  %v2134_v12 = vmax.f32 %v5659_v39, 0.0  ;;  %3067 = vmatpush1.bf16.msra.mxu0 %v4126_v44  ;;  %v4137_v50 = vld [vmem:[%s6384_s10 + $0x1e4] ss:$16 sps:$4 sm:$0xff]   ;;  %v5722_v44 = vld [vmem:[%s6376_s2] ss:$0 sm:$0xff] }
 0x1e9   :  { %v951_v32 = vpop.permute.xlu1 %950  ;;  %3068 = vmatprep.subr.bf16.mxu0 %v4131_v58  ;;  %v4135_v58 = vld [vmem:[%s6384_s10 + $0x1e0] ss:$16 sps:$4 sm:$0xff]   ;;  %v4161_v39 = vld [vmem:[%s6384_s10 + $0xec] ss:$16 sps:$4 sm:$0xff]  }
 0x1ea   :  { %v2132_v29 = vmax.f32 %v2032_v48, 0.0  ;;  %v946_v55 = vpop.permute.xlu0 %945  ;;  %v2199_v57 = vadd.f32 %v2183_v26, %v2163_v20  ;;  %v2220_v59 = vmul.f32 %v5444_v7, %v2134_v12  ;;  %v1028_v20 = vmul.f32 %v5677_v51, %v941_v5  ;;  %3129 = vmatprep.subr.bf16.mxu1 %v4161_v39 }
 0x1ec   :  { %v2184_v6 = vmul.f32 %v5424_v15, %v2132_v29  ;;  %3069 = vmatpush1.bf16.msra.mxu0 %v4129_v8  ;;  %v2235_v60 = vadd.f32 %v2219_v43, %v2199_v57  ;;  %v1027_v8 = vmul.f32 %v5677_v51, %v936_v24  ;;  %v637_v57 = vmul.f32 %v5691_v33, %v5632_v27 }
 0x1ed   :  { %v1385_v14 = vpop.permute.xlu1 %1384  ;;  %3070 = vmatprep.subr.bf16.mxu0 %v4134_v31 }
 0x1ee   :  { %v2200_v46 = vadd.f32 %v2184_v6, %v2164_v42  ;;  %v1480_v22 = vmul.f32 %v5706_v13, %v1385_v14  ;;  %v1380_v62 = vpop.permute.xlu0 %1379  ;;  %v638_v42 = vmul.f32 %v5691_v33, %v5627_v28  ;;  %v1030_v6 = vmul.f32 %v5677_v51, %v951_v32 }
 0x1ef   :  { %v1479_v25 = vmul.f32 %v5706_v13, %v1380_v62  ;;  %v1029_v14 = vmul.f32 %v5677_v51, %v946_v55  ;;  %v1091_v27 = vadd.f32 %v1027_v8, %v637_v57  ;;  %v639_v62 = vmul.f32 %v5691_v33, %v5646_v9 }
 0x1f0   :  { %v2236_v38 = vadd.f32 %v2220_v59, %v2200_v46  ;;  %v1544_v40 = vadd.f32 %v1480_v22, %v1090_v0  ;;  %3071 = vmatpush1.bf16.msra.mxu0 %v4132_v52  ;;  %v1092_v24 = vadd.f32 %v1028_v20, %v638_v42  ;;  %v640_v46 = vmul.f32 %v5691_v33, %v5638_v16  ;;  %v4143_v0 = vld [vmem:[%s6384_s10 + $0x1a4] ss:$16 sps:$4 sm:$0xff]  }
 0x1f1   :  { %v571_v30 = vpop.permute.xlu1 %570  ;;  %v1543_v17 = vadd.f32 %v1479_v25, %v1089_v23  ;;  %3072 = vmatprep.subr.bf16.mxu0 %v4137_v50  ;;  %v1719_v22 = vmul.f32 %v4669_v63, %v1677_v37  ;;  %v1093_v37 = vadd.f32 %v1029_v14, %v639_v62  ;;  %v1718_v20 = vmul.f32 %v4669_v63, %v1676_v35 }
 0x1f2   :  { %v566_v11 = vpop.permute.xlu0 %565  ;;  %v2249_v34 = vpack.c.bf16 %v2236_v38, %v2235_v60  ;;  %v1615_v26 = vadd.f32 %v5722_v44, %v1544_v40  ;;  %v1094_v25 = vadd.f32 %v1030_v6, %v640_v46 }
 0x1f3   :  { %v1614_v29 = vadd.f32 %v5722_v44, %v1543_v17  ;;  %v4146_v17 = vld [vmem:[%s6384_s10 + $0x184] ss:$16 sps:$4 sm:$0xff]  }
 0x1f4   :  { %2416 = vmatmul.mubr.bf16.gmra.mxu1 %v2249_v34  ;;  %3073 = vmatpush2.bf16.msra.mxu0 %v4135_v58  ;;  %v1679_v5 = vmax.f32 %v1615_v26, 0.0  ;;  %v642_v34 = vmul.f32 %v5691_v33, %v571_v30  ;;  %v4144_v58 = vld [vmem:[%s6384_s10 + $0x180] ss:$16 sps:$4 sm:$0xff]  }
 0x1f5   :  { %v961_v48 = vpop.permute.xlu1 %960  ;;  %2425 = vmatprep.mubr.bf16.mxu1 %v4270_v2  ;;  %v1678_v43 = vmax.f32 %v1614_v29, 0.0  ;;  %3074 = vmatprep.subr.bf16.mxu0 %v4140_v10  ;;  %v641_v29 = vmul.f32 %v5691_v33, %v566_v11 }
 0x1f6   :  { %v956_v36 = vpop.permute.xlu0 %955  ;;  %v1755_v23 = vmul.f32 %v4675_v1, %v1679_v5  ;;  %v1032_v16 = vmul.f32 %v5677_v51, %v961_v48 }
 0x1f7   :  { %v1754_v31 = vmul.f32 %v4675_v1, %v1678_v43  ;;  %v1031_v50 = vmul.f32 %v5677_v51, %v956_v36 }
 0x1f8   :  { %3075 = vmatpush2.bf16.msra.mxu0 %v4138_v19  ;;  %v1787_v30 = vadd.f32 %v1755_v23, %v1719_v22  ;;  %v1096_v51 = vadd.f32 %v1032_v16, %v642_v34  ;;  %v4147_v22 = vld [vmem:[%s6384_s10 + $0x160] ss:$16 sps:$4 sm:$0xff]  }
 0x1f9   :  { %v1395_v56 = vpop.permute.xlu1 %1394  ;;  %3076 = vmatprep.subr.bf16.mxu0 %v4143_v0  ;;  %v1786_v6 = vadd.f32 %v1754_v31, %v1718_v20 }
 0x1fa   :  { %v1482_v28 = vmul.f32 %v5706_v13, %v1395_v56  ;;  %v1390_v59 = vpop.permute.xlu0 %1389 }
 0x1fb   :  { %v1481_v32 = vmul.f32 %v5706_v13, %v1390_v59  ;;  %v4149_v59 = vld [vmem:[%s6384_s10 + $0x164] ss:$16 sps:$4 sm:$0xff]  }
 0x1fc   :  { %v1546_v55 = vadd.f32 %v1482_v28, %v1092_v24  ;;  %3077 = vmatpush2.bf16.msra.mxu0 %v4141_v49  ;;  %v1095_v24 = vadd.f32 %v1031_v50, %v641_v29  ;;  %v4152_v49 = vld [vmem:[%s6384_s10 + $0x144] ss:$16 sps:$4 sm:$0xff]  }
 0x1fd   :  { %v1545_v60 = vadd.f32 %v1481_v32, %v1091_v27  ;;  %v1405_v38 = vpop.permute.xlu1 %1404  ;;  %3078 = vmatprep.subr.bf16.mxu0 %v4146_v17  ;;  %v4153_v17 = vld [vmem:[%s6384_s10 + $0x120] ss:$16 sps:$4 sm:$0xff]  }
 0x1fe   :  { %v1617_v9 = vadd.f32 %v5722_v44, %v1546_v55  ;;  %v1484_v40 = vmul.f32 %v5706_v13, %v1405_v38  ;;  %v1400_v52 = vpop.permute.xlu0 %1399 }
 0x1ff   :  { %v1616_v26 = vadd.f32 %v5722_v44, %v1545_v60  ;;  %v1483_v48 = vmul.f32 %v5706_v13, %v1400_v52  ;;  %v4155_v52 = vld [vmem:[%s6384_s10 + $0x124] ss:$16 sps:$4 sm:$0xff]  }
 0x200   :  { %v1681_v8 = vmax.f32 %v1617_v9, 0.0  ;;  %v1548_v42 = vadd.f32 %v1484_v40, %v1094_v25  ;;  %3079 = vmatpush2.bf16.msra.mxu0 %v4144_v58 }
 0x201   :  { %v1680_v36 = vmax.f32 %v1616_v26, 0.0  ;;  %v1547_v10 = vadd.f32 %v1483_v48, %v1093_v37  ;;  %v1415_v57 = vpop.permute.xlu1 %1414  ;;  %3080 = vmatprep.subr.bf16.mxu0 %v4149_v59  ;;  %v4156_v26 = vld [vmem:[%s6384_s10 + $0x100] ss:$16 sps:$4 sm:$0xff]   ;;  %v4165_v59 = vld [vmem:[%s6384_s10 + $0xa8] ss:$16 sps:$4 sm:$0xff]  }
 0x202   :  { %v1823_v5 = vmul.f32 %v4713_v41, %v1681_v8  ;;  %v1619_v56 = vadd.f32 %v5722_v44, %v1548_v42  ;;  %v1486_v19 = vmul.f32 %v5706_v13, %v1415_v57  ;;  %v1410_v4 = vpop.permute.xlu0 %1409  ;;  %v1721_v23 = vmul.f32 %v4669_v63, %v1681_v8 }
 0x203   :  { %v1822_v35 = vmul.f32 %v4713_v41, %v1680_v36  ;;  %v1618_v33 = vadd.f32 %v5722_v44, %v1547_v10  ;;  %v1485_v11 = vmul.f32 %v5706_v13, %v1410_v4  ;;  %v1720_v60 = vmul.f32 %v4669_v63, %v1680_v36 }
 0x204   :  { %v1855_v14 = vadd.f32 %v1823_v5, %v1787_v30  ;;  %v1683_v43 = vmax.f32 %v1619_v56, 0.0  ;;  %v1550_v28 = vadd.f32 %v1486_v19, %v1096_v51  ;;  %3081 = vmatpush2.bf16.msra.mxu0 %v4147_v22  ;;  %v2165_v10 = vmul.f32 %v5434_v21, %v2133_v3  ;;  %v4171_v22 = vld [vmem:[%s6384_s10 + $0x68] ss:$16 sps:$4 sm:$0xff]  }
 0x205   :  { %v1854_v46 = vadd.f32 %v1822_v35, %v1786_v6  ;;  %v1682_v27 = vmax.f32 %v1618_v33, 0.0  ;;  %v1549_v32 = vadd.f32 %v1485_v11, %v1095_v24  ;;  %3082 = vmatprep.subr.bf16.mxu0 %v4152_v49  ;;  %v2166_v56 = vmul.f32 %v5434_v21, %v2134_v12  ;;  %v4159_v12 = vld [vmem:[%s6384_s10 + $0xe8] ss:$16 sps:$4 sm:$0xff]  }
 0x206   :  { %v1757_v62 = vmul.f32 %v4675_v1, %v1683_v43  ;;  %v1621_v55 = vadd.f32 %v5722_v44, %v1550_v28  ;;  %3130 = vmatpush1.bf16.msra.mxu1 %v4159_v12  ;;  %v4164_v43 = vld [vmem:[%s6384_s10 + $0xcc] ss:$16 sps:$4 sm:$0xff]  }
 0x207   :  { %v1756_v13 = vmul.f32 %v4675_v1, %v1682_v27  ;;  %v1620_v0 = vadd.f32 %v5722_v44, %v1549_v32  ;;  %v1872_v25 = vpack.c.bf16 %v1855_v14, %v1854_v46  ;;  %v4150_v1 = vld [vmem:[%s6384_s10 + $0x140] ss:$16 sps:$4 sm:$0xff]   ;;  %v4162_v14 = vld [vmem:[%s6384_s10 + $0xc8] ss:$16 sps:$4 sm:$0xff]   ;;  %3131 = vmatprep.subr.bf16.mxu1 %v4164_v43  ;;  %v4167_v28 = vld [vmem:[%s6384_s10 + $0xac] ss:$16 sps:$4 sm:$0xff]  }
 0x208   :  { %v1685_v16 = vmax.f32 %v1621_v55, 0.0  ;;  %v1789_v37 = vadd.f32 %v1757_v62, %v1721_v23  ;;  %3083 = vmatpush2.bf16.msra.mxu0 %v4150_v1  ;;  %v4170_v46 = vld [vmem:[%s6384_s10 + $0x8c] ss:$16 sps:$4 sm:$0xff]   ;;  %v4168_v27 = vld [vmem:[%s6384_s10 + $0x88] ss:$16 sps:$4 sm:$0xff]  }
 0x209   :  { %v1684_v38 = vmax.f32 %v1620_v0, 0.0  ;;  %4051 = vmatprep.mubr.msk.bf16.mxu0 %vm1913_vm0, %v1872_v25  ;;  %v1788_v44 = vadd.f32 %v1756_v13, %v1720_v60  ;;  %3084 = vmatprep.subr.bf16.mxu0 %v4155_v52  ;;  %v4173_v32 = vld [vmem:[%s6384_s10 + $0x6c] ss:$16 sps:$4 sm:$0xff]   ;;  %v4174_v55 = vld [vmem:[%s6384_s10 + $0x48] ss:$16 sps:$4 sm:$0xff]  }
 0x20a   :  { %v1825_v31 = vmul.f32 %v4713_v41, %v1685_v16  ;;  %3132 = vmatpush1.bf16.msra.mxu1 %v4162_v14  ;;  %v4176_v62 = vld [vmem:[%s6384_s10 + $0x4c] ss:$16 sps:$4 sm:$0xff]   ;;  %v4177_v25 = vld [vmem:[%s6384_s10 + $0x28] ss:$16 sps:$4 sm:$0xff]  }
 0x20b   :  { %v1824_v9 = vmul.f32 %v4713_v41, %v1684_v38  ;;  %v4158_v41 = vld [vmem:[%s6384_s10 + $0x104] ss:$16 sps:$4 sm:$0xff]   ;;  %3133 = vmatprep.subr.bf16.mxu1 %v4167_v28  ;;  %v4179_v0 = vld [vmem:[%s6384_s10 + $0x2c] ss:$16 sps:$4 sm:$0xff]   ;;  %v4180_v1 = vld [vmem:[%s6384_s10 + $0x8] ss:$16 sps:$4 sm:$0xff]  }
 0x20c   :  { %v1857_v40 = vadd.f32 %v1825_v31, %v1789_v37  ;;  %3085 = vmatpush2.bf16.msra.mxu0 %v4153_v17  ;;  %v4182_v16 = vld [vmem:[%s6384_s10 + $0xc] ss:$16 sps:$4 sm:$0xff]  }
 0x20d   :  { %v1856_v63 = vadd.f32 %v1824_v9, %v1788_v44  ;;  %3086 = vmatprep.subr.bf16.mxu0 %v4158_v41  ;;  %v4185_v9 = vld [vmem:[%s6384_s10 + $0x1ec] ss:$16 sps:$4 sm:$0xff]   ;;  %v4183_v41 = vld [vmem:[%s6384_s10 + $0x1e8] ss:$16 sps:$4 sm:$0xff]  }
 0x20e   :  { %3134 = vmatpush1.bf16.msra.mxu1 %v4165_v59 }
 0x20f   :  { %v1873_v34 = vpack.c.bf16 %v1857_v40, %v1856_v63  ;;  %3135 = vmatprep.subr.bf16.mxu1 %v4170_v46  ;;  %v5903_v63 = vld [vmem:[%s6379_s5] ss:$0 sm:$0xff] }
 0x210   :  { %3087 = vmatpush2.bf16.msra.mxu0 %v4156_v26  ;;  %v4188_v26 = vld [vmem:[%s6384_s10 + $0x1cc] ss:$16 sps:$4 sm:$0xff]  }
 0x211   :  { %v4037_v50 = vpop.f32.mrf.mxu0  ;;  %4052 = vmatmul.mubr.msk.bf16.gmra.mxu0 %vm1913_vm0, %v1873_v34 }
 0x212   :  { %v5820_v29 = vadd.f32 %v4037_v50, %v5415_v61  ;;  %3136 = vmatpush1.bf16.msra.mxu1 %v4168_v27 }
 0x213   :  { %v2044_v48 = vpop.f32.mrf.mxu0  ;;  %3137 = vmatprep.subr.bf16.mxu1 %v4173_v32 }
 0x214   :  { %v2045_v58 = vadd.f32 %v5415_v61, %v2044_v48  ;;  %v2137_v57 = vmax.f32 %v5820_v29, 0.0 }
 0x215   :  { %v4038_v20 = vpop.f32.mrf.mxu0 }
 0x216   :  { %v2135_v8 = vmax.f32 %v2045_v58, 0.0  ;;  %v5823_v42 = vadd.f32 %v4038_v20, %v5415_v61  ;;  %v2221_v24 = vmul.f32 %v5444_v7, %v2137_v57  ;;  %3138 = vmatpush1.bf16.msra.mxu1 %v4171_v22  ;;  %v2167_v52 = vmul.f32 %v5434_v21, %v2137_v57 }
 0x217   :  { %v2047_v30 = vpop.f32.mrf.mxu0  ;;  %3139 = vmatprep.subr.bf16.mxu1 %v4176_v62 }
 0x218   :  { %v2185_v51 = vmul.f32 %v5424_v15, %v2135_v8  ;;  %v2048_v36 = vadd.f32 %v5415_v61, %v2047_v30  ;;  %v2138_v6 = vmax.f32 %v5823_v42, 0.0  ;;  %v4191_v42 = vld [vmem:[%s6384_s10 + $0x1ac] ss:$16 sps:$4 sm:$0xff]  }
 0x21a   :  { %v2136_v5 = vmax.f32 %v2048_v36, 0.0  ;;  %v2201_v19 = vadd.f32 %v2185_v51, %v2165_v10  ;;  %v2222_v47 = vmul.f32 %v5444_v7, %v2138_v6  ;;  %3140 = vmatpush1.bf16.msra.mxu1 %v4174_v55  ;;  %v2168_v48 = vmul.f32 %v5434_v21, %v2138_v6  ;;  %v4186_v51 = vld [vmem:[%s6384_s10 + $0x1c8] ss:$16 sps:$4 sm:$0xff]  }
 0x21b   :  { %3141 = vmatprep.subr.bf16.mxu1 %v4179_v0  ;;  %v4189_v6 = vld [vmem:[%s6384_s10 + $0x1a8] ss:$16 sps:$4 sm:$0xff]  }
 0x21c   :  { %v2186_v4 = vmul.f32 %v5424_v15, %v2136_v5  ;;  %v2237_v3 = vadd.f32 %v2221_v24, %v2201_v19  ;;  %v4194_v5 = vld [vmem:[%s6384_s10 + $0x18c] ss:$16 sps:$4 sm:$0xff]   ;;  %v4198_v24 = vld [vmem:[%s6384_s10 + $0x148] ss:$16 sps:$4 sm:$0xff]  }
 0x21d   :  { %v4197_v19 = vld [vmem:[%s6384_s10 + $0x16c] ss:$16 sps:$4 sm:$0xff]  }
 0x21e   :  { %v2202_v35 = vadd.f32 %v2186_v4, %v2166_v56  ;;  %3142 = vmatpush1.bf16.msra.mxu1 %v4177_v25  ;;  %v4192_v56 = vld [vmem:[%s6384_s10 + $0x188] ss:$16 sps:$4 sm:$0xff]  }
 0x21f   :  { %3143 = vmatprep.subr.bf16.mxu1 %v4182_v16  ;;  %v4195_v4 = vld [vmem:[%s6384_s10 + $0x168] ss:$16 sps:$4 sm:$0xff]  }
 0x220   :  { %v2238_v33 = vadd.f32 %v2222_v47, %v2202_v35  ;;  %v4200_v47 = vld [vmem:[%s6384_s10 + $0x14c] ss:$16 sps:$4 sm:$0xff]  }
 0x221   :  { %v4203_v35 = vld [vmem:[%s6384_s10 + $0x12c] ss:$16 sps:$4 sm:$0xff]  }
 0x222   :  { %v2250_v11 = vpack.c.bf16 %v2238_v33, %v2237_v3  ;;  %3144 = vmatpush1.bf16.msra.mxu1 %v4180_v1  ;;  %v4201_v3 = vld [vmem:[%s6384_s10 + $0x128] ss:$16 sps:$4 sm:$0xff]   ;;  %v4206_v33 = vld [vmem:[%s6384_s10 + $0x10c] ss:$16 sps:$4 sm:$0xff]  }
 0x223   :  { %3145 = vmatprep.subr.bf16.mxu1 %v4185_v9 }
 0x224   :  { %2426 = vmatmul.mubr.bf16.gmra.mxu1 %v2250_v11  ;;  %v4204_v11 = vld [vmem:[%s6384_s10 + $0x108] ss:$16 sps:$4 sm:$0xff]  }
 0x225   :  { %2435 = vmatprep.mubr.bf16.mxu1 %v4270_v2 }
 0x226   :  { %3146 = vmatpush2.bf16.msra.mxu1 %v4183_v41  ;;  %v2508_v41 = vld [vmem:[%s6383_s9] sm:$0x77] }
 0x227   :  { %3147 = vmatprep.subr.bf16.mxu1 %v4188_v26 }
 0x22a   :  { %3148 = vmatpush2.bf16.msra.mxu1 %v4186_v51 }
 0x22b   :  { %3149 = vmatprep.subr.bf16.mxu1 %v4191_v42 }
 0x22e   :  { %3150 = vmatpush2.bf16.msra.mxu1 %v4189_v6 }
 0x22f   :  { %3151 = vmatprep.subr.bf16.mxu1 %v4194_v5 }
 0x232   :  { %3152 = vmatpush2.bf16.msra.mxu1 %v4192_v56 }
 0x233   :  { %3153 = vmatprep.subr.bf16.mxu1 %v4197_v19  ;;  %v2595_v19 = vrot.slane %v2508_v41, %v4696_v18 }
 0x236   :  { %3154 = vmatpush2.bf16.msra.mxu1 %v4195_v4 }
 0x237   :  { %3155 = vmatprep.subr.bf16.mxu1 %v4200_v47 }
 0x23a   :  { %3156 = vmatpush2.bf16.msra.mxu1 %v4198_v24 }
 0x23b   :  { %3157 = vmatprep.subr.bf16.mxu1 %v4203_v35 }
 0x23e   :  { %3158 = vmatpush2.bf16.msra.mxu1 %v4201_v3 }
 0x23f   :  { %3159 = vmatprep.subr.bf16.mxu1 %v4206_v33 }
 0x241   :  { %v4041_v13 = vpop.f32.mrf.mxu0 }
 0x242   :  { %v5888_v49 = vadd.f32 %v4041_v13, %v5415_v61  ;;  %3160 = vmatpush2.bf16.msra.mxu1 %v4204_v11 }
 0x243   :  { %v2060_v23 = vpop.f32.mrf.mxu0 }
 0x244   :  { %v2061_v60 = vadd.f32 %v5415_v61, %v2060_v23  ;;  %v2141_v17 = vmax.f32 %v5888_v49, 0.0 }
 0x245   :  { %v4042_v38 = vpop.f32.mrf.mxu0 }
 0x246   :  { %v2139_v37 = vmax.f32 %v2061_v60, 0.0  ;;  %v5891_v31 = vadd.f32 %v4042_v38, %v5415_v61  ;;  %v2223_v29 = vmul.f32 %v5444_v7, %v2141_v17  ;;  %v2169_v13 = vmul.f32 %v5434_v21, %v2141_v17 }
 0x247   :  { %v2063_v44 = vpop.f32.mrf.mxu0 }
 0x248   :  { %v2187_v40 = vmul.f32 %v5424_v15, %v2139_v37  ;;  %v2064_v61 = vadd.f32 %v5903_v63, %v2063_v44  ;;  %v2142_v34 = vmax.f32 %v5891_v31, 0.0  ;;  %v2271_v37 = vld [vmem:[%s6382_s8] sm:$0x3] }
 0x249   :  { %v5985_v9 = vrot.slane %v2271_v37, %v4656_v54 }
 0x24a   :  { %v2140_v50 = vmax.f32 %v2064_v61, 0.0  ;;  %v2203_v58 = vadd.f32 %v2187_v40, %v2167_v52  ;;  %v2224_v8 = vmul.f32 %v5444_v7, %v2142_v34  ;;  %v2170_v16 = vmul.f32 %v5434_v21, %v2142_v34 }
 0x24b   :  { %v2516_v40 = vsub.s32 4, %v4639_v45  ;;  %v2548_v61 = vsub.s32 5, %v4639_v45  ;;  %v5990_v34 = vrot.slane %v2271_v37, %v4653_v53 }
 0x24c   :  { %v2188_v20 = vmul.f32 %v5424_v15, %v2140_v50  ;;  %v2239_v36 = vadd.f32 %v2223_v29, %v2203_v58 }
 0x24d   :  { %v2517_v29 = vrot.slane %v2508_v41, %v2516_v40 }
 0x24e   :  { %v2204_v30 = vadd.f32 %v2188_v20, %v2168_v48  ;;  %v2598_v48 = vsub.s32 6, %v4639_v45 }
 0x24f   :  { %v6011_v47 = vrot.slane %v2517_v29, %v4653_v53 }
 0x250   :  { %v2240_v10 = vadd.f32 %v2224_v8, %v2204_v30  ;;  %v2549_v8 = vrot.slane %v2508_v41, %v2548_v61  ;;  %v2599_v6 = vrot.slane %v2508_v41, %v2598_v48 }
 0x252   :  { %v2251_v57 = vpack.c.bf16 %v2240_v10, %v2239_v36  ;;  %v2513_v10 = vrot.slane %v2508_v41, %v4653_v53  ;;  %v6014_v35 = vrot.slane %v2549_v8, %v4656_v54 }
 0x254   :  { %2436 = vmatmul.mubr.bf16.gmra.mxu1 %v2251_v57  ;;  %v2397_v43 = vpop.f32.mrf.mxu1  ;;  %v2545_v57 = vrot.slane %v2508_v41, %v4656_v54 }
 0x255   :  { %2445 = vmatprep.mubr.bf16.mxu1 %v4270_v2  ;;  %v2398_v36 = vadd.f32 %v2397_v43, %v5990_v34 }
 0x256   :  { %v2399_v55 = vpop.f32.mrf.mxu1 }
 0x257   :  { %v2400_v20 = vadd.f32 %v2399_v55, %v5985_v9  ;;  %v2476_v11 = vmax.f32 %v2398_v36, 0.0 }
 0x258   :  { %v2401_v49 = vpop.f32.mrf.mxu1 }
 0x259   :  { %v2402_v58 = vadd.f32 %v2401_v49, %v5990_v34  ;;  %v2477_v24 = vmax.f32 %v2400_v20, 0.0 }
 0x25a   :  { %v2403_v50 = vpop.f32.mrf.mxu1 }
 0x25b   :  { %v2404_v30 = vadd.f32 %v2403_v50, %v5985_v9  ;;  %v2478_v5 = vmax.f32 %v2402_v58, 0.0 }
 0x25d   :  { %v2479_v3 = vmax.f32 %v2404_v30, 0.0 }
 0x271   :  { %v4045_v39 = vpop.f32.mrf.mxu0 }
 0x272   :  { %v5963_v59 = vadd.f32 %v5903_v63, %v4045_v39  ;;  %v6017_v39 = vrot.slane %v2513_v10, %v4653_v53 }
 0x273   :  { %v2076_v12 = vpop.f32.mrf.mxu0 }
 0x274   :  { %v2077_v14 = vadd.f32 %v5903_v63, %v2076_v12  ;;  %v2145_v0 = vmax.f32 %v5963_v59, 0.0  ;;  %v6020_v12 = vrot.slane %v2545_v57, %v4656_v54 }
 0x275   :  { %v4046_v28 = vpop.f32.mrf.mxu0 }
 0x276   :  { %v2143_v46 = vmax.f32 %v2077_v14, 0.0  ;;  %v5966_v27 = vadd.f32 %v5903_v63, %v4046_v28  ;;  %v2225_v31 = vmul.f32 %v5444_v7, %v2145_v0  ;;  %v6027_v28 = vrot.slane %v2599_v6, %v4696_v18 }
 0x277   :  { %v2079_v32 = vpop.f32.mrf.mxu0  ;;  %v2560_v49 = vmul.f32 %v6020_v12, %v2476_v11 }
 0x278   :  { %v2189_v22 = vmul.f32 %v5424_v15, %v2143_v46  ;;  %v2080_v62 = vadd.f32 %v5903_v63, %v2079_v32  ;;  %v2146_v25 = vmax.f32 %v5966_v27, 0.0  ;;  %v2562_v32 = vmul.f32 %v6020_v12, %v2478_v5 }
 0x27a   :  { %v2144_v23 = vmax.f32 %v2080_v62, 0.0  ;;  %v2205_v60 = vadd.f32 %v2189_v22, %v2169_v13  ;;  %v2226_v1 = vmul.f32 %v5444_v7, %v2146_v25  ;;  %v6032_v62 = vrot.slane %v2595_v19, %v4696_v18 }
 0x27b   :  { %v2529_v13 = vmul.f32 0.0, %v6011_v47 }
 0x27c   :  { %v2190_v38 = vmul.f32 %v5424_v15, %v2144_v23  ;;  %v2241_v52 = vadd.f32 %v2225_v31, %v2205_v60  ;;  %v2561_v23 = vmul.f32 %v6014_v35, %v2477_v24  ;;  %v2171_v24 = vmul.f32 %v5434_v21, %v2145_v0 }
 0x27e   :  { %v2206_v44 = vadd.f32 %v2190_v38, %v2170_v16  ;;  %v2563_v16 = vmul.f32 %v6014_v35, %v2479_v3  ;;  %v2528_v38 = vmul.f32 0.0, %v6017_v39  ;;  %v2577_v61 = vadd.f32 %v2561_v23, %v2529_v13 }
 0x280   :  { %v2242_v17 = vadd.f32 %v2226_v1, %v2206_v44  ;;  %v2578_v44 = vadd.f32 %v2562_v32, %v2528_v38  ;;  %v2576_v50 = vadd.f32 %v2560_v49, %v2528_v38 }
 0x282   :  { %v2252_v26 = vpack.c.bf16 %v2242_v17, %v2241_v52  ;;  %v2579_v52 = vadd.f32 %v2563_v16, %v2529_v13 }
 0x284   :  { %v2407_v51 = vpop.f32.mrf.mxu1  ;;  %2446 = vmatmul.mubr.bf16.gmra.mxu1 %v2252_v26 }
 0x285   :  { %2455 = vmatprep.mubr.bf16.mxu1 %v4270_v2  ;;  %v6004_v56 = vadd.f32 %v2407_v51, %v5990_v34 }
 0x286   :  { %v2409_v42 = vpop.f32.mrf.mxu1 }
 0x287   :  { %v6008_v4 = vadd.f32 %v2409_v42, %v5985_v9  ;;  %v2480_v22 = vmax.f32 %v6004_v56, 0.0 }
 0x288   :  { %v2411_v33 = vpop.f32.mrf.mxu1 }
 0x289   :  { %v6023_v14 = vadd.f32 %v2411_v33, %v5990_v34  ;;  %v2481_v43 = vmax.f32 %v6008_v4, 0.0  ;;  %v2610_v40 = vmul.f32 %v6032_v62, %v2480_v22 }
 0x28a   :  { %v2413_v46 = vpop.f32.mrf.mxu1 }
 0x28b   :  { %v2482_v55 = vmax.f32 %v6023_v14, 0.0  ;;  %v6039_v60 = vadd.f32 %v2413_v46, %v5985_v9  ;;  %v2611_v31 = vmul.f32 %v6027_v28, %v2481_v43  ;;  %v2626_v58 = vadd.f32 %v2610_v40, %v2576_v50 }
 0x28c   :  { %v2172_v46 = vmul.f32 %v5434_v21, %v2146_v25  ;;  %v2531_v14 = vmul.f32 %v6011_v47, %v2481_v43 }
 0x28d   :  { %v2612_v37 = vmul.f32 %v6032_v62, %v2482_v55  ;;  %v2483_v1 = vmax.f32 %v6039_v60, 0.0  ;;  %v2627_v26 = vadd.f32 %v2611_v31, %v2577_v61 }
 0x28f   :  { %v2613_v17 = vmul.f32 %v6027_v28, %v2483_v1  ;;  %v2628_v41 = vadd.f32 %v2612_v37, %v2578_v44 }
 0x291   :  { %v2629_v48 = vadd.f32 %v2613_v17, %v2579_v52  ;;  %v6058_v29 = vpack.c.bf16 %v2628_v41, %v2626_v58 }
 0x293   :  { %v6056_v20 = vpack.c.bf16 %v2629_v48, %v2627_v26 }
 0x295   :  { %3088 = vmatprep.mubr.bf16.mxu0 %v6056_v20 }
 0x296   :  { %3089 = vmatmul.mubr.bf16.vlgmr.msra.gmra.mxu0 %v6058_v29 }
 0x2a1   :  { %v4049_v8 = vpop.f32.mrf.mxu0 }
 0x2a2   :  { %v2101_v10 = vadd.f32 %v5903_v63, %v4049_v8 }
 0x2a3   :  { %v2092_v30 = vpop.f32.mrf.mxu0 }
 0x2a4   :  { %v2093_v51 = vadd.f32 %v5903_v63, %v2092_v30  ;;  %v2149_v3 = vmax.f32 %v2101_v10, 0.0 }
 0x2a5   :  { %v4050_v36 = vpop.f32.mrf.mxu0 }
 0x2a6   :  { %v2147_v57 = vmax.f32 %v2093_v51, 0.0  ;;  %v2104_v42 = vadd.f32 %v5903_v63, %v4050_v36  ;;  %v2227_v23 = vmul.f32 %v5444_v7, %v2149_v3  ;;  %v2173_v48 = vmul.f32 %v5434_v21, %v2149_v3 }
 0x2a7   :  { %v2095_v6 = vpop.f32.mrf.mxu0 }
 0x2a8   :  { %v2191_v5 = vmul.f32 %v5424_v15, %v2147_v57  ;;  %v2096_v19 = vadd.f32 %v5903_v63, %v2095_v6  ;;  %v2150_v33 = vmax.f32 %v2104_v42, 0.0 }
 0x2aa   :  { %v2148_v11 = vmax.f32 %v2096_v19, 0.0  ;;  %v2207_v32 = vadd.f32 %v2191_v5, %v2171_v24  ;;  %v2228_v16 = vmul.f32 %v5444_v7, %v2150_v33  ;;  %v2174_v30 = vmul.f32 %v5434_v21, %v2150_v33 }
 0x2ac   :  { %v2192_v13 = vmul.f32 %v5424_v15, %v2148_v11  ;;  %v2243_v49 = vadd.f32 %v2227_v23, %v2207_v32 }
 0x2ae   :  { %v2208_v38 = vadd.f32 %v2192_v13, %v2172_v46 }
 0x2b0   :  { %v2244_v37 = vadd.f32 %v2228_v16, %v2208_v38 }
 0x2b2   :  { %v2253_v59 = vpack.c.bf16 %v2244_v37, %v2243_v49 }
 0x2b4   :  { %2456 = vmatmul.mubr.bf16.gmra.mxu1 %v2253_v59  ;;  %v2417_v44 = vpop.f32.mrf.mxu1 }
 0x2b5   :  { %2465 = vmatprep.mubr.bf16.mxu1 %v4270_v2 }
 0x2b6   :  { %v2419_v26 = vpop.f32.mrf.mxu1 }
 0x2b7   :  { %v2420_v46 = vadd.f32 %v2419_v26, %v5985_v9 }
 0x2b8   :  { %v2421_v10 = vpop.f32.mrf.mxu1 }
 0x2b9   :  { %v2422_v24 = vadd.f32 %v2421_v10, %v5990_v34  ;;  %v2485_v38 = vmax.f32 %v2420_v46, 0.0 }
 0x2ba   :  { %v2423_v3 = vpop.f32.mrf.mxu1 }
 0x2bb   :  { %v2424_v21 = vadd.f32 %v2423_v3, %v5985_v9  ;;  %v2486_v32 = vmax.f32 %v2422_v24, 0.0 }
 0x2bd   :  { %v2487_v49 = vmax.f32 %v2424_v21, 0.0 }
 0x2d1   :  { %v4053_v0 = vpop.f32.mrf.mxu0 }
 0x2d2   :  { %v2117_v40 = vadd.f32 %v5903_v63, %v4053_v0  ;;  %v2566_v0 = vmul.f32 %v6020_v12, %v2486_v32 }
 0x2d3   :  { %v2108_v31 = vpop.f32.mrf.mxu0 }
 0x2d4   :  { %v2109_v27 = vadd.f32 %v5903_v63, %v2108_v31  ;;  %v2153_v2 = vmax.f32 %v2117_v40, 0.0 }
 0x2d5   :  { %v4054_v25 = vpop.f32.mrf.mxu0 }
 0x2d6   :  { %v2151_v61 = vmax.f32 %v2109_v27, 0.0  ;;  %v2120_v52 = vadd.f32 %v5903_v63, %v4054_v25  ;;  %v2229_v57 = vmul.f32 %v5444_v7, %v2153_v2  ;;  %v2532_v25 = vmul.f32 %v6017_v39, %v2482_v55 }
 0x2d7   :  { %v2111_v17 = vpop.f32.mrf.mxu0 }
 0x2d8   :  { %v2193_v50 = vmul.f32 %v5424_v15, %v2151_v61  ;;  %v2112_v41 = vadd.f32 %v5903_v63, %v2111_v17  ;;  %v2154_v58 = vmax.f32 %v2120_v52, 0.0  ;;  %v2418_v63 = vadd.f32 %v2417_v44, %v5990_v34 }
 0x2d9   :  { %v2565_v52 = vmul.f32 %v6014_v35, %v2485_v38  ;;  %v2567_v17 = vmul.f32 %v6014_v35, %v2487_v49  ;;  %v2582_v26 = vadd.f32 %v2566_v0, %v2532_v25 }
 0x2da   :  { %v2152_v8 = vmax.f32 %v2112_v41, 0.0  ;;  %v2209_v51 = vadd.f32 %v2193_v50, %v2173_v48  ;;  %v2230_v42 = vmul.f32 %v5444_v7, %v2154_v58 }
 0x2dc   :  { %v2194_v36 = vmul.f32 %v5424_v15, %v2152_v8  ;;  %v2245_v5 = vadd.f32 %v2229_v57, %v2209_v51  ;;  %v2484_v15 = vmax.f32 %v2418_v63, 0.0 }
 0x2de   :  { %v2210_v6 = vadd.f32 %v2194_v36, %v2174_v30  ;;  %v2564_v59 = vmul.f32 %v6020_v12, %v2484_v15 }
 0x2e0   :  { %v2246_v19 = vadd.f32 %v2230_v42, %v2210_v6 }
 0x2e2   :  { %v2254_v11 = vpack.c.bf16 %v2246_v19, %v2245_v5 }
 0x2e4   :  { %v2427_v33 = vpop.f32.mrf.mxu1  ;;  %2466 = vmatmul.mubr.bf16.gmra.mxu1 %v2254_v11 }
 0x2e5   :  { %v6092_v13 = vadd.f32 %v2427_v33, %v5990_v34  ;;  %3161 = vmatprep.mubr.bf16.mxu1 %v6056_v20  ;;  %v2530_v20 = vmul.f32 %v6017_v39, %v2480_v22  ;;  %v2533_v22 = vmul.f32 %v6011_v47, %v2483_v1 }
 0x2e6   :  { %v2429_v7 = vpop.f32.mrf.mxu1 }
 0x2e7   :  { %v2488_v23 = vmax.f32 %v6092_v13, 0.0  ;;  %v6097_v16 = vadd.f32 %v2429_v7, %v5985_v9  ;;  %v2580_v41 = vadd.f32 %v2564_v59, %v2530_v20  ;;  %v2583_v8 = vadd.f32 %v2567_v17, %v2533_v22 }
 0x2e8   :  { %v2431_v37 = vpop.f32.mrf.mxu1 }
 0x2e9   :  { %v2432_v31 = vadd.f32 %v2431_v37, %v5990_v34  ;;  %v2489_v27 = vmax.f32 %v6097_v16, 0.0  ;;  %v2614_v40 = vmul.f32 %v6032_v62, %v2488_v23  ;;  %v2534_v0 = vmul.f32 %v6017_v39, %v2488_v23 }
 0x2ea   :  { %v2433_v44 = vpop.f32.mrf.mxu1 }
 0x2eb   :  { %v2490_v61 = vmax.f32 %v2432_v31, 0.0  ;;  %v2434_v50 = vadd.f32 %v2433_v44, %v5985_v9  ;;  %v2615_v55 = vmul.f32 %v6027_v28, %v2489_v27  ;;  %v2630_v2 = vadd.f32 %v2614_v40, %v2580_v41 }
 0x2ec   :  { %3162 = vmatmul.mubr.bf16.vlgmr.msra.gmra.mxu1 %v6058_v29  ;;  %v2581_v29 = vadd.f32 %v2565_v52, %v2531_v14 }
 0x2ed   :  { %v2616_v56 = vmul.f32 %v6032_v62, %v2490_v61  ;;  %v2491_v48 = vmax.f32 %v2434_v50, 0.0  ;;  %v2536_v31 = vmul.f32 %v6017_v39, %v2490_v61  ;;  %v2535_v61 = vmul.f32 %v6011_v47, %v2489_v27 }
 0x2ee   :  { %v2631_v36 = vadd.f32 %v2615_v55, %v2581_v29 }
 0x2ef   :  { %v2632_v58 = vadd.f32 %v2616_v56, %v2582_v26  ;;  %v2617_v30 = vmul.f32 %v6027_v28, %v2491_v48  ;;  %v2537_v41 = vmul.f32 %v6011_v47, %v2491_v48 }
 0x2f1   :  { %v2644_v51 = vpack.c.bf16 %v2632_v58, %v2630_v2  ;;  %v2633_v4 = vadd.f32 %v2617_v30, %v2583_v8 }
 0x2f3   :  { %v2645_v10 = vpack.c.bf16 %v2633_v4, %v2631_v36 }
 0x2f5   :  { %3098 = vmatprep.mubr.bf16.mxu0 %v2645_v10  ;;  %3171 = vmatprep.mubr.bf16.mxu1 %v2645_v10 }
 0x2f6   :  { %3099 = vmatmul.mubr.bf16.gmra.mxu0 %v2644_v51  ;;  %3172 = vmatmul.mubr.bf16.gmra.mxu1 %v2644_v51 }
 0x314   :  { %v2437_v43 = vpop.f32.mrf.mxu1 }
 0x315   :  { %v2438_v57 = vadd.f32 %v2437_v43, %v5990_v34 }
 0x316   :  { %v2439_v60 = vpop.f32.mrf.mxu1 }
 0x317   :  { %v2440_v5 = vadd.f32 %v2439_v60, %v5985_v9  ;;  %v2492_v24 = vmax.f32 %v2438_v57, 0.0  ;;  %v4207_v60 = vld [vmem:[%s6386_s12 + $0x78] sm:$0xff]  }
 0x318   :  { %v2441_v1 = vpop.f32.mrf.mxu1  ;;  %v4209_v57 = vld [vmem:[%s6386_s12 + $0x38] sm:$0xff]   ;;  %3960 = vmatprep.subr.bf16.mxu0 %v4207_v60  ;;  %v4228_v60 = vld [vmem:[%s6386_s12 + $0xd0] sm:$0xff]  }
 0x319   :  { %v2442_v42 = vadd.f32 %v2441_v1, %v5990_v34  ;;  %v2493_v15 = vmax.f32 %v2440_v5, 0.0  ;;  %v2568_v7 = vmul.f32 %v6020_v12, %v2492_v24  ;;  %v4208_v1 = vld [vmem:[%s6386_s12 + $0xf8] sm:$0xff]   ;;  %v4211_v5 = vld [vmem:[%s6386_s12 + $0x70] sm:$0xff]   ;;  %3961 = vmatpush3.bf16.msra.mxu0 %v4209_v57 }
 0x31a   :  { %v2443_v6 = vpop.f32.mrf.mxu1  ;;  %3982 = vmatprep.subr.bf16.mxu1 %v4208_v1  ;;  %3962 = vmatprep.subr.bf16.mxu0 %v4211_v5  ;;  %v4229_v1 = vld [vmem:[%s6386_s12 + $0x10] sm:$0xff]   ;;  %v4233_v5 = vld [vmem:[%s6386_s12 + $0x8] sm:$0xff]  }
 0x31b   :  { %v2444_v19 = vadd.f32 %v2443_v6, %v5985_v9  ;;  %v2494_v3 = vmax.f32 %v2442_v42, 0.0  ;;  %v2569_v25 = vmul.f32 %v6014_v35, %v2493_v15  ;;  %v2584_v17 = vadd.f32 %v2568_v7, %v2534_v0  ;;  %v4210_v6 = vld [vmem:[%s6386_s12 + $0xb8] sm:$0xff]   ;;  %v4213_v15 = vld [vmem:[%s6386_s12 + $0x30] sm:$0xff]  }
 0x31c   :  { %3983 = vmatpush3.bf16.msra.mxu1 %v4210_v6  ;;  %v4230_v57 = vld [vmem:[%s6386_s12 + $0x90] sm:$0xff]   ;;  %v4232_v6 = vld [vmem:[%s6386_s12 + $0xc8] sm:$0xff]  }
 0x31d   :  { %v2495_v32 = vmax.f32 %v2444_v19, 0.0  ;;  %v2570_v38 = vmul.f32 %v6020_v12, %v2494_v3  ;;  %v2585_v55 = vadd.f32 %v2569_v25, %v2535_v61  ;;  %v4212_v19 = vld [vmem:[%s6386_s12 + $0xf0] sm:$0xff]   ;;  %3963 = vmatpush3.bf16.msra.mxu0 %v4213_v15  ;;  %v4217_v61 = vld [vmem:[%s6386_s12 + $0x28] sm:$0xff]  }
 0x31e   :  { %3984 = vmatprep.subr.bf16.mxu1 %v4212_v19  ;;  %v4234_v19 = vld [vmem:[%s6386_s12 + $0x88] sm:$0xff]  }
 0x31f   :  { %v2571_v40 = vmul.f32 %v6014_v35, %v2495_v32  ;;  %v2586_v50 = vadd.f32 %v2570_v38, %v2536_v31  ;;  %v4214_v32 = vld [vmem:[%s6386_s12 + $0xb0] sm:$0xff]   ;;  %v4215_v38 = vld [vmem:[%s6386_s12 + $0x68] sm:$0xff]  }
 0x320   :  { %3985 = vmatpush3.bf16.msra.mxu1 %v4214_v32  ;;  %3964 = vmatprep.subr.bf16.mxu0 %v4215_v38 }
 0x321   :  { %v2587_v2 = vadd.f32 %v2571_v40, %v2537_v41  ;;  %v4218_v41 = vld [vmem:[%s6386_s12 + $0xa8] sm:$0xff]   ;;  %3965 = vmatpush3.bf16.msra.mxu0 %v4217_v61  ;;  %v2714_v61 = vld [vmem:[%s6385_s11] sm:$0xf] }
 0x344   :  { %v2447_v63 = vpop.f32.mrf.mxu1 }
 0x345   :  { %v6130_v11 = vadd.f32 %v2447_v63, %v5990_v34 }
 0x346   :  { %v2449_v46 = vpop.f32.mrf.mxu1 }
 0x347   :  { %v2496_v21 = vmax.f32 %v6130_v11, 0.0  ;;  %v6134_v33 = vadd.f32 %v2449_v46, %v5985_v9 }
 0x348   :  { %v2451_v13 = vpop.f32.mrf.mxu1 }
 0x349   :  { %v6139_v49 = vadd.f32 %v2451_v13, %v5990_v34  ;;  %v2497_v37 = vmax.f32 %v6134_v33, 0.0  ;;  %v2618_v44 = vmul.f32 %v6032_v62, %v2496_v21  ;;  %v4222_v33 = vld [vmem:[%s6386_s12 + $0xa0] sm:$0xff]  }
 0x34a   :  { %v2453_v59 = vpop.f32.mrf.mxu1 }
 0x34b   :  { %v2498_v20 = vmax.f32 %v6139_v49, 0.0  ;;  %v6151_v52 = vadd.f32 %v2453_v59, %v5985_v9  ;;  %v2619_v26 = vmul.f32 %v6027_v28, %v2497_v37  ;;  %v2634_v14 = vadd.f32 %v2618_v44, %v2584_v17  ;;  %v4216_v59 = vld [vmem:[%s6386_s12 + $0xe8] sm:$0xff]  }
 0x34c   :  { %3986 = vmatprep.subr.bf16.mxu1 %v4216_v59 }
 0x34d   :  { %v2620_v23 = vmul.f32 %v6032_v62, %v2498_v20  ;;  %v2499_v56 = vmax.f32 %v6151_v52, 0.0  ;;  %v2635_v16 = vadd.f32 %v2619_v26, %v2585_v55  ;;  %v2538_v26 = vmul.f32 %v6017_v39, %v2496_v21  ;;  %v4220_v55 = vld [vmem:[%s6386_s12 + $0xe0] sm:$0xff]   ;;  %3987 = vmatpush3.bf16.msra.mxu1 %v4218_v41 }
 0x34e   :  { %3988 = vmatprep.subr.bf16.mxu1 %v4220_v55  ;;  %v2730_v41 = vsub.s32 3, %v4639_v45 }
 0x34f   :  { %v2636_v22 = vadd.f32 %v2620_v23, %v2586_v50  ;;  %v2621_v58 = vmul.f32 %v6027_v28, %v2499_v56 }
 0x350   :  { %v6304_v55 = vrot.slane %v2714_v61, %v2730_v41 }
 0x351   :  { %v2646_v29 = vpack.c.bf16 %v2636_v22, %v2634_v14  ;;  %v2637_v8 = vadd.f32 %v2621_v58, %v2587_v2  ;;  %v4219_v22 = vld [vmem:[%s6386_s12 + $0x60] sm:$0xff]   ;;  %v2541_v2 = vmul.f32 %v6011_v47, %v2499_v56  ;;  %3989 = vmatpush3.bf16.msra.mxu1 %v4222_v33 }
 0x352   :  { %3966 = vmatprep.subr.bf16.mxu0 %v4219_v22  ;;  %v6302_v22 = vrot.slane %v2714_v61, %v4696_v18 }
 0x353   :  { %v2647_v27 = vpack.c.bf16 %v2637_v8, %v2635_v16 }
 0x355   :  { %3108 = vmatprep.mubr.bf16.mxu0 %v2647_v27  ;;  %3181 = vmatprep.mubr.bf16.mxu1 %v2647_v27 }
 0x356   :  { %3109 = vmatmul.mubr.bf16.gmra.mxu0 %v2646_v29  ;;  %3182 = vmatmul.mubr.bf16.gmra.mxu1 %v2646_v29  ;;  %v3090_v15 = vpop.f32.mrf.mxu0 }
 0x374   :  { %v2457_v48 = vpop.f32.mrf.mxu1 }
 0x375   :  { %v2458_v36 = vadd.f32 %v2457_v48, %v5990_v34 }
 0x376   :  { %v2459_v30 = vpop.f32.mrf.mxu1 }
 0x377   :  { %v2460_v43 = vadd.f32 %v2459_v30, %v5985_v9  ;;  %v2500_v63 = vmax.f32 %v2458_v36, 0.0  ;;  %v4223_v36 = vld [vmem:[%s6386_s12 + $0x58] sm:$0xff]  }
 0x378   :  { %v2461_v51 = vpop.f32.mrf.mxu1 }
 0x379   :  { %v2462_v10 = vadd.f32 %v2461_v51, %v5990_v34  ;;  %v2501_v13 = vmax.f32 %v2460_v43, 0.0  ;;  %v2572_v25 = vmul.f32 %v6020_v12, %v2500_v63  ;;  %v4227_v43 = vld [vmem:[%s6386_s12 + $0x50] sm:$0xff]   ;;  %v4235_v63 = vld [vmem:[%s6386_s12 + $0x40] sm:$0xff]  }
 0x37a   :  { %v2463_v4 = vpop.f32.mrf.mxu1 }
 0x37b   :  { %v2464_v42 = vadd.f32 %v2463_v4, %v5985_v9  ;;  %v2502_v3 = vmax.f32 %v2462_v10, 0.0  ;;  %v2588_v58 = vadd.f32 %v2572_v25, %v2538_v26  ;;  %v4224_v4 = vld [vmem:[%s6386_s12 + $0xd8] sm:$0xff]   ;;  %v6296_v26 = vrot.slane %v2714_v61, %v4653_v53 }
 0x37c   :  { %v4226_v10 = vld [vmem:[%s6386_s12 + $0x98] sm:$0xff]   ;;  %3990 = vmatprep.subr.bf16.mxu1 %v4224_v4 }
 0x37d   :  { %v2503_v0 = vmax.f32 %v2464_v42, 0.0  ;;  %v2574_v17 = vmul.f32 %v6020_v12, %v2502_v3  ;;  %v2540_v12 = vmul.f32 %v6017_v39, %v2498_v20  ;;  %v2539_v20 = vmul.f32 %v6011_v47, %v2497_v37  ;;  %3991 = vmatpush3.bf16.msra.mxu1 %v4226_v10  ;;  %v4231_v42 = vld [vmem:[%s6386_s12 + $0x48] sm:$0xff]   ;;  %v4237_v3 = vld [vmem:[%s6386_s12] sm:$0xff]  }
 0x37e   :  { %3992 = vmatprep.subr.bf16.mxu1 %v4228_v60 }
 0x37f   :  { %v2575_v11 = vmul.f32 %v6014_v35, %v2503_v0  ;;  %v2590_v29 = vadd.f32 %v2574_v17, %v2540_v12  ;;  %v6299_v12 = vrot.slane %v2714_v61, %v4656_v54 }
 0x381   :  { %v2591_v47 = vadd.f32 %v2575_v11, %v2541_v2  ;;  %3993 = vmatpush3.bf16.msra.mxu1 %v4230_v57 }
 0x382   :  { %3994 = vmatprep.subr.bf16.mxu1 %v4232_v6 }
 0x385   :  { %3995 = vmatpush3.bf16.msra.mxu1 %v4234_v19 }
 0x3a4   :  { %v2467_v24 = vpop.f32.mrf.mxu1 }
 0x3a5   :  { %v2468_v46 = vadd.f32 %v2467_v24, %v5990_v34  ;;  %v4236_v24 = vld [vmem:[%s6386_s12 + $0xc0] sm:$0xff]  }
 0x3a6   :  { %v2469_v7 = vpop.f32.mrf.mxu1  ;;  %3996 = vmatprep.subr.bf16.mxu1 %v4236_v24 }
 0x3a7   :  { %v2504_v31 = vmax.f32 %v2468_v46, 0.0  ;;  %v2470_v44 = vadd.f32 %v2469_v7, %v5985_v9  ;;  %v4238_v46 = vld [vmem:[%s6386_s12 + $0x80] sm:$0xff]  }
 0x3a8   :  { %v2471_v40 = vpop.f32.mrf.mxu1  ;;  %3997 = vmatpush3.bf16.msra.mxu1 %v4238_v46 }
 0x3a9   :  { %v2505_v50 = vmax.f32 %v2470_v44, 0.0  ;;  %v2472_v23 = vadd.f32 %v2471_v40, %v5990_v34  ;;  %v2573_v34 = vmul.f32 %v6014_v35, %v2501_v13  ;;  %v2622_v21 = vmul.f32 %v6032_v62, %v2504_v31  ;;  %v3092_v13 = vpop.f32.mrf.mxu0 }
 0x3aa   :  { %v2473_v14 = vpop.f32.mrf.mxu1 }
 0x3ab   :  { %v2506_v49 = vmax.f32 %v2472_v23, 0.0  ;;  %v2474_v39 = vadd.f32 %v2473_v14, %v5985_v9  ;;  %v2623_v16 = vmul.f32 %v6027_v28, %v2505_v50  ;;  %v4221_v9 = vld [vmem:[%s6386_s12 + $0x20] sm:$0xff]   ;;  %v2589_v37 = vadd.f32 %v2573_v34, %v2539_v20  ;;  %v3094_v38 = vpop.f32.mrf.mxu0 }
 0x3ac   :  { %v2638_v52 = vadd.f32 %v2622_v21, %v2588_v58  ;;  %3967 = vmatpush3.bf16.msra.mxu0 %v4221_v9  ;;  %v3163_v32 = vpop.f32.mrf.mxu1  ;;  %v3095_v45 = vadd.f32 %v3094_v38, %v6296_v26 }
 0x3ad   :  { %v2624_v8 = vmul.f32 %v6032_v62, %v2506_v49  ;;  %v2507_v35 = vmax.f32 %v2474_v39, 0.0  ;;  %v2639_v62 = vadd.f32 %v2623_v16, %v2589_v37  ;;  %3968 = vmatprep.subr.bf16.mxu0 %v4223_v36  ;;  %v3096_v0 = vpop.f32.mrf.mxu0  ;;  %v3091_v49 = vadd.f32 %v3090_v15, %v6296_v26 }
 0x3ae   :  { %v3165_v7 = vpop.f32.mrf.mxu1  ;;  %v3093_v39 = vadd.f32 %v3092_v13, %v6299_v12  ;;  %v6310_v53 = vadd.f32 %v3096_v0, %v6299_v12  ;;  %v3164_v54 = vadd.f32 %v3163_v32, %v6302_v22 }
 0x3af   :  { %v2640_v56 = vadd.f32 %v2624_v8, %v2590_v29  ;;  %v2625_v27 = vmul.f32 %v6027_v28, %v2507_v35  ;;  %v4225_v28 = vld [vmem:[%s6386_s12 + $0x18] sm:$0xff]   ;;  %v3166_v20 = vadd.f32 %v3165_v7, %v6304_v55  ;;  %v3202_v35 = vmax.f32 %v3091_v49, 0.0 }
 0x3b0   :  { %3969 = vmatpush3.bf16.msra.mxu0 %v4225_v28  ;;  %v3167_v59 = vpop.f32.mrf.mxu1  ;;  %v3203_v9 = vmax.f32 %v3093_v39, 0.0 }
 0x3b1   :  { %v2641_v48 = vadd.f32 %v2625_v27, %v2591_v47  ;;  %v2648_v30 = vpack.c.bf16 %v2640_v56, %v2638_v52  ;;  %3970 = vmatprep.subr.bf16.mxu0 %v4227_v43  ;;  %v3168_v33 = vadd.f32 %v3167_v59, %v6302_v22  ;;  %v3206_v56 = vmax.f32 %v3095_v45, 0.0 }
 0x3b2   :  { %v3169_v31 = vpop.f32.mrf.mxu1  ;;  %v3207_v27 = vmax.f32 %v6310_v53, 0.0 }
 0x3b3   :  { %v2649_v51 = vpack.c.bf16 %v2641_v48, %v2639_v62  ;;  %v3170_v37 = vadd.f32 %v3169_v31, %v6304_v55  ;;  %v3204_v62 = vmax.f32 %v3164_v54, 0.0  ;;  %v3205_v48 = vmax.f32 %v3166_v20, 0.0 }
 0x3b4   :  { %3971 = vmatpush3.bf16.msra.mxu0 %v4229_v1 }
 0x3b5   :  { %3118 = vmatprep.mubr.bf16.mxu0 %v2649_v51  ;;  %3191 = vmatprep.mubr.bf16.mxu1 %v2649_v51  ;;  %v3209_v6 = vmax.f32 %v3170_v37, 0.0 }
 0x3b6   :  { %3119 = vmatmul.mubr.bf16.gmra.mxu0 %v2648_v30  ;;  %3192 = vmatmul.mubr.bf16.gmra.mxu1 %v2648_v30  ;;  %v3100_v44 = vpop.f32.mrf.mxu0  ;;  %v3173_v25 = vpop.f32.mrf.mxu1 }
 0x3b7   :  { %3972 = vmatprep.subr.bf16.mxu0 %v4231_v42  ;;  %v3101_v58 = vadd.f32 %v3100_v44, %v6296_v26  ;;  %v3174_v29 = vadd.f32 %v3173_v25, %v6302_v22  ;;  %v3208_v42 = vmax.f32 %v3168_v33, 0.0 }
 0x3b8   :  { %3973 = vmatpush3.bf16.msra.mxu0 %v4233_v5  ;;  %v3102_v40 = vpop.f32.mrf.mxu0  ;;  %v3175_v17 = vpop.f32.mrf.mxu1 }
 0x3b9   :  { %3974 = vmatprep.subr.bf16.mxu0 %v4235_v63  ;;  %v3103_v16 = vadd.f32 %v3102_v40, %v6299_v12  ;;  %v3176_v8 = vadd.f32 %v3175_v17, %v6304_v55  ;;  %v3210_v36 = vmax.f32 %v3101_v58, 0.0  ;;  %v3212_v4 = vmax.f32 %v3174_v29, 0.0 }
 0x3ba   :  { %v3104_v50 = vpop.f32.mrf.mxu0  ;;  %v3177_v23 = vpop.f32.mrf.mxu1 }
 0x3bb   :  { %v3105_v47 = vadd.f32 %v3104_v50, %v6296_v26  ;;  %v3178_v52 = vadd.f32 %v3177_v23, %v6302_v22  ;;  %v3211_v28 = vmax.f32 %v3103_v16, 0.0  ;;  %v3213_v10 = vmax.f32 %v3176_v8, 0.0 }
 0x3bc   :  { %3975 = vmatpush3.bf16.msra.mxu0 %v4237_v3  ;;  %v3106_v34 = vpop.f32.mrf.mxu0  ;;  %v3179_v14 = vpop.f32.mrf.mxu1  ;;  %v3234_v13 = vadd.f32 %v3210_v36, %v3202_v35  ;;  %v3240_v7 = vadd.f32 %v3212_v4, %v3204_v62 }
 0x3bd   :  { %v3107_v43 = vadd.f32 %v3106_v34, %v6299_v12  ;;  %v3180_v60 = vadd.f32 %v3179_v14, %v6304_v55  ;;  %v3214_v5 = vmax.f32 %v3105_v47, 0.0  ;;  %v3216_v19 = vmax.f32 %v3178_v52, 0.0 }
 0x3be   :  { %v3237_v38 = vadd.f32 %v3211_v28, %v3203_v9  ;;  %v3243_v59 = vadd.f32 %v3213_v10, %v3205_v48 }
 0x3bf   :  { %v3215_v0 = vmax.f32 %v3107_v43, 0.0  ;;  %v3217_v31 = vmax.f32 %v3180_v60, 0.0  ;;  %v3246_v50 = vadd.f32 %v3214_v5, %v3206_v56  ;;  %v3252_v23 = vadd.f32 %v3216_v19, %v3208_v42 }
 0x416   :  { %v3110_v11 = vpop.f32.mrf.mxu0  ;;  %v3183_v21 = vpop.f32.mrf.mxu1 }
 0x417   :  { %v3111_v1 = vadd.f32 %v3110_v11, %v6296_v26  ;;  %v3184_v57 = vadd.f32 %v3183_v21, %v6302_v22 }
 0x418   :  { %v3112_v2 = vpop.f32.mrf.mxu0  ;;  %v3185_v18 = vpop.f32.mrf.mxu1 }
 0x419   :  { %v3113_v63 = vadd.f32 %v3112_v2, %v6299_v12  ;;  %v3186_v24 = vadd.f32 %v3185_v18, %v6304_v55  ;;  %v3218_v44 = vmax.f32 %v3111_v1, 0.0  ;;  %v3220_v25 = vmax.f32 %v3184_v57, 0.0 }
 0x41a   :  { %v3114_v30 = vpop.f32.mrf.mxu0  ;;  %v3187_v51 = vpop.f32.mrf.mxu1  ;;  %v3249_v2 = vadd.f32 %v3215_v0, %v3207_v27  ;;  %v3255_v18 = vadd.f32 %v3217_v31, %v3209_v6 }
 0x41b   :  { %v3115_v3 = vadd.f32 %v3114_v30, %v6296_v26  ;;  %v3188_v46 = vadd.f32 %v3187_v51, %v6302_v22  ;;  %v3219_v34 = vmax.f32 %v3113_v63, 0.0  ;;  %v3221_v14 = vmax.f32 %v3186_v24, 0.0 }
 0x41c   :  { %v3116_v15 = vpop.f32.mrf.mxu0  ;;  %v3189_v32 = vpop.f32.mrf.mxu1  ;;  %v3235_v58 = vadd.f32 %v3234_v13, %v3218_v44  ;;  %v3241_v29 = vadd.f32 %v3240_v7, %v3220_v25 }
 0x41d   :  { %v3117_v61 = vadd.f32 %v3116_v15, %v6299_v12  ;;  %v3190_v41 = vadd.f32 %v3189_v32, %v6304_v55  ;;  %v3222_v11 = vmax.f32 %v3115_v3, 0.0  ;;  %v3224_v21 = vmax.f32 %v3188_v46, 0.0 }
 0x41e   :  { %v3238_v47 = vadd.f32 %v3237_v38, %v3219_v34  ;;  %v3244_v52 = vadd.f32 %v3243_v59, %v3221_v14 }
 0x41f   :  { %v3223_v35 = vmax.f32 %v3117_v61, 0.0  ;;  %v3225_v9 = vmax.f32 %v3190_v41, 0.0  ;;  %v3247_v51 = vadd.f32 %v3246_v50, %v3222_v11  ;;  %v3253_v36 = vadd.f32 %v3252_v23, %v3224_v21  ;;  %v3616_v50 = vld [vmem:[%s6389_s15 + $0x18] sm:$0xff]  ;;  %v3615_v23 = vld [vmem:[%s6389_s15 + $0x10] sm:$0xff]  ;;  %v3614_v61 = vld [vmem:[%s6389_s15 + $0x8] sm:$0xff] }
 0x420   :  { %v3613_v41 = vld [vmem:[%s6389_s15] sm:$0xff] }
 0x421   :  { %v3250_v1 = vadd.f32 %v3249_v2, %v3223_v35  ;;  %v3256_v57 = vadd.f32 %v3255_v18, %v3225_v9 }
 0x476   :  { %v3120_v40 = vpop.f32.mrf.mxu0  ;;  %v3193_v17 = vpop.f32.mrf.mxu1 }
 0x477   :  { %v3121_v45 = vadd.f32 %v3120_v40, %v6296_v26  ;;  %v3194_v53 = vadd.f32 %v3193_v17, %v6302_v22  ;;  %v3618_v40 = vld [vmem:[%s6389_s15 + $0x28] sm:$0xff]  ;;  %v3617_v17 = vld [vmem:[%s6389_s15 + $0x20] sm:$0xff] }
 0x478   :  { %v3122_v49 = vpop.f32.mrf.mxu0  ;;  %v3195_v39 = vpop.f32.mrf.mxu1  ;;  %4055 = vmatprep.subr.mxu0 %v3618_v40 }
 0x479   :  { %v3123_v54 = vadd.f32 %v3122_v49, %v6299_v12  ;;  %v3196_v20 = vadd.f32 %v3195_v39, %v6304_v55  ;;  %v3226_v27 = vmax.f32 %v3121_v45, 0.0  ;;  %v3228_v4 = vmax.f32 %v3194_v53, 0.0  ;;  %v3609_v45 = vld [vmem:[%s6388_s14] sm:$0xff] }
 0x47a   :  { %v3124_v16 = vpop.f32.mrf.mxu0  ;;  %v3197_v8 = vpop.f32.mrf.mxu1 }
 0x47b   :  { %v3227_v33 = vmax.f32 %v3123_v54, 0.0  ;;  %v3229_v37 = vmax.f32 %v3196_v20, 0.0  ;;  %v3125_v56 = vadd.f32 %v3124_v16, %v6296_v26  ;;  %v3198_v62 = vadd.f32 %v3197_v8, %v6302_v22  ;;  %v3610_v8 = vld [vmem:[%s6388_s14 + $0x8] sm:$0xff] }
 0x47c   :  { %v3126_v48 = vpop.f32.mrf.mxu0  ;;  %v3199_v30 = vpop.f32.mrf.mxu1  ;;  %v3236_v63 = vadd.f32 %v3235_v58, %v3226_v27  ;;  %v3242_v24 = vadd.f32 %v3241_v29, %v3228_v4 }
 0x47d   :  { %v3230_v28 = vmax.f32 %v3125_v56, 0.0  ;;  %v3232_v10 = vmax.f32 %v3198_v62, 0.0  ;;  %v3127_v43 = vadd.f32 %v3126_v48, %v6299_v12  ;;  %v3200_v60 = vadd.f32 %v3199_v30, %v6304_v55  ;;  %v3938_v56 = vld [vmem:[%s6387_s13] ss:$0 sm:$0xff] }
 0x47e   :  { %v3239_v42 = vadd.f32 %v3238_v47, %v3227_v33  ;;  %v3245_v6 = vadd.f32 %v3244_v52, %v3229_v37  ;;  %v3259_v59 = vmul.f32 0.25, %v3236_v63  ;;  %v3261_v55 = vmul.f32 0.25, %v3242_v24  ;;  %v3701_v47 = vld [vmem:[%s6390_s16] sm:$0x3] }
 0x47f   :  { %v3248_v5 = vadd.f32 %v3247_v51, %v3230_v28  ;;  %v3254_v26 = vadd.f32 %v3253_v36, %v3232_v10  ;;  %v3231_v19 = vmax.f32 %v3127_v43, 0.0  ;;  %v3233_v22 = vmax.f32 %v3200_v60, 0.0 }
 0x480   :  { %v3260_v13 = vmul.f32 0.25, %v3239_v42  ;;  %v3262_v7 = vmul.f32 0.25, %v3245_v6  ;;  %v4271_v33 = vmov 0.0  }
 0x481   :  { %v3251_v3 = vadd.f32 %v3250_v1, %v3231_v19  ;;  %v3257_v46 = vadd.f32 %v3256_v57, %v3233_v22  ;;  %v3263_v15 = vmul.f32 0.25, %v3248_v5  ;;  %v3265_v32 = vmul.f32 0.25, %v3254_v26 }
 0x483   :  { %v3264_v38 = vmul.f32 0.25, %v3251_v3  ;;  %v3266_v12 = vmul.f32 0.25, %v3257_v46  ;;  %v3267_v44 = vpack.c.bf16 %v3263_v15, %v3259_v59  ;;  %v3269_v25 = vpack.c.bf16 %v3265_v32, %v3261_v55 }
 0x485   :  { %v3268_v0 = vpack.c.bf16 %v3264_v38, %v3260_v13  ;;  %v3270_v31 = vpack.c.bf16 %v3266_v12, %v3262_v7 }
 0x487   :  { %3559 = vmatprep.mubr.bf16.mxu0 %v3268_v0  ;;  %3600 = vmatprep.mubr.bf16.mxu1 %v3270_v31 }
 0x488   :  { %3560 = vmatmul.mubr.bf16.vlgmr.msra.gmra.mxu0 %v3267_v44  ;;  %3601 = vmatmul.mubr.bf16.vlgmr.msra.gmra.mxu1 %v3269_v25 }
 0x489   :  { %4056 = vmatpush3.msra.mxu0 %v3618_v40 }
 0x48a   :  { %4057 = vmatprep.subr.mxu0 %v3617_v17 }
 0x48b   :  { %4058 = vmatpush3.msra.mxu0 %v3617_v17 }
 0x48c   :  { %4059 = vmatprep.subr.mxu0 %v3616_v50 }
 0x48d   :  { %4060 = vmatpush3.msra.mxu0 %v3616_v50 }
 0x48e   :  { %4061 = vmatprep.subr.mxu0 %v3615_v23 }
 0x48f   :  { %4062 = vmatpush3.msra.mxu0 %v3615_v23 }
 0x490   :  { %4063 = vmatprep.subr.mxu0 %v3614_v61 }
 0x491   :  { %4064 = vmatpush3.msra.mxu0 %v3614_v61 }
 0x492   :  { %4065 = vmatprep.subr.mxu0 %v3613_v41 }
 0x493   :  { %4066 = vmatpush3.msra.mxu0 %v3613_v41 }
 0x494   :  { %4070 = vmatprep.subr.mxu0 %v4271_v33 }
 0x548   :  { %v3976_v34 = vpop.f32.mrf.mxu0  ;;  %v3998_v14 = vpop.f32.mrf.mxu1 }
 0x54a   :  { %v3977_v11 = vpop.f32.mrf.mxu0  ;;  %v3999_v21 = vpop.f32.mrf.mxu1 }
 0x54b   :  { %v3978_v49 = vadd.f32 %v3977_v11, %v3976_v34  ;;  %v4000_v39 = vadd.f32 %v3999_v21, %v3998_v14 }
 0x54c   :  { %v3979_v53 = vpop.f32.mrf.mxu0  ;;  %v4001_v54 = vpop.f32.mrf.mxu1 }
 0x54d   :  { %v3603_v20 = vadd.f32 %v4000_v39, %v3978_v49 }
 0x54e   :  { %v3980_v2 = vpop.f32.mrf.mxu0  ;;  %v4002_v18 = vpop.f32.mrf.mxu1 }
 0x54f   :  { %v3611_v58 = vmul.f32 %v3609_v45, %v3603_v20  ;;  %v3981_v29 = vadd.f32 %v3980_v2, %v3979_v53  ;;  %v4003_v16 = vadd.f32 %v4002_v18, %v4001_v54 }
 0x551   :  { %v3606_v35 = vadd.f32 %v4003_v16, %v3981_v29  ;;  %4067 = vmatprep.mubr.msk.f32.mxu0 %vm3619_vm1, %v3611_v58 }
 0x553   :  { %v3612_v9 = vmul.f32 %v3610_v8, %v3606_v35 }
 0x555   :  { %4068 = vmatmul.mubr.msk.f32.vlgmr.msra.gmra.mxu0 %vm3619_vm1, %v3612_v9 }
 0x556   :  { %4074 = vmatprep.mubr.msk.f32.mxu0 %vm4272_vm2, %v4271_v33 }
 0x615   :  { %v4069_v37 = vpop.f32.mrf.mxu0 }
 0x616   :  { %4071 = vmatpush3.msra.mxu0 %v4069_v37 }
 0x617   :  { %v3692_v52 = vpop.f32.mrf.mxu0  ;;  %4072 = vmatprep.subr.mxu0 %v4271_v33 }
 0x618   :  { %4073 = vmatpush3.msra.mxu0 %v3692_v52 }
 0x619   :  { %4075 = vmatmul.mubr.msk.f32.vlgmr.msra.gmra.mxu0 %vm3709_vm3, %v3701_v47 }
 0x6d9   :  { %v3779_v62 = vpop.f32.mrf.mxu0 }
 0x6da   :  { %v3780_v48 = vadd.f32 %v3938_v56, %v3779_v62 }
 0x6db   :  { %v4076_v30 = vpop.f32.mrf.mxu0 }
 0x6dc   :  { %3784 = vst.msk [vmem:[#allocation2] sm:$0x3] %vm3783_vm4, %v3780_v48 }
 0x6dd   :  { %4259 = shalt.err (!%p4256_p4)
}
 0x6de   :  { %3794 = dma.vmem_to_hbm [thread:$0]  %s3792_s25, 32, %s6391_s17, [#allocation3]  }
 0x6df   :  { %4268 = dma.done.wait [#allocation3], 32  }
 0x6e0   :  { %4269 = vsyncadd [#allocation3], 4294967264 }
 0x6e1   :  { %3798 = vsyncpa [#allocation3], 1 }

</bundles_post_ra>
